<compile_context>
chip_gen: v6e
topology: v6e:2x2x1
jax: 0.10.0
libtpu: 0.0.40
codegen_flags: <defaults>
</compile_context>

<pallas_src>
import functools

import jax
import jax.numpy as jnp
from jax.experimental import pallas as pl
from jax.experimental.pallas import tpu as pltpu


# ----------------------------- Pallas kernels ------------------------------ #

def _matmul_bias_kernel(a_ref, b_ref, bias_ref, o_ref, *, apply_relu):
    acc = jnp.dot(a_ref[...], b_ref[...], preferred_element_type=jnp.float32)
    acc = acc + bias_ref[...]
    if apply_relu:
        acc = jnp.maximum(acc, 0.0)
    o_ref[...] = acc.astype(o_ref.dtype)


def matmul_bias(a, b, bias, apply_relu=False):
    """(M,K) @ (K,N) + bias(1,N), optional fused ReLU.  bf16 operands, f32 accumulate."""
    M, K = a.shape
    K2, N = b.shape
    assert K == K2 and bias.shape == (1, N)
    kernel = functools.partial(_matmul_bias_kernel, apply_relu=apply_relu)
    return pl.pallas_call(
        kernel,
        out_shape=jax.ShapeDtypeStruct((M, N), jnp.float32),
        in_specs=[pl.BlockSpec((M, K), lambda: (0, 0)),
                  pl.BlockSpec((K, N), lambda: (0, 0)),
                  pl.BlockSpec((1, N), lambda: (0, 0))],
        out_specs=pl.BlockSpec((M, N), lambda: (0, 0)),
    )(a, b, bias)


def _encoder_kernel(cols_ref, cw_ref, cb_ref, fw_ref, fb_ref, out_ref, pool_ref, *, inv_hw):
    """Fused conv(matmul)+ReLU, global-avg-pool accumulation, then FC+ReLU at last chunk."""
    m = pl.program_id(1)

    @pl.when(m == 0)
    def _():
        pool_ref[...] = jnp.zeros_like(pool_ref)

    conv = jnp.dot(cols_ref[...], cw_ref[...], preferred_element_type=jnp.float32)
    conv = jnp.maximum(conv + cb_ref[...], 0.0)                       # (TM, Cconv), f32
    pool_ref[...] += jnp.sum(conv, axis=0, keepdims=True)             # running pool sum

    @pl.when(m == pl.num_programs(1) - 1)
    def _():
        pooled = (pool_ref[...] * inv_hw).astype(fw_ref.dtype)        # (1, Cconv) bf16
        feats = jnp.dot(pooled, fw_ref[...], preferred_element_type=jnp.float32)
        feats = jnp.maximum(feats + fb_ref[...], 0.0)                 # (1, E)
        out_ref[0] = feats.astype(out_ref.dtype)


def encoder_forward(cols, conv_w, conv_b, fc_w, fc_b, *, batch, hw, tm=256):
    """cols: (B*H*W, Kpad) bf16 -> image features (B, E) f32, in one fused pallas_call."""
    assert hw % tm == 0
    n_m = hw // tm
    kpad = cols.shape[1]
    cconv = conv_w.shape[1]
    e = fc_w.shape[1]
    kernel = functools.partial(_encoder_kernel, inv_hw=1.0 / hw)
    out = pl.pallas_call(
        kernel,
        out_shape=jax.ShapeDtypeStruct((batch, 1, e), jnp.float32),
        grid_spec=pltpu.PrefetchScalarGridSpec(
            num_scalar_prefetch=0,
            grid=(batch, n_m),
            in_specs=[pl.BlockSpec((tm, kpad), lambda b, m: (b * n_m + m, 0)),
                      pl.BlockSpec((kpad, cconv), lambda b, m: (0, 0)),
                      pl.BlockSpec((1, cconv), lambda b, m: (0, 0)),
                      pl.BlockSpec((cconv, e), lambda b, m: (0, 0)),
                      pl.BlockSpec((1, e), lambda b, m: (0, 0))],
            out_specs=pl.BlockSpec((1, 1, e), lambda b, m: (b, 0, 0)),
            scratch_shapes=[pltpu.VMEM((1, cconv), jnp.float32)],
        ),
        compiler_params=pltpu.CompilerParams(
            dimension_semantics=("parallel", "arbitrary")),
    )(cols, conv_w, conv_b, fc_w, fc_b)
    return out.reshape(batch, e)


def _lstm_kernel(gx_ref, whh_ref, out_ref, h_scr, c_scr):
    """Single grid point; gates_x precomputed.  Per step: gates = gx[t] + h @ W_hh."""
    T = gx_ref.shape[0]
    H = h_scr.shape[-1]
    h_scr[...] = jnp.zeros_like(h_scr)
    c_scr[...] = jnp.zeros_like(c_scr)

    def step(t, carry):
        gates = gx_ref[t] + jnp.dot(h_scr[...].astype(whh_ref.dtype), whh_ref[...],
                                    preferred_element_type=jnp.float32)   # (B, 4H)
        # PyTorch gate order: i, f, g, o
        i_g = jax.nn.sigmoid(gates[:, 0 * H:1 * H])
        f_g = jax.nn.sigmoid(gates[:, 1 * H:2 * H])
        g_g = jnp.tanh(gates[:, 2 * H:3 * H])
        o_g = jax.nn.sigmoid(gates[:, 3 * H:4 * H])
        c_new = f_g * c_scr[...] + i_g * g_g
        h_new = o_g * jnp.tanh(c_new)
        c_scr[...] = c_new
        h_scr[...] = h_new
        out_ref[t] = h_new.astype(out_ref.dtype)
        return carry

    jax.lax.fori_loop(0, T, step, 0, unroll=True)


def lstm_recurrence(gates_x, w_hh):
    """gates_x: (T, B, 4H) f32 (x@W_ih + b already applied); w_hh: (H, 4H) bf16 -> (T, B, H)."""
    T, B, H4 = gates_x.shape
    H = w_hh.shape[0]
    return pl.pallas_call(
        _lstm_kernel,
        out_shape=jax.ShapeDtypeStruct((T, B, H), jnp.float32),
        in_specs=[pl.BlockSpec((T, B, H4), lambda: (0, 0, 0)),
                  pl.BlockSpec((H, H4), lambda: (0, 0))],
        out_specs=pl.BlockSpec((T, B, H), lambda: (0, 0, 0)),
        scratch_shapes=[pltpu.VMEM((B, H), jnp.float32),   # h
                        pltpu.VMEM((B, H), jnp.float32)],  # c
    )(gates_x, w_hh)


# ------------------------------- JAX glue ---------------------------------- #

def im2col_3x3(x, k_pad):
    """x: (B, C, H, W), pad=1, stride=1 -> (B*H*W, k_pad); columns ordered (c, dh, dw)."""
    B, C, Hh, Ww = x.shape
    xp = jnp.pad(x, ((0, 0), (0, 0), (1, 1), (1, 1)))
    shifts = [xp[:, :, dh:dh + Hh, dw:dw + Ww] for dh in range(3) for dw in range(3)]
    patches = jnp.stack(shifts, axis=-1)                              # (B, C, H, W, 9)
    cols = patches.transpose(0, 2, 3, 1, 4).reshape(B * Hh * Ww, C * 9)
    if k_pad > C * 9:
        cols = jnp.pad(cols, ((0, 0), (0, k_pad - C * 9)))
    return cols


@jax.jit
def model_forward(params, image, caption):
    """image: (B, 3, H, W) float32 NCHW; caption: (B, L) int32.  Returns (B, L, vocab)."""
    B, _, Himg, Wimg = image.shape
    E = params["enc_fc_w"].shape[1]
    H = params["w_hh_t"].shape[0]

    # ---- Encoder: fused conv + ReLU + global-avg-pool + Linear + ReLU ----
    cols = im2col_3x3(image, params["conv_w"].shape[0]).astype(jnp.bfloat16)
    feats = encoder_forward(cols, params["conv_w"], params["conv_b"],
                            params["enc_fc_w"], params["enc_fc_b"],
                            batch=B, hw=Himg * Wimg)                  # (B, E) f32
    # Dropout(0.5): identity (eval mode)

    # ---- Decoder (time-major everywhere; no activation transposes) ----
    cap_in_t = caption[:, :-1].T                                      # (L-1, B)
    emb_t = jnp.take(params["embed"], cap_in_t, axis=0)               # (L-1, B, E) gather (glue)
    seq_t = jnp.concatenate([feats[None], emb_t], axis=0)             # (T, B, E)
    T = seq_t.shape[0]

    # Hoisted input projection: one (T*B, E) @ (E, 4H) matmul with b_ih+b_hh fused.
    gx = matmul_bias(seq_t.reshape(T * B, E).astype(jnp.bfloat16),
                     params["w_ih_t"], params["lstm_b"])              # (T*B, 4H) f32
    h = lstm_recurrence(gx.reshape(T, B, 4 * H), params["w_hh_t"])    # (T, B, H) f32

    logits = matmul_bias(h.reshape(T * B, H).astype(jnp.bfloat16),
                         params["fc1_w"], params["fc1_b"])            # (T*B, V) f32
    V = logits.shape[1]
    return logits.reshape(T, B, V).transpose(1, 0, 2)                 # (B, T, V)


# --------------------------------- main ------------------------------------ #

if __name__ == "__main__":
    B = 2            # batch
    V = 256          # vocab_size (small)
    E = 128          # embed_size
    H = 128          # hidden_size
    CAP_LEN = 9      # raw caption length; model consumes caption[:, :-1]
    IMG = 32         # image spatial size
    CIN, CCONV = 3, 32
    KPAD = 32        # conv im2col K (27) padded to a lane/sublane-friendly 32

    key = jax.random.PRNGKey(0)
    k = jax.random.split(key, 12)

    conv_w = 0.1 * jax.random.normal(k[0], (CIN * 9, CCONV), jnp.float32)
    conv_w = jnp.pad(conv_w, ((0, KPAD - CIN * 9), (0, 0)))           # zero rows for padded K

    params = dict(
        # MXU weights stored bf16 (f32 accumulation in-kernel); biases/state stay f32.
        conv_w=conv_w.astype(jnp.bfloat16),
        conv_b=0.01 * jax.random.normal(k[1], (1, CCONV), jnp.float32),
        enc_fc_w=(0.1 * jax.random.normal(k[2], (CCONV, E), jnp.float32)).astype(jnp.bfloat16),
        enc_fc_b=0.01 * jax.random.normal(k[3], (1, E), jnp.float32),
        embed=0.1 * jax.random.normal(k[4], (V, E), jnp.float32),
        # PyTorch LSTM weights (4H, E)/(4H, H) stored pre-transposed; biases b_ih+b_hh combined.
        w_ih_t=(0.1 * jax.random.normal(k[5], (E, 4 * H), jnp.float32)).astype(jnp.bfloat16),
        w_hh_t=(0.1 * jax.random.normal(k[6], (H, 4 * H), jnp.float32)).astype(jnp.bfloat16),
        lstm_b=0.01 * jax.random.normal(k[7], (1, 4 * H), jnp.float32),
        fc1_w=(0.1 * jax.random.normal(k[8], (H, V), jnp.float32)).astype(jnp.bfloat16),
        fc1_b=0.01 * jax.random.normal(k[9], (1, V), jnp.float32),
    )

    image = jax.random.normal(k[10], (B, CIN, IMG, IMG), jnp.float32)
    caption = jax.random.randint(k[11], (B, CAP_LEN), 0, V, dtype=jnp.int32)

    out = model_forward(params, image, caption)
    out = jax.block_until_ready(out)
    assert out.shape == (B, CAP_LEN, V), out.shape   # 1 feature step + (CAP_LEN-1) tokens
    assert jnp.all(jnp.isfinite(out))
    print("KERNEL_OK")
</pallas_src>

<mosaic_0001>
module attributes {stable_mosaic.version = 11 : i64} {
  func.func @_encoder_kernel(%arg0: i32, %arg1: i32, %arg2: memref<256x32xbf16, #tpu.memory_space<vmem>>, %arg3: memref<32x32xbf16, #tpu.memory_space<vmem>>, %arg4: memref<1x32xf32, #tpu.memory_space<vmem>>, %arg5: memref<32x128xbf16, #tpu.memory_space<vmem>>, %arg6: memref<1x128xf32, #tpu.memory_space<vmem>>, %arg7: memref<1x1x128xf32, #tpu.memory_space<vmem>>, %arg8: memref<1x32xf32, #tpu.memory_space<vmem>>) attributes {dimension_semantics = [#tpu.dimension_semantics<parallel>, #tpu.dimension_semantics<arbitrary>], iteration_bounds = array<i64: 2, 4>, scalar_prefetch = 0 : i64, scratch_operands = 1 : i64, tpu.core_type = #tpu.core_type<tc>, window_params = [{transform_indices = @transform_0, window_bounds = array<i64: 256, 32>}, {pipeline_mode = #tpu.pipeline_mode<synchronous>, transform_indices = @transform_1, window_bounds = array<i64: 32, 32>}, {pipeline_mode = #tpu.pipeline_mode<synchronous>, transform_indices = @transform_2, window_bounds = array<i64: 1, 32>}, {pipeline_mode = #tpu.pipeline_mode<synchronous>, transform_indices = @transform_3, window_bounds = array<i64: 32, 128>}, {pipeline_mode = #tpu.pipeline_mode<synchronous>, transform_indices = @transform_4, window_bounds = array<i64: 1, 128>}, {transform_indices = @transform_5, window_bounds = array<i64: 1, 1, 128>}]} {
    %c0_i32 = arith.constant 0 : i32
    %0 = arith.cmpi eq, %arg1, %c0_i32 : i32
    %1 = arith.extui %0 : i1 to i32
    %c0_i32_0 = arith.constant 0 : i32
    %2 = arith.cmpi ne, %1, %c0_i32_0 : i32
    scf.if %2 {
      %cst_13 = arith.constant 0.000000e+00 : f32
      %19 = vector.broadcast %cst_13 : f32 to vector<1x32xf32>
      %c0_14 = arith.constant 0 : index
      %c0_15 = arith.constant 0 : index
      %20 = vector.load %arg8[%c0_14, %c0_15] : memref<1x32xf32, #tpu.memory_space<vmem>>, vector<1x32xf32>
      tpu.vector_store %arg8[%c0_14, %c0_15], %19 {strides = array<i32>} : memref<1x32xf32, #tpu.memory_space<vmem>>, vector<1x32xf32>,
    } else {
    }
    %c0 = arith.constant 0 : index
    %c0_1 = arith.constant 0 : index
    %3 = vector.load %arg2[%c0, %c0_1] : memref<256x32xbf16, #tpu.memory_space<vmem>>, vector<256x32xbf16>
    %c0_2 = arith.constant 0 : index
    %c0_3 = arith.constant 0 : index
    %4 = vector.load %arg3[%c0_2, %c0_3] : memref<32x32xbf16, #tpu.memory_space<vmem>>, vector<32x32xbf16>
    %cst = arith.constant dense<0.000000e+00> : vector<256x32xf32>
    %5 = tpu.matmul %3, %4, %cst {dimension_numbers = #tpu.dot_dimension_numbers<[1], [0], [0], [1], [0, 0, 1, 1], [], []>} : vector<256x32xbf16>, vector<32x32xbf16>, vector<256x32xf32> -> vector<256x32xf32>
    %c0_4 = arith.constant 0 : index
    %c0_5 = arith.constant 0 : index
    %6 = vector.load %arg4[%c0_4, %c0_5] : memref<1x32xf32, #tpu.memory_space<vmem>>, vector<1x32xf32>
    %7 = vector.broadcast %6 : vector<1x32xf32> to vector<256x32xf32>
    %8 = arith.addf %5, %7 : vector<256x32xf32>
    %cst_6 = arith.constant 0.000000e+00 : f32
    %9 = vector.broadcast %cst_6 : f32 to vector<256x32xf32>
    %10 = arith.maximumf %8, %9 : vector<256x32xf32>
    %c0_7 = arith.constant 0 : index
    %c0_8 = arith.constant 0 : index
    %11 = vector.load %arg8[%c0_7, %c0_8] : memref<1x32xf32, #tpu.memory_space<vmem>>, vector<1x32xf32>
    %cst_9 = arith.constant dense<0.000000e+00> : vector<32xf32>
    %12 = vector.multi_reduction <add>, %10, %cst_9 [0] : vector<256x32xf32> to vector<32xf32>
    %13 = vector.shape_cast %12 : vector<32xf32> to vector<1x32xf32>
    %14 = arith.addf %11, %13 : vector<1x32xf32>
    %c0_10 = arith.constant 0 : index
    %c0_11 = arith.constant 0 : index
    %15 = vector.load %arg8[%c0_10, %c0_11] : memref<1x32xf32, #tpu.memory_space<vmem>>, vector<1x32xf32>
    tpu.vector_store %arg8[%c0_10, %c0_11], %14 {strides = array<i32>} : memref<1x32xf32, #tpu.memory_space<vmem>>, vector<1x32xf32>,
    %c3_i32 = arith.constant 3 : i32
    %16 = arith.cmpi eq, %arg1, %c3_i32 : i32
    %17 = arith.extui %16 : i1 to i32
    %c0_i32_12 = arith.constant 0 : i32
    %18 = arith.cmpi ne, %17, %c0_i32_12 : i32
    scf.if %18 {
      %c0_13 = arith.constant 0 : index
      %c0_14 = arith.constant 0 : index
      %19 = vector.load %arg8[%c0_13, %c0_14] : memref<1x32xf32, #tpu.memory_space<vmem>>, vector<1x32xf32>
      %cst_15 = arith.constant 9.765625E-4 : f32
      %20 = vector.broadcast %cst_15 : f32 to vector<1x32xf32>
      %21 = arith.mulf %19, %20 : vector<1x32xf32>
      %22 = arith.truncf %21 : vector<1x32xf32> to vector<1x32xbf16>
      %c0_16 = arith.constant 0 : index
      %c0_17 = arith.constant 0 : index
      %23 = vector.load %arg5[%c0_16, %c0_17] : memref<32x128xbf16, #tpu.memory_space<vmem>>, vector<32x128xbf16>
      %cst_18 = arith.constant dense<0.000000e+00> : vector<1x128xf32>
      %24 = tpu.matmul %22, %23, %cst_18 {dimension_numbers = #tpu.dot_dimension_numbers<[1], [0], [0], [1], [0, 0, 1, 1], [], []>} : vector<1x32xbf16>, vector<32x128xbf16>, vector<1x128xf32> -> vector<1x128xf32>
      %c0_19 = arith.constant 0 : index
      %c0_20 = arith.constant 0 : index
      %25 = vector.load %arg6[%c0_19, %c0_20] : memref<1x128xf32, #tpu.memory_space<vmem>>, vector<1x128xf32>
      %26 = arith.addf %24, %25 : vector<1x128xf32>
      %cst_21 = arith.constant 0.000000e+00 : f32
      %27 = vector.broadcast %cst_21 : f32 to vector<1x128xf32>
      %28 = arith.maximumf %26, %27 : vector<1x128xf32>
      %c0_22 = arith.constant 0 : index
      %c0_23 = arith.constant 0 : index
      %c0_24 = arith.constant 0 : index
      %29 = vector.load %arg7[%c0_22, %c0_23, %c0_24] : memref<1x1x128xf32, #tpu.memory_space<vmem>>, vector<1x1x128xf32>
      %30 = vector.shape_cast %29 : vector<1x1x128xf32> to vector<1x128xf32>
      %31 = vector.shape_cast %28 : vector<1x128xf32> to vector<1x1x128xf32>
      tpu.vector_store %arg7[%c0_22, %c0_23, %c0_24], %31 {strides = array<i32>} : memref<1x1x128xf32, #tpu.memory_space<vmem>>, vector<1x1x128xf32>,
    } else {
    }
    return
  }
  func.func @transform_0(%arg0: i32, %arg1: i32) -> (i32, i32) {
    %c4_i32 = arith.constant 4 : i32
    %0 = arith.muli %arg0, %c4_i32 : i32
    %1 = arith.addi %0, %arg1 : i32
    %c0_i32 = arith.constant 0 : i32
    %c0_i32_0 = arith.constant 0 : i32
    return %1, %c0_i32 : i32, i32
  }
  func.func @transform_1(%arg0: i32, %arg1: i32) -> (i32, i32) {
    %c0_i32 = arith.constant 0 : i32
    %c0_i32_0 = arith.constant 0 : i32
    %c0_i32_1 = arith.constant 0 : i32
    return %c0_i32, %c0_i32_0 : i32, i32
  }
  func.func @transform_2(%arg0: i32, %arg1: i32) -> (i32, i32) {
    %c0_i32 = arith.constant 0 : i32
    %c0_i32_0 = arith.constant 0 : i32
    %c0_i32_1 = arith.constant 0 : i32
    return %c0_i32, %c0_i32_0 : i32, i32
  }
  func.func @transform_3(%arg0: i32, %arg1: i32) -> (i32, i32) {
    %c0_i32 = arith.constant 0 : i32
    %c0_i32_0 = arith.constant 0 : i32
    %c0_i32_1 = arith.constant 0 : i32
    return %c0_i32, %c0_i32_0 : i32, i32
  }
  func.func @transform_4(%arg0: i32, %arg1: i32) -> (i32, i32) {
    %c0_i32 = arith.constant 0 : i32
    %c0_i32_0 = arith.constant 0 : i32
    %c0_i32_1 = arith.constant 0 : i32
    return %c0_i32, %c0_i32_0 : i32, i32
  }
  func.func @transform_5(%arg0: i32, %arg1: i32) -> (i32, i32, i32) {
    %c0_i32 = arith.constant 0 : i32
    %c0_i32_0 = arith.constant 0 : i32
    %c0_i32_1 = arith.constant 0 : i32
    return %arg0, %c0_i32, %c0_i32_0 : i32, i32, i32
  }
}

module attributes {stable_mosaic.version = 11 : i64} {
  func.func @_matmul_bias_kernel(%arg0: memref<18x128xbf16, #tpu.memory_space<vmem>>, %arg1: memref<128x512xbf16, #tpu.memory_space<vmem>>, %arg2: memref<1x512xf32, #tpu.memory_space<vmem>>, %arg3: memref<18x512xf32, #tpu.memory_space<vmem>>) attributes {dimension_semantics = [], scalar_prefetch = 0 : i64, scratch_operands = 0 : i64, tpu.core_type = #tpu.core_type<tc>} {
    %c0 = arith.constant 0 : index
    %c0_0 = arith.constant 0 : index
    %0 = vector.load %arg0[%c0, %c0_0] : memref<18x128xbf16, #tpu.memory_space<vmem>>, vector<18x128xbf16>
    %c0_1 = arith.constant 0 : index
    %c0_2 = arith.constant 0 : index
    %1 = vector.load %arg1[%c0_1, %c0_2] : memref<128x512xbf16, #tpu.memory_space<vmem>>, vector<128x512xbf16>
    %cst = arith.constant dense<0.000000e+00> : vector<18x512xf32>
    %2 = tpu.matmul %0, %1, %cst {dimension_numbers = #tpu.dot_dimension_numbers<[1], [0], [0], [1], [0, 0, 1, 1], [], []>} : vector<18x128xbf16>, vector<128x512xbf16>, vector<18x512xf32> -> vector<18x512xf32>
    %c0_3 = arith.constant 0 : index
    %c0_4 = arith.constant 0 : index
    %3 = vector.load %arg2[%c0_3, %c0_4] : memref<1x512xf32, #tpu.memory_space<vmem>>, vector<1x512xf32>
    %4 = vector.broadcast %3 : vector<1x512xf32> to vector<18x512xf32>
    %5 = arith.addf %2, %4 : vector<18x512xf32>
    %c0_5 = arith.constant 0 : index
    %c0_6 = arith.constant 0 : index
    %6 = vector.load %arg3[%c0_5, %c0_6] : memref<18x512xf32, #tpu.memory_space<vmem>>, vector<18x512xf32>
    tpu.vector_store %arg3[%c0_5, %c0_6], %5 {strides = array<i32>} : memref<18x512xf32, #tpu.memory_space<vmem>>, vector<18x512xf32>,
    return
  }
}

module attributes {stable_mosaic.version = 11 : i64} {
  func.func @_lstm_kernel(%arg0: memref<9x2x512xf32, #tpu.memory_space<vmem>>, %arg1: memref<128x512xbf16, #tpu.memory_space<vmem>>, %arg2: memref<9x2x128xf32, #tpu.memory_space<vmem>>, %arg3: memref<2x128xf32, #tpu.memory_space<vmem>>, %arg4: memref<2x128xf32, #tpu.memory_space<vmem>>) attributes {dimension_semantics = [], scalar_prefetch = 0 : i64, scratch_operands = 2 : i64, tpu.core_type = #tpu.core_type<tc>} {
    %cst = arith.constant 0.000000e+00 : f32
    %0 = vector.broadcast %cst : f32 to vector<2x128xf32>
    %c0 = arith.constant 0 : index
    %c0_0 = arith.constant 0 : index
    %1 = vector.load %arg3[%c0, %c0_0] : memref<2x128xf32, #tpu.memory_space<vmem>>, vector<2x128xf32>
    tpu.vector_store %arg3[%c0, %c0_0], %0 {strides = array<i32>} : memref<2x128xf32, #tpu.memory_space<vmem>>, vector<2x128xf32>,
    %cst_1 = arith.constant 0.000000e+00 : f32
    %2 = vector.broadcast %cst_1 : f32 to vector<2x128xf32>
    %c0_2 = arith.constant 0 : index
    %c0_3 = arith.constant 0 : index
    %3 = vector.load %arg4[%c0_2, %c0_3] : memref<2x128xf32, #tpu.memory_space<vmem>>, vector<2x128xf32>
    tpu.vector_store %arg4[%c0_2, %c0_3], %2 {strides = array<i32>} : memref<2x128xf32, #tpu.memory_space<vmem>>, vector<2x128xf32>,
    %c0_i32 = arith.constant 0 : i32
    %4 = arith.index_cast %c0_i32 : i32 to index
    %c0_4 = arith.constant 0 : index
    %c0_5 = arith.constant 0 : index
    %5 = vector.load %arg0[%4, %c0_4, %c0_5] : memref<9x2x512xf32, #tpu.memory_space<vmem>>, vector<1x2x512xf32>
    %6 = vector.shape_cast %5 : vector<1x2x512xf32> to vector<2x512xf32>
    %c0_6 = arith.constant 0 : index
    %c0_7 = arith.constant 0 : index
    %7 = vector.load %arg3[%c0_6, %c0_7] : memref<2x128xf32, #tpu.memory_space<vmem>>, vector<2x128xf32>
    %8 = arith.truncf %7 : vector<2x128xf32> to vector<2x128xbf16>
    %c0_8 = arith.constant 0 : index
    %c0_9 = arith.constant 0 : index
    %9 = vector.load %arg1[%c0_8, %c0_9] : memref<128x512xbf16, #tpu.memory_space<vmem>>, vector<128x512xbf16>
    %cst_10 = arith.constant dense<0.000000e+00> : vector<2x512xf32>
    %10 = tpu.matmul %8, %9, %cst_10 {dimension_numbers = #tpu.dot_dimension_numbers<[1], [0], [0], [1], [0, 0, 1, 1], [], []>} : vector<2x128xbf16>, vector<128x512xbf16>, vector<2x512xf32> -> vector<2x512xf32>
    %11 = arith.addf %6, %10 : vector<2x512xf32>
    %12 = vector.extract_strided_slice %11 {offsets = [0, 0], sizes = [2, 128], strides = [1, 1]} : vector<2x512xf32> to vector<2x128xf32>
    %13 = arith.negf %12 : vector<2x128xf32>
    %14 = math.exp %13 : vector<2x128xf32>
    %cst_11 = arith.constant 1.000000e+00 : f32
    %15 = vector.broadcast %cst_11 : f32 to vector<2x128xf32>
    %16 = arith.addf %15, %14 : vector<2x128xf32>
    %17 = arith.divf %15, %16 : vector<2x128xf32>
    %18 = vector.extract_strided_slice %11 {offsets = [0, 128], sizes = [2, 128], strides = [1, 1]} : vector<2x512xf32> to vector<2x128xf32>
    %19 = arith.negf %18 : vector<2x128xf32>
    %20 = math.exp %19 : vector<2x128xf32>
    %cst_12 = arith.constant 1.000000e+00 : f32
    %21 = vector.broadcast %cst_12 : f32 to vector<2x128xf32>
    %22 = arith.addf %21, %20 : vector<2x128xf32>
    %23 = arith.divf %21, %22 : vector<2x128xf32>
    %24 = vector.extract_strided_slice %11 {offsets = [0, 256], sizes = [2, 128], strides = [1, 1]} : vector<2x512xf32> to vector<2x128xf32>
    %25 = math.tanh %24 : vector<2x128xf32>
    %26 = vector.extract_strided_slice %11 {offsets = [0, 384], sizes = [2, 128], strides = [1, 1]} : vector<2x512xf32> to vector<2x128xf32>
    %27 = arith.negf %26 : vector<2x128xf32>
    %28 = math.exp %27 : vector<2x128xf32>
    %cst_13 = arith.constant 1.000000e+00 : f32
    %29 = vector.broadcast %cst_13 : f32 to vector<2x128xf32>
    %30 = arith.addf %29, %28 : vector<2x128xf32>
    %31 = arith.divf %29, %30 : vector<2x128xf32>
    %c0_14 = arith.constant 0 : index
    %c0_15 = arith.constant 0 : index
    %32 = vector.load %arg4[%c0_14, %c0_15] : memref<2x128xf32, #tpu.memory_space<vmem>>, vector<2x128xf32>
    %33 = arith.mulf %23, %32 : vector<2x128xf32>
    %34 = arith.mulf %17, %25 : vector<2x128xf32>
    %35 = arith.addf %33, %34 : vector<2x128xf32>
    %36 = math.tanh %35 : vector<2x128xf32>
    %37 = arith.mulf %31, %36 : vector<2x128xf32>
    %c0_16 = arith.constant 0 : index
    %c0_17 = arith.constant 0 : index
    %38 = vector.load %arg4[%c0_16, %c0_17] : memref<2x128xf32, #tpu.memory_space<vmem>>, vector<2x128xf32>
    tpu.vector_store %arg4[%c0_16, %c0_17], %35 {strides = array<i32>} : memref<2x128xf32, #tpu.memory_space<vmem>>, vector<2x128xf32>,
    %c0_18 = arith.constant 0 : index
    %c0_19 = arith.constant 0 : index
    %39 = vector.load %arg3[%c0_18, %c0_19] : memref<2x128xf32, #tpu.memory_space<vmem>>, vector<2x128xf32>
    tpu.vector_store %arg3[%c0_18, %c0_19], %37 {strides = array<i32>} : memref<2x128xf32, #tpu.memory_space<vmem>>, vector<2x128xf32>,
    %40 = arith.index_cast %c0_i32 : i32 to index
    %c0_20 = arith.constant 0 : index
    %c0_21 = arith.constant 0 : index
    %41 = vector.load %arg2[%40, %c0_20, %c0_21] : memref<9x2x128xf32, #tpu.memory_space<vmem>>, vector<1x2x128xf32>
    %42 = vector.shape_cast %41 : vector<1x2x128xf32> to vector<2x128xf32>
    %43 = vector.shape_cast %37 : vector<2x128xf32> to vector<1x2x128xf32>
    tpu.vector_store %arg2[%40, %c0_20, %c0_21], %43 {strides = array<i32>} : memref<9x2x128xf32, #tpu.memory_space<vmem>>, vector<1x2x128xf32>,
    %c1_i32 = arith.constant 1 : i32
    %44 = arith.index_cast %c1_i32 : i32 to index
    %c0_22 = arith.constant 0 : index
    %c0_23 = arith.constant 0 : index
    %45 = vector.load %arg0[%44, %c0_22, %c0_23] : memref<9x2x512xf32, #tpu.memory_space<vmem>>, vector<1x2x512xf32>
    %46 = vector.shape_cast %45 : vector<1x2x512xf32> to vector<2x512xf32>
    %c0_24 = arith.constant 0 : index
    %c0_25 = arith.constant 0 : index
    %47 = vector.load %arg3[%c0_24, %c0_25] : memref<2x128xf32, #tpu.memory_space<vmem>>, vector<2x128xf32>
    %48 = arith.truncf %47 : vector<2x128xf32> to vector<2x128xbf16>
    %c0_26 = arith.constant 0 : index
    %c0_27 = arith.constant 0 : index
    %49 = vector.load %arg1[%c0_26, %c0_27] : memref<128x512xbf16, #tpu.memory_space<vmem>>, vector<128x512xbf16>
    %cst_28 = arith.constant dense<0.000000e+00> : vector<2x512xf32>
    %50 = tpu.matmul %48, %49, %cst_28 {dimension_numbers = #tpu.dot_dimension_numbers<[1], [0], [0], [1], [0, 0, 1, 1], [], []>} : vector<2x128xbf16>, vector<128x512xbf16>, vector<2x512xf32> -> vector<2x512xf32>
    %51 = arith.addf %46, %50 : vector<2x512xf32>
    %52 = vector.extract_strided_slice %51 {offsets = [0, 0], sizes = [2, 128], strides = [1, 1]} : vector<2x512xf32> to vector<2x128xf32>
    %53 = arith.negf %52 : vector<2x128xf32>
    %54 = math.exp %53 : vector<2x128xf32>
    %cst_29 = arith.constant 1.000000e+00 : f32
    %55 = vector.broadcast %cst_29 : f32 to vector<2x128xf32>
    %56 = arith.addf %55, %54 : vector<2x128xf32>
    %57 = arith.divf %55, %56 : vector<2x128xf32>
    %58 = vector.extract_strided_slice %51 {offsets = [0, 128], sizes = [2, 128], strides = [1, 1]} : vector<2x512xf32> to vector<2x128xf32>
    %59 = arith.negf %58 : vector<2x128xf32>
    %60 = math.exp %59 : vector<2x128xf32>
    %cst_30 = arith.constant 1.000000e+00 : f32
    %61 = vector.broadcast %cst_30 : f32 to vector<2x128xf32>
    %62 = arith.addf %61, %60 : vector<2x128xf32>
    %63 = arith.divf %61, %62 : vector<2x128xf32>
    %64 = vector.extract_strided_slice %51 {offsets = [0, 256], sizes = [2, 128], strides = [1, 1]} : vector<2x512xf32> to vector<2x128xf32>
    %65 = math.tanh %64 : vector<2x128xf32>
    %66 = vector.extract_strided_slice %51 {offsets = [0, 384], sizes = [2, 128], strides = [1, 1]} : vector<2x512xf32> to vector<2x128xf32>
    %67 = arith.negf %66 : vector<2x128xf32>
    %68 = math.exp %67 : vector<2x128xf32>
    %cst_31 = arith.constant 1.000000e+00 : f32
    %69 = vector.broadcast %cst_31 : f32 to vector<2x128xf32>
    %70 = arith.addf %69, %68 : vector<2x128xf32>
    %71 = arith.divf %69, %70 : vector<2x128xf32>
    %c0_32 = arith.constant 0 : index
    %c0_33 = arith.constant 0 : index
    %72 = vector.load %arg4[%c0_32, %c0_33] : memref<2x128xf32, #tpu.memory_space<vmem>>, vector<2x128xf32>
    %73 = arith.mulf %63, %72 : vector<2x128xf32>
    %74 = arith.mulf %57, %65 : vector<2x128xf32>
    %75 = arith.addf %73, %74 : vector<2x128xf32>
    %76 = math.tanh %75 : vector<2x128xf32>
    %77 = arith.mulf %71, %76 : vector<2x128xf32>
    %c0_34 = arith.constant 0 : index
    %c0_35 = arith.constant 0 : index
    %78 = vector.load %arg4[%c0_34, %c0_35] : memref<2x128xf32, #tpu.memory_space<vmem>>, vector<2x128xf32>
    tpu.vector_store %arg4[%c0_34, %c0_35], %75 {strides = array<i32>} : memref<2x128xf32, #tpu.memory_space<vmem>>, vector<2x128xf32>,
    %c0_36 = arith.constant 0 : index
    %c0_37 = arith.constant 0 : index
    %79 = vector.load %arg3[%c0_36, %c0_37] : memref<2x128xf32, #tpu.memory_space<vmem>>, vector<2x128xf32>
    tpu.vector_store %arg3[%c0_36, %c0_37], %77 {strides = array<i32>} : memref<2x128xf32, #tpu.memory_space<vmem>>, vector<2x128xf32>,
    %80 = arith.index_cast %c1_i32 : i32 to index
    %c0_38 = arith.constant 0 : index
    %c0_39 = arith.constant 0 : index
    %81 = vector.load %arg2[%80, %c0_38, %c0_39] : memref<9x2x128xf32, #tpu.memory_space<vmem>>, vector<1x2x128xf32>
    %82 = vector.shape_cast %81 : vector<1x2x128xf32> to vector<2x128xf32>
    %83 = vector.shape_cast %77 : vector<2x128xf32> to vector<1x2x128xf32>
    tpu.vector_store %arg2[%80, %c0_38, %c0_39], %83 {strides = array<i32>} : memref<9x2x128xf32, #tpu.memory_space<vmem>>, vector<1x2x128xf32>,
    %c2_i32 = arith.constant 2 : i32
    %84 = arith.index_cast %c2_i32 : i32 to index
    %c0_40 = arith.constant 0 : index
    %c0_41 = arith.constant 0 : index
    %85 = vector.load %arg0[%84, %c0_40, %c0_41] : memref<9x2x512xf32, #tpu.memory_space<vmem>>, vector<1x2x512xf32>
    %86 = vector.shape_cast %85 : vector<1x2x512xf32> to vector<2x512xf32>
    %c0_42 = arith.constant 0 : index
    %c0_43 = arith.constant 0 : index
    %87 = vector.load %arg3[%c0_42, %c0_43] : memref<2x128xf32, #tpu.memory_space<vmem>>, vector<2x128xf32>
    %88 = arith.truncf %87 : vector<2x128xf32> to vector<2x128xbf16>
    %c0_44 = arith.constant 0 : index
    %c0_45 = arith.constant 0 : index
    %89 = vector.load %arg1[%c0_44, %c0_45] : memref<128x512xbf16, #tpu.memory_space<vmem>>, vector<128x512xbf16>
    %cst_46 = arith.constant dense<0.000000e+00> : vector<2x512xf32>
    %90 = tpu.matmul %88, %89, %cst_46 {dimension_numbers = #tpu.dot_dimension_numbers<[1], [0], [0], [1], [0, 0, 1, 1], [], []>} : vector<2x128xbf16>, vector<128x512xbf16>, vector<2x512xf32> -> vector<2x512xf32>
    %91 = arith.addf %86, %90 : vector<2x512xf32>
    %92 = vector.extract_strided_slice %91 {offsets = [0, 0], sizes = [2, 128], strides = [1, 1]} : vector<2x512xf32> to vector<2x128xf32>
    %93 = arith.negf %92 : vector<2x128xf32>
    %94 = math.exp %93 : vector<2x128xf32>
    %cst_47 = arith.constant 1.000000e+00 : f32
    %95 = vector.broadcast %cst_47 : f32 to vector<2x128xf32>
    %96 = arith.addf %95, %94 : vector<2x128xf32>
    %97 = arith.divf %95, %96 : vector<2x128xf32>
    %98 = vector.extract_strided_slice %91 {offsets = [0, 128], sizes = [2, 128], strides = [1, 1]} : vector<2x512xf32> to vector<2x128xf32>
    %99 = arith.negf %98 : vector<2x128xf32>
    %100 = math.exp %99 : vector<2x128xf32>
    %cst_48 = arith.constant 1.000000e+00 : f32
    %101 = vector.broadcast %cst_48 : f32 to vector<2x128xf32>
    %102 = arith.addf %101, %100 : vector<2x128xf32>
    %103 = arith.divf %101, %102 : vector<2x128xf32>
    %104 = vector.extract_strided_slice %91 {offsets = [0, 256], sizes = [2, 128], strides = [1, 1]} : vector<2x512xf32> to vector<2x128xf32>
    %105 = math.tanh %104 : vector<2x128xf32>
    %106 = vector.extract_strided_slice %91 {offsets = [0, 384], sizes = [2, 128], strides = [1, 1]} : vector<2x512xf32> to vector<2x128xf32>
    %107 = arith.negf %106 : vector<2x128xf32>
    %108 = math.exp %107 : vector<2x128xf32>
    %cst_49 = arith.constant 1.000000e+00 : f32
    %109 = vector.broadcast %cst_49 : f32 to vector<2x128xf32>
    %110 = arith.addf %109, %108 : vector<2x128xf32>
    %111 = arith.divf %109, %110 : vector<2x128xf32>
    %c0_50 = arith.constant 0 : index
    %c0_51 = arith.constant 0 : index
    %112 = vector.load %arg4[%c0_50, %c0_51] : memref<2x128xf32, #tpu.memory_space<vmem>>, vector<2x128xf32>
    %113 = arith.mulf %103, %112 : vector<2x128xf32>
    %114 = arith.mulf %97, %105 : vector<2x128xf32>
    %115 = arith.addf %113, %114 : vector<2x128xf32>
    %116 = math.tanh %115 : vector<2x128xf32>
    %117 = arith.mulf %111, %116 : vector<2x128xf32>
    %c0_52 = arith.constant 0 : index
    %c0_53 = arith.constant 0 : index
    %118 = vector.load %arg4[%c0_52, %c0_53] : memref<2x128xf32, #tpu.memory_space<vmem>>, vector<2x128xf32>
    tpu.vector_store %arg4[%c0_52, %c0_53], %115 {strides = array<i32>} : memref<2x128xf32, #tpu.memory_space<vmem>>, vector<2x128xf32>,
    %c0_54 = arith.constant 0 : index
    %c0_55 = arith.constant 0 : index
    %119 = vector.load %arg3[%c0_54, %c0_55] : memref<2x128xf32, #tpu.memory_space<vmem>>, vector<2x128xf32>
    tpu.vector_store %arg3[%c0_54, %c0_55], %117 {strides = array<i32>} : memref<2x128xf32, #tpu.memory_space<vmem>>, vector<2x128xf32>,
    %120 = arith.index_cast %c2_i32 : i32 to index
    %c0_56 = arith.constant 0 : index
    %c0_57 = arith.constant 0 : index
    %121 = vector.load %arg2[%120, %c0_56, %c0_57] : memref<9x2x128xf32, #tpu.memory_space<vmem>>, vector<1x2x128xf32>
    %122 = vector.shape_cast %121 : vector<1x2x128xf32> to vector<2x128xf32>
    %123 = vector.shape_cast %117 : vector<2x128xf32> to vector<1x2x128xf32>
    tpu.vector_store %arg2[%120, %c0_56, %c0_57], %123 {strides = array<i32>} : memref<9x2x128xf32, #tpu.memory_space<vmem>>, vector<1x2x128xf32>,
    %c3_i32 = arith.constant 3 : i32
    %124 = arith.index_cast %c3_i32 : i32 to index
    %c0_58 = arith.constant 0 : index
    %c0_59 = arith.constant 0 : index
    %125 = vector.load %arg0[%124, %c0_58, %c0_59] : memref<9x2x512xf32, #tpu.memory_space<vmem>>, vector<1x2x512xf32>
    %126 = vector.shape_cast %125 : vector<1x2x512xf32> to vector<2x512xf32>
    %c0_60 = arith.constant 0 : index
    %c0_61 = arith.constant 0 : index
    %127 = vector.load %arg3[%c0_60, %c0_61] : memref<2x128xf32, #tpu.memory_space<vmem>>, vector<2x128xf32>
    %128 = arith.truncf %127 : vector<2x128xf32> to vector<2x128xbf16>
    %c0_62 = arith.constant 0 : index
    %c0_63 = arith.constant 0 : index
    %129 = vector.load %arg1[%c0_62, %c0_63] : memref<128x512xbf16, #tpu.memory_space<vmem>>, vector<128x512xbf16>
    %cst_64 = arith.constant dense<0.000000e+00> : vector<2x512xf32>
    %130 = tpu.matmul %128, %129, %cst_64 {dimension_numbers = #tpu.dot_dimension_numbers<[1], [0], [0], [1], [0, 0, 1, 1], [], []>} : vector<2x128xbf16>, vector<128x512xbf16>, vector<2x512xf32> -> vector<2x512xf32>
    %131 = arith.addf %126, %130 : vector<2x512xf32>
    %132 = vector.extract_strided_slice %131 {offsets = [0, 0], sizes = [2, 128], strides = [1, 1]} : vector<2x512xf32> to vector<2x128xf32>
    %133 = arith.negf %132 : vector<2x128xf32>
    %134 = math.exp %133 : vector<2x128xf32>
    %cst_65 = arith.constant 1.000000e+00 : f32
    %135 = vector.broadcast %cst_65 : f32 to vector<2x128xf32>
    %136 = arith.addf %135, %134 : vector<2x128xf32>
    %137 = arith.divf %135, %136 : vector<2x128xf32>
    %138 = vector.extract_strided_slice %131 {offsets = [0, 128], sizes = [2, 128], strides = [1, 1]} : vector<2x512xf32> to vector<2x128xf32>
    %139 = arith.negf %138 : vector<2x128xf32>
    %140 = math.exp %139 : vector<2x128xf32>
    %cst_66 = arith.constant 1.000000e+00 : f32
    %141 = vector.broadcast %cst_66 : f32 to vector<2x128xf32>
    %142 = arith.addf %141, %140 : vector<2x128xf32>
    %143 = arith.divf %141, %142 : vector<2x128xf32>
    %144 = vector.extract_strided_slice %131 {offsets = [0, 256], sizes = [2, 128], strides = [1, 1]} : vector<2x512xf32> to vector<2x128xf32>
    %145 = math.tanh %144 : vector<2x128xf32>
    %146 = vector.extract_strided_slice %131 {offsets = [0, 384], sizes = [2, 128], strides = [1, 1]} : vector<2x512xf32> to vector<2x128xf32>
    %147 = arith.negf %146 : vector<2x128xf32>
    %148 = math.exp %147 : vector<2x128xf32>
    %cst_67 = arith.constant 1.000000e+00 : f32
    %149 = vector.broadcast %cst_67 : f32 to vector<2x128xf32>
    %150 = arith.addf %149, %148 : vector<2x128xf32>
    %151 = arith.divf %149, %150 : vector<2x128xf32>
    %c0_68 = arith.constant 0 : index
    %c0_69 = arith.constant 0 : index
    %152 = vector.load %arg4[%c0_68, %c0_69] : memref<2x128xf32, #tpu.memory_space<vmem>>, vector<2x128xf32>
    %153 = arith.mulf %143, %152 : vector<2x128xf32>
    %154 = arith.mulf %137, %145 : vector<2x128xf32>
    %155 = arith.addf %153, %154 : vector<2x128xf32>
    %156 = math.tanh %155 : vector<2x128xf32>
    %157 = arith.mulf %151, %156 : vector<2x128xf32>
    %c0_70 = arith.constant 0 : index
    %c0_71 = arith.constant 0 : index
    %158 = vector.load %arg4[%c0_70, %c0_71] : memref<2x128xf32, #tpu.memory_space<vmem>>, vector<2x128xf32>
    tpu.vector_store %arg4[%c0_70, %c0_71], %155 {strides = array<i32>} : memref<2x128xf32, #tpu.memory_space<vmem>>, vector<2x128xf32>,
    %c0_72 = arith.constant 0 : index
    %c0_73 = arith.constant 0 : index
    %159 = vector.load %arg3[%c0_72, %c0_73] : memref<2x128xf32, #tpu.memory_space<vmem>>, vector<2x128xf32>
    tpu.vector_store %arg3[%c0_72, %c0_73], %157 {strides = array<i32>} : memref<2x128xf32, #tpu.memory_space<vmem>>, vector<2x128xf32>,
    %160 = arith.index_cast %c3_i32 : i32 to index
    %c0_74 = arith.constant 0 : index
    %c0_75 = arith.constant 0 : index
    %161 = vector.load %arg2[%160, %c0_74, %c0_75] : memref<9x2x128xf32, #tpu.memory_space<vmem>>, vector<1x2x128xf32>
    %162 = vector.shape_cast %161 : vector<1x2x128xf32> to vector<2x128xf32>
    %163 = vector.shape_cast %157 : vector<2x128xf32> to vector<1x2x128xf32>
    tpu.vector_store %arg2[%160, %c0_74, %c0_75], %163 {strides = array<i32>} : memref<9x2x128xf32, #tpu.memory_space<vmem>>, vector<1x2x128xf32>,
    %c4_i32 = arith.constant 4 : i32
    %164 = arith.index_cast %c4_i32 : i32 to index
    %c0_76 = arith.constant 0 : index
    %c0_77 = arith.constant 0 : index
    %165 = vector.load %arg0[%164, %c0_76, %c0_77] : memref<9x2x512xf32, #tpu.memory_space<vmem>>, vector<1x2x512xf32>
    %166 = vector.shape_cast %165 : vector<1x2x512xf32> to vector<2x512xf32>
    %c0_78 = arith.constant 0 : index
    %c0_79 = arith.constant 0 : index
    %167 = vector.load %arg3[%c0_78, %c0_79] : memref<2x128xf32, #tpu.memory_space<vmem>>, vector<2x128xf32>
    %168 = arith.truncf %167 : vector<2x128xf32> to vector<2x128xbf16>
    %c0_80 = arith.constant 0 : index
    %c0_81 = arith.constant 0 : index
    %169 = vector.load %arg1[%c0_80, %c0_81] : memref<128x512xbf16, #tpu.memory_space<vmem>>, vector<128x512xbf16>
    %cst_82 = arith.constant dense<0.000000e+00> : vector<2x512xf32>
    %170 = tpu.matmul %168, %169, %cst_82 {dimension_numbers = #tpu.dot_dimension_numbers<[1], [0], [0], [1], [0, 0, 1, 1], [], []>} : vector<2x128xbf16>, vector<128x512xbf16>, vector<2x512xf32> -> vector<2x512xf32>
    %171 = arith.addf %166, %170 : vector<2x512xf32>
    %172 = vector.extract_strided_slice %171 {offsets = [0, 0], sizes = [2, 128], strides = [1, 1]} : vector<2x512xf32> to vector<2x128xf32>
    %173 = arith.negf %172 : vector<2x128xf32>
    %174 = math.exp %173 : vector<2x128xf32>
    %cst_83 = arith.constant 1.000000e+00 : f32
    %175 = vector.broadcast %cst_83 : f32 to vector<2x128xf32>
    %176 = arith.addf %175, %174 : vector<2x128xf32>
    %177 = arith.divf %175, %176 : vector<2x128xf32>
    %178 = vector.extract_strided_slice %171 {offsets = [0, 128], sizes = [2, 128], strides = [1, 1]} : vector<2x512xf32> to vector<2x128xf32>
    %179 = arith.negf %178 : vector<2x128xf32>
    %180 = math.exp %179 : vector<2x128xf32>
    %cst_84 = arith.constant 1.000000e+00 : f32
    %181 = vector.broadcast %cst_84 : f32 to vector<2x128xf32>
    %182 = arith.addf %181, %180 : vector<2x128xf32>
    %183 = arith.divf %181, %182 : vector<2x128xf32>
    %184 = vector.extract_strided_slice %171 {offsets = [0, 256], sizes = [2, 128], strides = [1, 1]} : vector<2x512xf32> to vector<2x128xf32>
    %185 = math.tanh %184 : vector<2x128xf32>
    %186 = vector.extract_strided_slice %171 {offsets = [0, 384], sizes = [2, 128], strides = [1, 1]} : vector<2x512xf32> to vector<2x128xf32>
    %187 = arith.negf %186 : vector<2x128xf32>
    %188 = math.exp %187 : vector<2x128xf32>
    %cst_85 = arith.constant 1.000000e+00 : f32
    %189 = vector.broadcast %cst_85 : f32 to vector<2x128xf32>
    %190 = arith.addf %189, %188 : vector<2x128xf32>
    %191 = arith.divf %189, %190 : vector<2x128xf32>
    %c0_86 = arith.constant 0 : index
    %c0_87 = arith.constant 0 : index
    %192 = vector.load %arg4[%c0_86, %c0_87] : memref<2x128xf32, #tpu.memory_space<vmem>>, vector<2x128xf32>
    %193 = arith.mulf %183, %192 : vector<2x128xf32>
    %194 = arith.mulf %177, %185 : vector<2x128xf32>
    %195 = arith.addf %193, %194 : vector<2x128xf32>
    %196 = math.tanh %195 : vector<2x128xf32>
    %197 = arith.mulf %191, %196 : vector<2x128xf32>
    %c0_88 = arith.constant 0 : index
    %c0_89 = arith.constant 0 : index
    %198 = vector.load %arg4[%c0_88, %c0_89] : memref<2x128xf32, #tpu.memory_space<vmem>>, vector<2x128xf32>
    tpu.vector_store %arg4[%c0_88, %c0_89], %195 {strides = array<i32>} : memref<2x128xf32, #tpu.memory_space<vmem>>, vector<2x128xf32>,
    %c0_90 = arith.constant 0 : index
    %c0_91 = arith.constant 0 : index
    %199 = vector.load %arg3[%c0_90, %c0_91] : memref<2x128xf32, #tpu.memory_space<vmem>>, vector<2x128xf32>
    tpu.vector_store %arg3[%c0_90, %c0_91], %197 {strides = array<i32>} : memref<2x128xf32, #tpu.memory_space<vmem>>, vector<2x128xf32>,
    %200 = arith.index_cast %c4_i32 : i32 to index
    %c0_92 = arith.constant 0 : index
    %c0_93 = arith.constant 0 : index
    %201 = vector.load %arg2[%200, %c0_92, %c0_93] : memref<9x2x128xf32, #tpu.memory_space<vmem>>, vector<1x2x128xf32>
    %202 = vector.shape_cast %201 : vector<1x2x128xf32> to vector<2x128xf32>
    %203 = vector.shape_cast %197 : vector<2x128xf32> to vector<1x2x128xf32>
    tpu.vector_store %arg2[%200, %c0_92, %c0_93], %203 {strides = array<i32>} : memref<9x2x128xf32, #tpu.memory_space<vmem>>, vector<1x2x128xf32>,
    %c5_i32 = arith.constant 5 : i32
    %204 = arith.index_cast %c5_i32 : i32 to index
    %c0_94 = arith.constant 0 : index
    %c0_95 = arith.constant 0 : index
    %205 = vector.load %arg0[%204, %c0_94, %c0_95] : memref<9x2x512xf32, #tpu.memory_space<vmem>>, vector<1x2x512xf32>
    %206 = vector.shape_cast %205 : vector<1x2x512xf32> to vector<2x512xf32>
    %c0_96 = arith.constant 0 : index
    %c0_97 = arith.constant 0 : index
    %207 = vector.load %arg3[%c0_96, %c0_97] : memref<2x128xf32, #tpu.memory_space<vmem>>, vector<2x128xf32>
    %208 = arith.truncf %207 : vector<2x128xf32> to vector<2x128xbf16>
    %c0_98 = arith.constant 0 : index
    %c0_99 = arith.constant 0 : index
    %209 = vector.load %arg1[%c0_98, %c0_99] : memref<128x512xbf16, #tpu.memory_space<vmem>>, vector<128x512xbf16>
    %cst_100 = arith.constant dense<0.000000e+00> : vector<2x512xf32>
    %210 = tpu.matmul %208, %209, %cst_100 {dimension_numbers = #tpu.dot_dimension_numbers<[1], [0], [0], [1], [0, 0, 1, 1], [], []>} : vector<2x128xbf16>, vector<128x512xbf16>, vector<2x512xf32> -> vector<2x512xf32>
    %211 = arith.addf %206, %210 : vector<2x512xf32>
    %212 = vector.extract_strided_slice %211 {offsets = [0, 0], sizes = [2, 128], strides = [1, 1]} : vector<2x512xf32> to vector<2x128xf32>
    %213 = arith.negf %212 : vector<2x128xf32>
    %214 = math.exp %213 : vector<2x128xf32>
    %cst_101 = arith.constant 1.000000e+00 : f32
    %215 = vector.broadcast %cst_101 : f32 to vector<2x128xf32>
    %216 = arith.addf %215, %214 : vector<2x128xf32>
    %217 = arith.divf %215, %216 : vector<2x128xf32>
    %218 = vector.extract_strided_slice %211 {offsets = [0, 128], sizes = [2, 128], strides = [1, 1]} : vector<2x512xf32> to vector<2x128xf32>
    %219 = arith.negf %218 : vector<2x128xf32>
    %220 = math.exp %219 : vector<2x128xf32>
    %cst_102 = arith.constant 1.000000e+00 : f32
    %221 = vector.broadcast %cst_102 : f32 to vector<2x128xf32>
    %222 = arith.addf %221, %220 : vector<2x128xf32>
    %223 = arith.divf %221, %222 : vector<2x128xf32>
    %224 = vector.extract_strided_slice %211 {offsets = [0, 256], sizes = [2, 128], strides = [1, 1]} : vector<2x512xf32> to vector<2x128xf32>
    %225 = math.tanh %224 : vector<2x128xf32>
    %226 = vector.extract_strided_slice %211 {offsets = [0, 384], sizes = [2, 128], strides = [1, 1]} : vector<2x512xf32> to vector<2x128xf32>
    %227 = arith.negf %226 : vector<2x128xf32>
    %228 = math.exp %227 : vector<2x128xf32>
    %cst_103 = arith.constant 1.000000e+00 : f32
    %229 = vector.broadcast %cst_103 : f32 to vector<2x128xf32>
    %230 = arith.addf %229, %228 : vector<2x128xf32>
    %231 = arith.divf %229, %230 : vector<2x128xf32>
    %c0_104 = arith.constant 0 : index
    %c0_105 = arith.constant 0 : index
    %232 = vector.load %arg4[%c0_104, %c0_105] : memref<2x128xf32, #tpu.memory_space<vmem>>, vector<2x128xf32>
    %233 = arith.mulf %223, %232 : vector<2x128xf32>
    %234 = arith.mulf %217, %225 : vector<2x128xf32>
    %235 = arith.addf %233, %234 : vector<2x128xf32>
    %236 = math.tanh %235 : vector<2x128xf32>
    %237 = arith.mulf %231, %236 : vector<2x128xf32>
    %c0_106 = arith.constant 0 : index
    %c0_107 = arith.constant 0 : index
    %238 = vector.load %arg4[%c0_106, %c0_107] : memref<2x128xf32, #tpu.memory_space<vmem>>, vector<2x128xf32>
    tpu.vector_store %arg4[%c0_106, %c0_107], %235 {strides = array<i32>} : memref<2x128xf32, #tpu.memory_space<vmem>>, vector<2x128xf32>,
    %c0_108 = arith.constant 0 : index
    %c0_109 = arith.constant 0 : index
    %239 = vector.load %arg3[%c0_108, %c0_109] : memref<2x128xf32, #tpu.memory_space<vmem>>, vector<2x128xf32>
    tpu.vector_store %arg3[%c0_108, %c0_109], %237 {strides = array<i32>} : memref<2x128xf32, #tpu.memory_space<vmem>>, vector<2x128xf32>,
    %240 = arith.index_cast %c5_i32 : i32 to index
    %c0_110 = arith.constant 0 : index
    %c0_111 = arith.constant 0 : index
    %241 = vector.load %arg2[%240, %c0_110, %c0_111] : memref<9x2x128xf32, #tpu.memory_space<vmem>>, vector<1x2x128xf32>
    %242 = vector.shape_cast %241 : vector<1x2x128xf32> to vector<2x128xf32>
    %243 = vector.shape_cast %237 : vector<2x128xf32> to vector<1x2x128xf32>
    tpu.vector_store %arg2[%240, %c0_110, %c0_111], %243 {strides = array<i32>} : memref<9x2x128xf32, #tpu.memory_space<vmem>>, vector<1x2x128xf32>,
    %c6_i32 = arith.constant 6 : i32
    %244 = arith.index_cast %c6_i32 : i32 to index
    %c0_112 = arith.constant 0 : index
    %c0_113 = arith.constant 0 : index
    %245 = vector.load %arg0[%244, %c0_112, %c0_113] : memref<9x2x512xf32, #tpu.memory_space<vmem>>, vector<1x2x512xf32>
    %246 = vector.shape_cast %245 : vector<1x2x512xf32> to vector<2x512xf32>
    %c0_114 = arith.constant 0 : index
    %c0_115 = arith.constant 0 : index
    %247 = vector.load %arg3[%c0_114, %c0_115] : memref<2x128xf32, #tpu.memory_space<vmem>>, vector<2x128xf32>
    %248 = arith.truncf %247 : vector<2x128xf32> to vector<2x128xbf16>
    %c0_116 = arith.constant 0 : index
    %c0_117 = arith.constant 0 : index
    %249 = vector.load %arg1[%c0_116, %c0_117] : memref<128x512xbf16, #tpu.memory_space<vmem>>, vector<128x512xbf16>
    %cst_118 = arith.constant dense<0.000000e+00> : vector<2x512xf32>
    %250 = tpu.matmul %248, %249, %cst_118 {dimension_numbers = #tpu.dot_dimension_numbers<[1], [0], [0], [1], [0, 0, 1, 1], [], []>} : vector<2x128xbf16>, vector<128x512xbf16>, vector<2x512xf32> -> vector<2x512xf32>
    %251 = arith.addf %246, %250 : vector<2x512xf32>
    %252 = vector.extract_strided_slice %251 {offsets = [0, 0], sizes = [2, 128], strides = [1, 1]} : vector<2x512xf32> to vector<2x128xf32>
    %253 = arith.negf %252 : vector<2x128xf32>
    %254 = math.exp %253 : vector<2x128xf32>
    %cst_119 = arith.constant 1.000000e+00 : f32
    %255 = vector.broadcast %cst_119 : f32 to vector<2x128xf32>
    %256 = arith.addf %255, %254 : vector<2x128xf32>
    %257 = arith.divf %255, %256 : vector<2x128xf32>
    %258 = vector.extract_strided_slice %251 {offsets = [0, 128], sizes = [2, 128], strides = [1, 1]} : vector<2x512xf32> to vector<2x128xf32>
    %259 = arith.negf %258 : vector<2x128xf32>
    %260 = math.exp %259 : vector<2x128xf32>
    %cst_120 = arith.constant 1.000000e+00 : f32
    %261 = vector.broadcast %cst_120 : f32 to vector<2x128xf32>
    %262 = arith.addf %261, %260 : vector<2x128xf32>
    %263 = arith.divf %261, %262 : vector<2x128xf32>
    %264 = vector.extract_strided_slice %251 {offsets = [0, 256], sizes = [2, 128], strides = [1, 1]} : vector<2x512xf32> to vector<2x128xf32>
    %265 = math.tanh %264 : vector<2x128xf32>
    %266 = vector.extract_strided_slice %251 {offsets = [0, 384], sizes = [2, 128], strides = [1, 1]} : vector<2x512xf32> to vector<2x128xf32>
    %267 = arith.negf %266 : vector<2x128xf32>
    %268 = math.exp %267 : vector<2x128xf32>
    %cst_121 = arith.constant 1.000000e+00 : f32
    %269 = vector.broadcast %cst_121 : f32 to vector<2x128xf32>
    %270 = arith.addf %269, %268 : vector<2x128xf32>
    %271 = arith.divf %269, %270 : vector<2x128xf32>
    %c0_122 = arith.constant 0 : index
    %c0_123 = arith.constant 0 : index
    %272 = vector.load %arg4[%c0_122, %c0_123] : memref<2x128xf32, #tpu.memory_space<vmem>>, vector<2x128xf32>
    %273 = arith.mulf %263, %272 : vector<2x128xf32>
    %274 = arith.mulf %257, %265 : vector<2x128xf32>
    %275 = arith.addf %273, %274 : vector<2x128xf32>
    %276 = math.tanh %275 : vector<2x128xf32>
    %277 = arith.mulf %271, %276 : vector<2x128xf32>
    %c0_124 = arith.constant 0 : index
    %c0_125 = arith.constant 0 : index
    %278 = vector.load %arg4[%c0_124, %c0_125] : memref<2x128xf32, #tpu.memory_space<vmem>>, vector<2x128xf32>
    tpu.vector_store %arg4[%c0_124, %c0_125], %275 {strides = array<i32>} : memref<2x128xf32, #tpu.memory_space<vmem>>, vector<2x128xf32>,
    %c0_126 = arith.constant 0 : index
    %c0_127 = arith.constant 0 : index
    %279 = vector.load %arg3[%c0_126, %c0_127] : memref<2x128xf32, #tpu.memory_space<vmem>>, vector<2x128xf32>
    tpu.vector_store %arg3[%c0_126, %c0_127], %277 {strides = array<i32>} : memref<2x128xf32, #tpu.memory_space<vmem>>, vector<2x128xf32>,
    %280 = arith.index_cast %c6_i32 : i32 to index
    %c0_128 = arith.constant 0 : index
    %c0_129 = arith.constant 0 : index
    %281 = vector.load %arg2[%280, %c0_128, %c0_129] : memref<9x2x128xf32, #tpu.memory_space<vmem>>, vector<1x2x128xf32>
    %282 = vector.shape_cast %281 : vector<1x2x128xf32> to vector<2x128xf32>
    %283 = vector.shape_cast %277 : vector<2x128xf32> to vector<1x2x128xf32>
    tpu.vector_store %arg2[%280, %c0_128, %c0_129], %283 {strides = array<i32>} : memref<9x2x128xf32, #tpu.memory_space<vmem>>, vector<1x2x128xf32>,
    %c7_i32 = arith.constant 7 : i32
    %284 = arith.index_cast %c7_i32 : i32 to index
    %c0_130 = arith.constant 0 : index
    %c0_131 = arith.constant 0 : index
    %285 = vector.load %arg0[%284, %c0_130, %c0_131] : memref<9x2x512xf32, #tpu.memory_space<vmem>>, vector<1x2x512xf32>
    %286 = vector.shape_cast %285 : vector<1x2x512xf32> to vector<2x512xf32>
    %c0_132 = arith.constant 0 : index
    %c0_133 = arith.constant 0 : index
    %287 = vector.load %arg3[%c0_132, %c0_133] : memref<2x128xf32, #tpu.memory_space<vmem>>, vector<2x128xf32>
    %288 = arith.truncf %287 : vector<2x128xf32> to vector<2x128xbf16>
    %c0_134 = arith.constant 0 : index
    %c0_135 = arith.constant 0 : index
    %289 = vector.load %arg1[%c0_134, %c0_135] : memref<128x512xbf16, #tpu.memory_space<vmem>>, vector<128x512xbf16>
    %cst_136 = arith.constant dense<0.000000e+00> : vector<2x512xf32>
    %290 = tpu.matmul %288, %289, %cst_136 {dimension_numbers = #tpu.dot_dimension_numbers<[1], [0], [0], [1], [0, 0, 1, 1], [], []>} : vector<2x128xbf16>, vector<128x512xbf16>, vector<2x512xf32> -> vector<2x512xf32>
    %291 = arith.addf %286, %290 : vector<2x512xf32>
    %292 = vector.extract_strided_slice %291 {offsets = [0, 0], sizes = [2, 128], strides = [1, 1]} : vector<2x512xf32> to vector<2x128xf32>
    %293 = arith.negf %292 : vector<2x128xf32>
    %294 = math.exp %293 : vector<2x128xf32>
    %cst_137 = arith.constant 1.000000e+00 : f32
    %295 = vector.broadcast %cst_137 : f32 to vector<2x128xf32>
    %296 = arith.addf %295, %294 : vector<2x128xf32>
    %297 = arith.divf %295, %296 : vector<2x128xf32>
    %298 = vector.extract_strided_slice %291 {offsets = [0, 128], sizes = [2, 128], strides = [1, 1]} : vector<2x512xf32> to vector<2x128xf32>
    %299 = arith.negf %298 : vector<2x128xf32>
    %300 = math.exp %299 : vector<2x128xf32>
    %cst_138 = arith.constant 1.000000e+00 : f32
    %301 = vector.broadcast %cst_138 : f32 to vector<2x128xf32>
    %302 = arith.addf %301, %300 : vector<2x128xf32>
    %303 = arith.divf %301, %302 : vector<2x128xf32>
    %304 = vector.extract_strided_slice %291 {offsets = [0, 256], sizes = [2, 128], strides = [1, 1]} : vector<2x512xf32> to vector<2x128xf32>
    %305 = math.tanh %304 : vector<2x128xf32>
    %306 = vector.extract_strided_slice %291 {offsets = [0, 384], sizes = [2, 128], strides = [1, 1]} : vector<2x512xf32> to vector<2x128xf32>
    %307 = arith.negf %306 : vector<2x128xf32>
    %308 = math.exp %307 : vector<2x128xf32>
    %cst_139 = arith.constant 1.000000e+00 : f32
    %309 = vector.broadcast %cst_139 : f32 to vector<2x128xf32>
    %310 = arith.addf %309, %308 : vector<2x128xf32>
    %311 = arith.divf %309, %310 : vector<2x128xf32>
    %c0_140 = arith.constant 0 : index
    %c0_141 = arith.constant 0 : index
    %312 = vector.load %arg4[%c0_140, %c0_141] : memref<2x128xf32, #tpu.memory_space<vmem>>, vector<2x128xf32>
    %313 = arith.mulf %303, %312 : vector<2x128xf32>
    %314 = arith.mulf %297, %305 : vector<2x128xf32>
    %315 = arith.addf %313, %314 : vector<2x128xf32>
    %316 = math.tanh %315 : vector<2x128xf32>
    %317 = arith.mulf %311, %316 : vector<2x128xf32>
    %c0_142 = arith.constant 0 : index
    %c0_143 = arith.constant 0 : index
    %318 = vector.load %arg4[%c0_142, %c0_143] : memref<2x128xf32, #tpu.memory_space<vmem>>, vector<2x128xf32>
    tpu.vector_store %arg4[%c0_142, %c0_143], %315 {strides = array<i32>} : memref<2x128xf32, #tpu.memory_space<vmem>>, vector<2x128xf32>,
    %c0_144 = arith.constant 0 : index
    %c0_145 = arith.constant 0 : index
    %319 = vector.load %arg3[%c0_144, %c0_145] : memref<2x128xf32, #tpu.memory_space<vmem>>, vector<2x128xf32>
    tpu.vector_store %arg3[%c0_144, %c0_145], %317 {strides = array<i32>} : memref<2x128xf32, #tpu.memory_space<vmem>>, vector<2x128xf32>,
    %320 = arith.index_cast %c7_i32 : i32 to index
    %c0_146 = arith.constant 0 : index
    %c0_147 = arith.constant 0 : index
    %321 = vector.load %arg2[%320, %c0_146, %c0_147] : memref<9x2x128xf32, #tpu.memory_space<vmem>>, vector<1x2x128xf32>
    %322 = vector.shape_cast %321 : vector<1x2x128xf32> to vector<2x128xf32>
    %323 = vector.shape_cast %317 : vector<2x128xf32> to vector<1x2x128xf32>
    tpu.vector_store %arg2[%320, %c0_146, %c0_147], %323 {strides = array<i32>} : memref<9x2x128xf32, #tpu.memory_space<vmem>>, vector<1x2x128xf32>,
    %c8_i32 = arith.constant 8 : i32
    %324 = arith.index_cast %c8_i32 : i32 to index
    %c0_148 = arith.constant 0 : index
    %c0_149 = arith.constant 0 : index
    %325 = vector.load %arg0[%324, %c0_148, %c0_149] : memref<9x2x512xf32, #tpu.memory_space<vmem>>, vector<1x2x512xf32>
    %326 = vector.shape_cast %325 : vector<1x2x512xf32> to vector<2x512xf32>
    %c0_150 = arith.constant 0 : index
    %c0_151 = arith.constant 0 : index
    %327 = vector.load %arg3[%c0_150, %c0_151] : memref<2x128xf32, #tpu.memory_space<vmem>>, vector<2x128xf32>
    %328 = arith.truncf %327 : vector<2x128xf32> to vector<2x128xbf16>
    %c0_152 = arith.constant 0 : index
    %c0_153 = arith.constant 0 : index
    %329 = vector.load %arg1[%c0_152, %c0_153] : memref<128x512xbf16, #tpu.memory_space<vmem>>, vector<128x512xbf16>
    %cst_154 = arith.constant dense<0.000000e+00> : vector<2x512xf32>
    %330 = tpu.matmul %328, %329, %cst_154 {dimension_numbers = #tpu.dot_dimension_numbers<[1], [0], [0], [1], [0, 0, 1, 1], [], []>} : vector<2x128xbf16>, vector<128x512xbf16>, vector<2x512xf32> -> vector<2x512xf32>
    %331 = arith.addf %326, %330 : vector<2x512xf32>
    %332 = vector.extract_strided_slice %331 {offsets = [0, 0], sizes = [2, 128], strides = [1, 1]} : vector<2x512xf32> to vector<2x128xf32>
    %333 = arith.negf %332 : vector<2x128xf32>
    %334 = math.exp %333 : vector<2x128xf32>
    %cst_155 = arith.constant 1.000000e+00 : f32
    %335 = vector.broadcast %cst_155 : f32 to vector<2x128xf32>
    %336 = arith.addf %335, %334 : vector<2x128xf32>
    %337 = arith.divf %335, %336 : vector<2x128xf32>
    %338 = vector.extract_strided_slice %331 {offsets = [0, 128], sizes = [2, 128], strides = [1, 1]} : vector<2x512xf32> to vector<2x128xf32>
    %339 = arith.negf %338 : vector<2x128xf32>
    %340 = math.exp %339 : vector<2x128xf32>
    %cst_156 = arith.constant 1.000000e+00 : f32
    %341 = vector.broadcast %cst_156 : f32 to vector<2x128xf32>
    %342 = arith.addf %341, %340 : vector<2x128xf32>
    %343 = arith.divf %341, %342 : vector<2x128xf32>
    %344 = vector.extract_strided_slice %331 {offsets = [0, 256], sizes = [2, 128], strides = [1, 1]} : vector<2x512xf32> to vector<2x128xf32>
    %345 = math.tanh %344 : vector<2x128xf32>
    %346 = vector.extract_strided_slice %331 {offsets = [0, 384], sizes = [2, 128], strides = [1, 1]} : vector<2x512xf32> to vector<2x128xf32>
    %347 = arith.negf %346 : vector<2x128xf32>
    %348 = math.exp %347 : vector<2x128xf32>
    %cst_157 = arith.constant 1.000000e+00 : f32
    %349 = vector.broadcast %cst_157 : f32 to vector<2x128xf32>
    %350 = arith.addf %349, %348 : vector<2x128xf32>
    %351 = arith.divf %349, %350 : vector<2x128xf32>
    %c0_158 = arith.constant 0 : index
    %c0_159 = arith.constant 0 : index
    %352 = vector.load %arg4[%c0_158, %c0_159] : memref<2x128xf32, #tpu.memory_space<vmem>>, vector<2x128xf32>
    %353 = arith.mulf %343, %352 : vector<2x128xf32>
    %354 = arith.mulf %337, %345 : vector<2x128xf32>
    %355 = arith.addf %353, %354 : vector<2x128xf32>
    %356 = math.tanh %355 : vector<2x128xf32>
    %357 = arith.mulf %351, %356 : vector<2x128xf32>
    %c0_160 = arith.constant 0 : index
    %c0_161 = arith.constant 0 : index
    %358 = vector.load %arg4[%c0_160, %c0_161] : memref<2x128xf32, #tpu.memory_space<vmem>>, vector<2x128xf32>
    tpu.vector_store %arg4[%c0_160, %c0_161], %355 {strides = array<i32>} : memref<2x128xf32, #tpu.memory_space<vmem>>, vector<2x128xf32>,
    %c0_162 = arith.constant 0 : index
    %c0_163 = arith.constant 0 : index
    %359 = vector.load %arg3[%c0_162, %c0_163] : memref<2x128xf32, #tpu.memory_space<vmem>>, vector<2x128xf32>
    tpu.vector_store %arg3[%c0_162, %c0_163], %357 {strides = array<i32>} : memref<2x128xf32, #tpu.memory_space<vmem>>, vector<2x128xf32>,
    %360 = arith.index_cast %c8_i32 : i32 to index
    %c0_164 = arith.constant 0 : index
    %c0_165 = arith.constant 0 : index
    %361 = vector.load %arg2[%360, %c0_164, %c0_165] : memref<9x2x128xf32, #tpu.memory_space<vmem>>, vector<1x2x128xf32>
    %362 = vector.shape_cast %361 : vector<1x2x128xf32> to vector<2x128xf32>
    %363 = vector.shape_cast %357 : vector<2x128xf32> to vector<1x2x128xf32>
    tpu.vector_store %arg2[%360, %c0_164, %c0_165], %363 {strides = array<i32>} : memref<9x2x128xf32, #tpu.memory_space<vmem>>, vector<1x2x128xf32>,
    %c9_i32 = arith.constant 9 : i32
    return
  }
}

module attributes {stable_mosaic.version = 11 : i64} {
  func.func @_matmul_bias_kernel(%arg0: memref<18x128xbf16, #tpu.memory_space<vmem>>, %arg1: memref<128x256xbf16, #tpu.memory_space<vmem>>, %arg2: memref<1x256xf32, #tpu.memory_space<vmem>>, %arg3: memref<18x256xf32, #tpu.memory_space<vmem>>) attributes {dimension_semantics = [], scalar_prefetch = 0 : i64, scratch_operands = 0 : i64, tpu.core_type = #tpu.core_type<tc>} {
    %c0 = arith.constant 0 : index
    %c0_0 = arith.constant 0 : index
    %0 = vector.load %arg0[%c0, %c0_0] : memref<18x128xbf16, #tpu.memory_space<vmem>>, vector<18x128xbf16>
    %c0_1 = arith.constant 0 : index
    %c0_2 = arith.constant 0 : index
    %1 = vector.load %arg1[%c0_1, %c0_2] : memref<128x256xbf16, #tpu.memory_space<vmem>>, vector<128x256xbf16>
    %cst = arith.constant dense<0.000000e+00> : vector<18x256xf32>
    %2 = tpu.matmul %0, %1, %cst {dimension_numbers = #tpu.dot_dimension_numbers<[1], [0], [0], [1], [0, 0, 1, 1], [], []>} : vector<18x128xbf16>, vector<128x256xbf16>, vector<18x256xf32> -> vector<18x256xf32>
    %c0_3 = arith.constant 0 : index
    %c0_4 = arith.constant 0 : index
    %3 = vector.load %arg2[%c0_3, %c0_4] : memref<1x256xf32, #tpu.memory_space<vmem>>, vector<1x256xf32>
    %4 = vector.broadcast %3 : vector<1x256xf32> to vector<18x256xf32>
    %5 = arith.addf %2, %4 : vector<18x256xf32>
    %c0_5 = arith.constant 0 : index
    %c0_6 = arith.constant 0 : index
    %6 = vector.load %arg3[%c0_5, %c0_6] : memref<18x256xf32, #tpu.memory_space<vmem>>, vector<18x256xf32>
    tpu.vector_store %arg3[%c0_5, %c0_6], %5 {strides = array<i32>} : memref<18x256xf32, #tpu.memory_space<vmem>>, vector<18x256xf32>,
    return
  }
}

</mosaic_0001>

<bundles_post_ra>
// kernel: model_forward.4
= control target key start
LH: loop header
LB: loop body
LE: loop exit
PB: predicated region body
PF: predicated region fallthrough
CT: control target
= control target key end

     0   :  { %s1090_s18 = smov 0   ;;  %s1092_s19 = smov 0   ;;  %s1294_s0 = inlined_call_operand.vmem [shape: bf16[2048,32], index: 0, kind: input, shape index: {}]   ;;  %s1295_s1 = inlined_call_operand.vmem [shape: bf16[32,32], index: 1, kind: input, shape index: {}]   ;;  %s1296_s2 = inlined_call_operand.vmem [shape: f32[1,32], index: 2, kind: input, shape index: {}]   ;;  %s1297_s3 = inlined_call_operand.vmem [shape: bf16[32,128], index: 3, kind: input, shape index: {}]   ;;  %s1298_s4 = inlined_call_operand.vmem [shape: f32[1,128], index: 4, kind: input, shape index: {}]   ;;  %s1299_s5 = inlined_call_operand.vmem [shape: f32[2,1,128], index: 5, kind: output, shape index: {}]  }
   0x1   :  { %s1094_s20 = smov 0   ;;  %s1096_s21 = smov 0  }
   0x2   :  { %s1098_s22 = smov 0  }
   0x3 LB: > { %s24_s23 = sadd.s32 1, %s1047_s20  ;;  %s27_s24 = sadd.s32 1, %s1051_s21  ;;  %s1055_s22 = sphi %s1098_s22, %s15_s22   ;;  %s1051_s21 = sphi %s1096_s21, %s1303_s21   ;;  %s1047_s20 = sphi %s1094_s20, %s1302_s20   ;;  %s1043_s19 = sphi %s1092_s19, %s1301_s19   ;;  %s1039_s18 = sphi %s1090_s18, %s1300_s18  }
   0x4   : > { %p25_p0 = scmp.ge.s32.totalorder %s24_s23, 4  ;;  %p839_p1 = scmp.ge.s32.totalorder %s1055_s22, 1 }
   0x5   : > { %p208_p2 = scmp.lt.s32.totalorder %s1055_s22, 9 }
   0x6   : > { %s1305_s23 = smov (%p25_p0, %s24_s23), 0  ;;  %s1307_s24 = smov (!%p25_p0, %s27_s24), %s1051_s21 }
   0x7   : > { %p209_p3 = pnand %p839_p1, %p208_p2  ;;  %p29_p4 = scmp.ge.s32.totalorder %s1307_s24, 2 }
   0x8   : > { %s840_s25 = sshll.u32 (!%p209_p3), %s1043_s19, 2  ;;  %p246_p5 = scmp.lt.s32.totalorder (!%p209_p3), %s1043_s19, 1 }
   0x9   : > { %s1309_s24 = smov (%p29_p4, %s1307_s24), 0  ;;  %212 = sbr.rel (%p209_p3) target bundleno = 523 (0x20b), region = 40 }
   0xa   : > { %s237_s26 = sadd.s32 (!%p209_p3), %s1039_s18, %s840_s25  ;;  %p843_p7 = scmp.ne.s32.totalorder (!%p209_p3), %s1039_s18, 0 }
   0xb   : > { %s841_s27 = sshll.u32 (!%p209_p3), %s237_s26, 5 }
   0xc   : > { %p239_p6 = scmp.lt.s32.totalorder (!%p209_p3), %s841_s27, 255 }
   0xe   : > { %s1311_s19 = smov (!%p246_p5, %s1043_s19), 1  ;;  %s1313_s27 = smov (!%p239_p6, %s841_s27), 255 }
   0xf   : > { %s248_s30 = scalar_lea.vmem %s1299_s5, %s1311_s19  ;;  %s842_s6 = sshll.u32 %s1313_s27, 2 }
  0x10   : > { %s1132_s9 = scalar_lea.vmem %s1294_s0, %s842_s6  ;;  %253 = sbr.rel (%p843_p7) target bundleno = 23 (0x17), region = 44 }
  0x15   : > { %vm254_vm0 = vcmask 253952   ;;  %v1057_v0 = vmov 0.0  }
  0x16   : > { %255 = vst.msk [vmem:[#allocation2] sm:$0x1] %vm254_vm0, %v1057_v0 }
  0x17 PF: > { %v997_v1 = vld [vmem:[%s1295_s1 + $0x8] sm:$0xff]   ;;  %v998_v2 = vld [vmem:[%s1295_s1] sm:$0xff]   ;;  %vm391_vm1 = vcmask 261120   ;;  %v1001_v5 = vld [vmem:[%s1132_s9 + $0x10] sm:$0xff]   ;;  %vm704_vm2 = vcmask 253952   ;;  %p879_p8 = scmp.ne.s32.totalorder %s1039_s18, 3 }
  0x18   : > { %906 = vmatprep.subr.bf16.mxu0 %v997_v1  ;;  %v999_v3 = vld [vmem:[%s1132_s9] sm:$0xff]   ;;  %950 = vmatprep.subr.bf16.mxu1 %v997_v1  ;;  %v1000_v4 = vld [vmem:[%s1132_s9 + $0x8] sm:$0xff]   ;;  %v1009_v8 = vld [vmem:[%s1132_s9 + $0x50] sm:$0xff]  }
  0x19   : > { %907 = vmatpush3.bf16.msra.mxu0 %v997_v1  ;;  %952 = vmatpush3.bf16.msra.mxu1 %v997_v1  ;;  %v1007_v6 = vld [vmem:[%s1132_s9 + $0x40] sm:$0xff]   ;;  %v1008_v7 = vld [vmem:[%s1132_s9 + $0x48] sm:$0xff]   ;;  %v1002_v9 = vld [vmem:[%s1132_s9 + $0x18] sm:$0xff]  }
  0x1a   : > { %908 = vmatprep.subr.bf16.mxu0 %v998_v2  ;;  %910 = vmatprep.mubr.msk.bf16.mxu0 %vm391_vm1, %v999_v3  ;;  %v1003_v10 = vld [vmem:[%s1132_s9 + $0x20] sm:$0xff]   ;;  %v1010_v11 = vld [vmem:[%s1132_s9 + $0x58] sm:$0xff]   ;;  %v1004_v13 = vld [vmem:[%s1132_s9 + $0x28] sm:$0xff]  }
  0x1b   : > { %951 = vmatprep.subr.bf16.mxu1 %v998_v2  ;;  %926 = vmatprep.mubr.msk.bf16.mxu1 %vm391_vm1, %v1007_v6  ;;  %v1011_v12 = vld [vmem:[%s1132_s9 + $0x60] sm:$0xff]   ;;  %v1005_v14 = vld [vmem:[%s1132_s9 + $0x30] sm:$0xff]   ;;  %v1012_v15 = vld [vmem:[%s1132_s9 + $0x68] sm:$0xff]  }
  0x1c   : > { %v1013_v16 = vld [vmem:[%s1132_s9 + $0x70] sm:$0xff]   ;;  %v1006_v17 = vld [vmem:[%s1132_s9 + $0x38] sm:$0xff]   ;;  %v1176_v20 = vld [vmem:[%s1296_s2] ss:$0 sm:$0xff] }
  0x1d   : > { %909 = vmatpush3.bf16.msra.mxu0 %v998_v2  ;;  %953 = vmatpush3.bf16.msra.mxu1 %v998_v2  ;;  %v1014_v18 = vld [vmem:[%s1132_s9 + $0x78] sm:$0xff]  }
  0x20   : > { %911 = vmatmul.mubr.msk.bf16.vlgmr.msra.gmra.mxu0 %vm391_vm1, %v1000_v4  ;;  %927 = vmatmul.mubr.msk.bf16.vlgmr.msra.gmra.mxu1 %vm391_vm1, %v1008_v7 }
  0x21   : > { %914 = vmatprep.mubr.msk.bf16.mxu0 %vm391_vm1, %v1001_v5  ;;  %930 = vmatprep.mubr.msk.bf16.mxu1 %vm391_vm1, %v1009_v8 }
  0x28   : > { %915 = vmatmul.mubr.msk.bf16.gmra.mxu0 %vm391_vm1, %v1002_v9  ;;  %931 = vmatmul.mubr.msk.bf16.gmra.mxu1 %vm391_vm1, %v1010_v11 }
  0x29   : > { %918 = vmatprep.mubr.msk.bf16.mxu0 %vm391_vm1, %v1003_v10  ;;  %934 = vmatprep.mubr.msk.bf16.mxu1 %vm391_vm1, %v1011_v12 }
  0x30   : > { %919 = vmatmul.mubr.msk.bf16.gmra.mxu0 %vm391_vm1, %v1004_v13  ;;  %935 = vmatmul.mubr.msk.bf16.gmra.mxu1 %vm391_vm1, %v1012_v15 }
  0x31   : > { %922 = vmatprep.mubr.msk.bf16.mxu0 %vm391_vm1, %v1005_v14  ;;  %938 = vmatprep.mubr.msk.bf16.mxu1 %vm391_vm1, %v1013_v16 }
  0x38   : > { %923 = vmatmul.mubr.msk.bf16.gmra.mxu0 %vm391_vm1, %v1006_v17  ;;  %939 = vmatmul.mubr.msk.bf16.gmra.mxu1 %vm391_vm1, %v1014_v18 }
  0xe0   : > { %v912_v19 = vpop.f32.mrf.mxu0  ;;  %v1179_v23 = vpop.f32.mrf.mxu1 }
  0xe1   : > { %v483_v25 = vadd.f32 %v912_v19, %v1176_v20 }
  0xe2   : > { %v474_v21 = vpop.f32.mrf.mxu0  ;;  %v1182_v26 = vpop.f32.mrf.mxu1 }
  0xe3   : > { %v475_v22 = vadd.f32 %v1176_v20, %v474_v21  ;;  %v603_v33 = vmax.f32 %v483_v25, 0.0 }
  0xe4   : > { %v913_v24 = vpop.f32.mrf.mxu0  ;;  %v1186_v31 = vpop.f32.mrf.mxu1 }
  0xe5   : > { %v601_v28 = vmax.f32 %v475_v22, 0.0  ;;  %v486_v29 = vadd.f32 %v913_v24, %v1176_v20  ;;  %v637_v44 = vsel %vm391_vm1, %v603_v33, 0.0 }
  0xe6   : > { %v477_v27 = vpop.f32.mrf.mxu0  ;;  %v1188_v35 = vpop.f32.mrf.mxu1 }
  0xe7   : > { %v478_v30 = vadd.f32 %v1176_v20, %v477_v27  ;;  %v634_v37 = vsel %vm391_vm1, %v601_v28, 0.0  ;;  %v604_v38 = vmax.f32 %v486_v29, 0.0 }
  0xe8   : > { %v916_v32 = vpop.f32.mrf.mxu0  ;;  %v1193_v43 = vpop.f32.mrf.mxu1 }
  0xe9   : > { %v602_v34 = vmax.f32 %v478_v30, 0.0  ;;  %v499_v45 = vadd.f32 %v916_v32, %v1176_v20  ;;  %v639_v49 = vsel %vm391_vm1, %v604_v38, 0.0 }
  0xea   : > { %v490_v36 = vpop.f32.mrf.mxu0  ;;  %v1200_v54 = vpop.f32.mrf.mxu1 }
  0xeb   : > { %v635_v39 = vsel %vm391_vm1, %v602_v34, 0.0  ;;  %v491_v40 = vadd.f32 %v1176_v20, %v490_v36  ;;  %v607_v55 = vmax.f32 %v499_v45, 0.0 }
  0xec   : > { %v636_v41 = vadd.f32 %v635_v39, %v634_v37  ;;  %v917_v42 = vpop.f32.mrf.mxu0  ;;  %v1205_v1 = vpop.f32.mrf.mxu1 }
  0xed   : > { %v605_v46 = vmax.f32 %v491_v40, 0.0  ;;  %v502_v50 = vadd.f32 %v917_v42, %v1176_v20  ;;  %v645_v2 = vsel %vm391_vm1, %v607_v55, 0.0 }
  0xee   : > { %v638_v47 = vadd.f32 %v637_v44, %v636_v41  ;;  %v493_v48 = vpop.f32.mrf.mxu0  ;;  %v557_v12 = vpop.f32.mrf.mxu1  ;;  %v539_v41 = vadd.f32 %v1176_v20, %v1182_v26  ;;  %v550_v26 = vadd.f32 %v1186_v31, %v1176_v20  ;;  %v563_v31 = vadd.f32 %v1193_v43, %v1176_v20 }
  0xef   : > { %v494_v51 = vadd.f32 %v1176_v20, %v493_v48  ;;  %v641_v56 = vsel %vm391_vm1, %v605_v46, 0.0  ;;  %v608_v60 = vmax.f32 %v502_v50, 0.0 }
  0xf0   : > { %v640_v52 = vadd.f32 %v639_v49, %v638_v47  ;;  %v920_v53 = vpop.f32.mrf.mxu0  ;;  %v936_v25 = vpop.f32.mrf.mxu1  ;;  %v542_v47 = vadd.f32 %v1176_v20, %v1188_v35 }
  0xf1   : > { %v606_v57 = vmax.f32 %v494_v51, 0.0  ;;  %v515_v3 = vadd.f32 %v920_v53, %v1176_v20  ;;  %v647_v7 = vsel %vm391_vm1, %v608_v60, 0.0  ;;  %v547_v51 = vadd.f32 %v1179_v23, %v1176_v20 }
  0xf2   : > { %v642_v58 = vadd.f32 %v641_v56, %v640_v52  ;;  %v506_v59 = vpop.f32.mrf.mxu0  ;;  %v570_v38 = vpop.f32.mrf.mxu1  ;;  %v617_v52 = vmax.f32 %v539_v41, 0.0  ;;  %v618_v56 = vmax.f32 %v542_v47, 0.0  ;;  %v555_v60 = vadd.f32 %v1176_v20, %v1200_v54 }
  0xf3   : > { %v643_v61 = vsel %vm391_vm1, %v606_v57, 0.0  ;;  %v507_v62 = vadd.f32 %v1176_v20, %v506_v59  ;;  %v611_v13 = vmax.f32 %v515_v3, 0.0  ;;  %v619_v59 = vmax.f32 %v547_v51, 0.0 }
  0xf4   : > { %v644_v63 = vadd.f32 %v643_v61, %v642_v58  ;;  %v921_v0 = vpop.f32.mrf.mxu0  ;;  %v937_v49 = vpop.f32.mrf.mxu1  ;;  %v665_v35 = vsel %vm391_vm1, %v617_v52, 0.0  ;;  %v667_v23 = vsel %vm391_vm1, %v618_v56, 0.0  ;;  %v566_v54 = vadd.f32 %v1205_v1, %v1176_v20 }
  0xf5   : > { %v609_v4 = vmax.f32 %v507_v62, 0.0  ;;  %v518_v8 = vadd.f32 %v921_v0, %v1176_v20  ;;  %v653_v27 = vsel %vm391_vm1, %v611_v13, 0.0  ;;  %v620_v62 = vmax.f32 %v550_v26, 0.0 }
  0xf6   : > { %v646_v5 = vadd.f32 %v645_v2, %v644_v63  ;;  %v509_v6 = vpop.f32.mrf.mxu0  ;;  %v573_v58 = vpop.f32.mrf.mxu1  ;;  %v558_v63 = vadd.f32 %v1176_v20, %v557_v12  ;;  %v669_v3 = vsel %vm391_vm1, %v619_v59, 0.0  ;;  %v571_v12 = vadd.f32 %v1176_v20, %v570_v38 }
  0xf7   : > { %v510_v9 = vadd.f32 %v1176_v20, %v509_v6  ;;  %v649_v14 = vsel %vm391_vm1, %v609_v4, 0.0  ;;  %v612_v18 = vmax.f32 %v518_v8, 0.0  ;;  %v621_v4 = vmax.f32 %v555_v60, 0.0 }
  0xf8   : > { %v648_v10 = vadd.f32 %v647_v7, %v646_v5  ;;  %v924_v11 = vpop.f32.mrf.mxu0  ;;  %v940_v2 = vpop.f32.mrf.mxu1  ;;  %v671_v6 = vsel %vm391_vm1, %v620_v62, 0.0  ;;  %v622_v7 = vmax.f32 %v558_v63, 0.0  ;;  %v574_v43 = vadd.f32 %v1176_v20, %v573_v58 }
  0xf9   : > { %v610_v15 = vmax.f32 %v510_v9, 0.0  ;;  %v531_v28 = vadd.f32 %v924_v11, %v1176_v20  ;;  %v655_v33 = vsel %vm391_vm1, %v612_v18, 0.0  ;;  %v673_v11 = vsel %vm391_vm1, %v621_v4, 0.0 }
  0xfa   : > { %v650_v16 = vadd.f32 %v649_v14, %v648_v10  ;;  %v522_v17 = vpop.f32.mrf.mxu0  ;;  %v586_v9 = vpop.f32.mrf.mxu1  ;;  %v623_v10 = vmax.f32 %v563_v31, 0.0  ;;  %v624_v14 = vmax.f32 %v566_v54, 0.0  ;;  %v579_v1 = vadd.f32 %v936_v25, %v1176_v20 }
  0xfb   : > { %v651_v19 = vsel %vm391_vm1, %v610_v15, 0.0  ;;  %v523_v21 = vadd.f32 %v1176_v20, %v522_v17  ;;  %v615_v39 = vmax.f32 %v531_v28, 0.0  ;;  %v675_v15 = vsel %vm391_vm1, %v622_v7, 0.0 }
  0xfc   : > { %v652_v22 = vadd.f32 %v651_v19, %v650_v16  ;;  %v925_v24 = vpop.f32.mrf.mxu0  ;;  %v941_v17 = vpop.f32.mrf.mxu1  ;;  %v677_v18 = vsel %vm391_vm1, %v623_v10, 0.0  ;;  %v625_v19 = vmax.f32 %v571_v12, 0.0 }
  0xfd   : > { %v613_v29 = vmax.f32 %v523_v21, 0.0  ;;  %v534_v34 = vadd.f32 %v925_v24, %v1176_v20  ;;  %v661_v50 = vsel %vm391_vm1, %v615_v39, 0.0  ;;  %v582_v24 = vadd.f32 %v937_v49, %v1176_v20 }
  0xfe   : > { %v654_v30 = vadd.f32 %v653_v27, %v652_v22  ;;  %v525_v32 = vpop.f32.mrf.mxu0  ;;  %v679_v22 = vsel %vm391_vm1, %v624_v14, 0.0  ;;  %v626_v27 = vmax.f32 %v574_v43, 0.0 }
  0xff   : > { %v526_v36 = vadd.f32 %v1176_v20, %v525_v32  ;;  %v657_v40 = vsel %vm391_vm1, %v613_v29, 0.0  ;;  %v616_v45 = vmax.f32 %v534_v34, 0.0  ;;  %v589_v29 = vpop.f32.mrf.mxu1  ;;  %v681_v32 = vsel %vm391_vm1, %v625_v19, 0.0 }
 0x100   : > { %v656_v37 = vadd.f32 %v655_v33, %v654_v30  ;;  %v627_v30 = vmax.f32 %v579_v1, 0.0  ;;  %v587_v33 = vadd.f32 %v1176_v20, %v586_v9  ;;  %v590_v25 = vadd.f32 %v1176_v20, %v589_v29 }
 0x101   : > { %v614_v42 = vmax.f32 %v526_v36, 0.0  ;;  %v663_v55 = vsel %vm391_vm1, %v616_v45, 0.0  ;;  %v628_v36 = vmax.f32 %v582_v24, 0.0  ;;  %v598_v45 = vadd.f32 %v941_v17, %v1176_v20 }
 0x102   : > { %v658_v44 = vadd.f32 %v657_v40, %v656_v37  ;;  %v683_v37 = vsel %vm391_vm1, %v626_v27, 0.0  ;;  %v685_v39 = vsel %vm391_vm1, %v627_v30, 0.0  ;;  %v595_v40 = vadd.f32 %v940_v2, %v1176_v20 }
 0x103   : > { %v659_v46 = vsel %vm391_vm1, %v614_v42, 0.0  ;;  %v629_v41 = vmax.f32 %v587_v33, 0.0  ;;  %v632_v51 = vmax.f32 %v598_v45, 0.0 }
 0x104   : > { %v660_v48 = vadd.f32 %v659_v46, %v658_v44  ;;  %v687_v44 = vsel %vm391_vm1, %v628_v36, 0.0  ;;  %v630_v46 = vmax.f32 %v590_v25, 0.0 }
 0x105   : > { %v689_v49 = vsel %vm391_vm1, %v629_v41, 0.0  ;;  %v695_v56 = vsel %vm391_vm1, %v632_v51, 0.0 }
 0x106   : > { %v662_v53 = vadd.f32 %v661_v50, %v660_v48  ;;  %v631_v48 = vmax.f32 %v595_v40, 0.0  ;;  %v691_v52 = vsel %vm391_vm1, %v630_v46, 0.0 }
 0x108   : > { %v664_v57 = vadd.f32 %v663_v55, %v662_v53  ;;  %v693_v55 = vsel %vm391_vm1, %v631_v48, 0.0 }
 0x10a   : > { %v666_v61 = vadd.f32 %v665_v35, %v664_v57 }
 0x10c   : > { %v668_v0 = vadd.f32 %v667_v23, %v666_v61  ;;  %v633_v61 = vld [vmem:[#allocation2] sm:$0x1] }
 0x10e   : > { %v670_v5 = vadd.f32 %v669_v3, %v668_v0 }
 0x110   : > { %v672_v8 = vadd.f32 %v671_v6, %v670_v5 }
 0x112   : > { %v674_v13 = vadd.f32 %v673_v11, %v672_v8 }
 0x114   : > { %v676_v16 = vadd.f32 %v675_v15, %v674_v13 }
 0x116   : > { %v678_v21 = vadd.f32 %v677_v18, %v676_v16 }
 0x118   : > { %v680_v28 = vadd.f32 %v679_v22, %v678_v21 }
 0x11a   : > { %v682_v34 = vadd.f32 %v681_v32, %v680_v28 }
 0x11c   : > { %v684_v38 = vadd.f32 %v683_v37, %v682_v34 }
 0x11e   : > { %v686_v42 = vadd.f32 %v685_v39, %v684_v38 }
 0x120   : > { %v688_v47 = vadd.f32 %v687_v44, %v686_v42 }
 0x122   : > { %v690_v50 = vadd.f32 %v689_v49, %v688_v47 }
 0x124   : > { %v692_v53 = vadd.f32 %v691_v52, %v690_v50 }
 0x126   : > { %v694_v26 = vadd.f32 %v693_v55, %v692_v53 }
 0x128   : > { %v696_v57 = vadd.f32 %v695_v56, %v694_v26 }
 0x12a   : > { %v697_v58 = vrot.slane %v696_v57, 4 }
 0x12c   : > { %v698_v59 = vadd.f32 %v697_v58, %v696_v57 }
 0x12e   : > { %v699_v35 = vrot.slane %v698_v59, 2 }
 0x130   : > { %v700_v20 = vadd.f32 %v699_v35, %v698_v59 }
 0x132   : > { %v701_v60 = vrot.slane %v700_v20, 1 }
 0x134   : > { %v702_v62 = vadd.f32 %v701_v60, %v700_v20  ;;  %709 = sbr.rel (%p879_p8) target bundleno = 523 (0x20b), region = 48 }
 0x136   : > { %v703_v23 = vadd.f32 %v702_v62, %v633_v61 }
 0x138   : > { %705 = vst.msk [vmem:[#allocation2] sm:$0x1] %vm704_vm2, %v703_v23 }
 0x139   : > { %v1015_v63 = vld [vmem:[%s1297_s3 + $0x8] sm:$0xff]   ;;  %v1058_v0 = vmov 0.0   ;;  %v1016_v2 = vld [vmem:[%s1297_s3] sm:$0xff]   ;;  %vm1059_vm3 = vmmov 0  }
 0x13a   : > { %942 = vmatprep.subr.bf16.mxu0 %v1058_v0  ;;  %946 = vmatprep.mubr.msk.bf16.mxu0 %vm1059_vm3, %v1058_v0  ;;  %v717_v5 = vld [vmem:[%s1298_s4] sm:$0x1] }
 0x13b   : > { %943 = vmatpush3.bf16.msra.mxu0 %v1015_v63 }
 0x13c   : > { %944 = vmatprep.subr.bf16.mxu0 %v1058_v0 }
 0x13f   : > { %v710_v3 = vld [vmem:[#allocation2] sm:$0x1]  ;;  %945 = vmatpush3.bf16.msra.mxu0 %v1016_v2 }
 0x140   : > { %v711_v31 = vmul.f32 0.0009765625, %v710_v3 }
 0x142   : > { %v712_v4 = vpack.c.bf16 %v711_v31, %v711_v31 }
 0x144   : > { %947 = vmatmul.mubr.msk.bf16.vlgmr.msra.gmra.mxu0 %vm391_vm1, %v712_v4 }
 0x204   : > { %v767_v6 = vpop.f32.mrf.mxu0 }
 0x205   : > { %v768_v54 = vadd.f32 %v767_v6, %v717_v5 }
 0x206   : > { %v948_v7 = vpop.f32.mrf.mxu0 }
 0x207   : > { %v773_v8 = vmax.f32 %v768_v54, 0.0 }
 0x208   : > { %v770_v9 = vpop.f32.mrf.mxu0 }
 0x209   : > { %774 = vst [vmem:[%s248_s30] sm:$0x1] %v773_v8 }
 0x20a   : > { %v949_v10 = vpop.f32.mrf.mxu0 }
 0x20b PF: > { %s15_s22 = sadd.s32 1, %s1055_s22   ;;  %s1300_s18 = smov %s1047_s20 }
 0x20c   : > { %p12_p9 = scmp.ge.s32.totalorder %s15_s22, 10   ;;  %s1301_s19 = smov %s1051_s21 }
 0x20d   : > { %s1302_s20 = smov %s1305_s23  ;;  %s1303_s21 = smov %s1309_s24 }
 0x20e   :  { %14 = sbr.rel (!%p12_p9) target bundleno = 3 (0x3), region = 78 }

// kernel: model_forward.5
= control target key start
LH: loop header
LB: loop body
LE: loop exit
PB: predicated region body
PF: predicated region fallthrough
CT: control target
= control target key end

     0   :  { %v445_v1 = vmov 0   ;;  %v52_v35 = vlaneseq  ;;  %s611_s1 = inlined_call_operand.vmem [shape: bf16[128,512], index: 1, kind: input, shape index: {}]   ;;  %s612_s0 = inlined_call_operand.vmem [shape: bf16[18,128], index: 0, kind: input, shape index: {}]   ;;  %s613_s2 = inlined_call_operand.vmem [shape: f32[1,512], index: 2, kind: input, shape index: {}]   ;;  %s614_s3 = inlined_call_operand.vmem [shape: f32[18,512], index: 3, kind: output, shape index: {}]  }
   0x1   :  { %v395_v0 = vld [vmem:[%s611_s1 + $0xe4] ss:$16 sps:$4 sm:$0xff]   ;;  %274 = vmatprep.mubr.bf16.mxu0 %v445_v1  ;;  %325 = vmatprep.mubr.bf16.mxu1 %v445_v1  ;;  %v397_v2 = vld [vmem:[%s611_s1 + $0xec] ss:$16 sps:$4 sm:$0xff]   ;;  %v399_v3 = vld [vmem:[%s611_s1 + $0xe0] ss:$16 sps:$4 sm:$0xff]  }
   0x2   :  { %242 = vmatprep.subr.bf16.mxu0 %v395_v0  ;;  %v400_v4 = vld [vmem:[%s611_s1 + $0xe8] ss:$16 sps:$4 sm:$0xff]   ;;  %293 = vmatprep.subr.bf16.mxu1 %v397_v2  ;;  %v401_v5 = vld [vmem:[%s611_s1 + $0xc4] ss:$16 sps:$4 sm:$0xff]   ;;  %v403_v6 = vld [vmem:[%s611_s1 + $0xcc] ss:$16 sps:$4 sm:$0xff]  }
   0x3   :  { %243 = vmatpush1.bf16.msra.mxu0 %v399_v3  ;;  %294 = vmatpush1.bf16.msra.mxu1 %v400_v4  ;;  %v405_v7 = vld [vmem:[%s611_s1 + $0xc0] ss:$16 sps:$4 sm:$0xff]   ;;  %v406_v8 = vld [vmem:[%s611_s1 + $0xc8] ss:$16 sps:$4 sm:$0xff]   ;;  %v407_v9 = vld [vmem:[%s611_s1 + $0xa4] ss:$16 sps:$4 sm:$0xff]  }
   0x4   :  { %244 = vmatprep.subr.bf16.mxu0 %v401_v5  ;;  %295 = vmatprep.subr.bf16.mxu1 %v403_v6  ;;  %v409_v10 = vld [vmem:[%s611_s1 + $0xac] ss:$16 sps:$4 sm:$0xff]   ;;  %v411_v11 = vld [vmem:[%s611_s1 + $0xa0] ss:$16 sps:$4 sm:$0xff]   ;;  %v412_v12 = vld [vmem:[%s611_s1 + $0xa8] ss:$16 sps:$4 sm:$0xff]  }
   0x5   :  { %v413_v13 = vld [vmem:[%s611_s1 + $0x84] ss:$16 sps:$4 sm:$0xff]   ;;  %v415_v14 = vld [vmem:[%s611_s1 + $0x8c] ss:$16 sps:$4 sm:$0xff]   ;;  %v417_v15 = vld [vmem:[%s611_s1 + $0x80] ss:$16 sps:$4 sm:$0xff]  }
   0x6   :  { %v418_v16 = vld [vmem:[%s611_s1 + $0x88] ss:$16 sps:$4 sm:$0xff]   ;;  %v419_v17 = vld [vmem:[%s611_s1 + $0x64] ss:$16 sps:$4 sm:$0xff]   ;;  %v421_v18 = vld [vmem:[%s611_s1 + $0x6c] ss:$16 sps:$4 sm:$0xff]  }
   0x7   :  { %245 = vmatpush1.bf16.msra.mxu0 %v405_v7  ;;  %296 = vmatpush1.bf16.msra.mxu1 %v406_v8  ;;  %v423_v19 = vld [vmem:[%s611_s1 + $0x60] ss:$16 sps:$4 sm:$0xff]   ;;  %v424_v20 = vld [vmem:[%s611_s1 + $0x68] ss:$16 sps:$4 sm:$0xff]   ;;  %v425_v21 = vld [vmem:[%s611_s1 + $0x44] ss:$16 sps:$4 sm:$0xff]  }
   0x8   :  { %246 = vmatprep.subr.bf16.mxu0 %v407_v9  ;;  %297 = vmatprep.subr.bf16.mxu1 %v409_v10  ;;  %v427_v22 = vld [vmem:[%s611_s1 + $0x4c] ss:$16 sps:$4 sm:$0xff]   ;;  %v429_v23 = vld [vmem:[%s611_s1 + $0x40] ss:$16 sps:$4 sm:$0xff]   ;;  %v430_v24 = vld [vmem:[%s611_s1 + $0x48] ss:$16 sps:$4 sm:$0xff]  }
   0x9   :  { %v431_v25 = vld [vmem:[%s611_s1 + $0x24] ss:$16 sps:$4 sm:$0xff]   ;;  %v433_v26 = vld [vmem:[%s611_s1 + $0x2c] ss:$16 sps:$4 sm:$0xff]   ;;  %v435_v27 = vld [vmem:[%s611_s1 + $0x20] ss:$16 sps:$4 sm:$0xff]  }
   0xa   :  { %v436_v28 = vld [vmem:[%s611_s1 + $0x28] ss:$16 sps:$4 sm:$0xff]   ;;  %v437_v29 = vld [vmem:[%s611_s1 + $0x4] ss:$16 sps:$4 sm:$0xff]   ;;  %v439_v30 = vld [vmem:[%s611_s1 + $0xc] ss:$16 sps:$4 sm:$0xff]  }
   0xb   :  { %247 = vmatpush1.bf16.msra.mxu0 %v411_v11  ;;  %298 = vmatpush1.bf16.msra.mxu1 %v412_v12  ;;  %v441_v31 = vld [vmem:[%s611_s1] ss:$16 sps:$4 sm:$0xff]   ;;  %v442_v32 = vld [vmem:[%s611_s1 + $0x8] ss:$16 sps:$4 sm:$0xff]   ;;  %v53_v36 = vshrl.u32 %v52_v35, 7 }
   0xc   :  { %248 = vmatprep.subr.bf16.mxu0 %v413_v13  ;;  %299 = vmatprep.subr.bf16.mxu1 %v415_v14  ;;  %v443_v33 = vld [vmem:[%s612_s0] sm:$0xff]   ;;  %v444_v34 = vld [vmem:[%s612_s0 + $0x8] ss:$0 sps:$4 sm:$0x11]  }
   0xd   :  { %v54_v37 = vsub.s32 0, %v53_v36  ;;  %v62_v38 = vsub.s32 2, %v53_v36  ;;  %v50_v39 = vld [vmem:[%s613_s2] sm:$0xf]  ;;  %v58_v40 = vsub.s32 1, %v53_v36  ;;  %v66_v41 = vsub.s32 3, %v53_v36 }
   0xf   :  { %249 = vmatpush1.bf16.msra.mxu0 %v417_v15  ;;  %300 = vmatpush1.bf16.msra.mxu1 %v418_v16  ;;  %v55_v42 = vrot.slane %v50_v39, %v54_v37  ;;  %v63_v43 = vrot.slane %v50_v39, %v62_v38  ;;  %v59_v44 = vrot.slane %v50_v39, %v58_v40 }
  0x10   :  { %250 = vmatprep.subr.bf16.mxu0 %v419_v17  ;;  %301 = vmatprep.subr.bf16.mxu1 %v421_v18  ;;  %v67_v45 = vrot.slane %v50_v39, %v66_v41 }
  0x13   :  { %251 = vmatpush1.bf16.msra.mxu0 %v423_v19  ;;  %302 = vmatpush1.bf16.msra.mxu1 %v424_v20 }
  0x14   :  { %252 = vmatprep.subr.bf16.mxu0 %v425_v21  ;;  %303 = vmatprep.subr.bf16.mxu1 %v427_v22 }
  0x17   :  { %253 = vmatpush1.bf16.msra.mxu0 %v429_v23  ;;  %304 = vmatpush1.bf16.msra.mxu1 %v430_v24 }
  0x18   :  { %254 = vmatprep.subr.bf16.mxu0 %v431_v25  ;;  %305 = vmatprep.subr.bf16.mxu1 %v433_v26 }
  0x1b   :  { %255 = vmatpush1.bf16.msra.mxu0 %v435_v27  ;;  %306 = vmatpush1.bf16.msra.mxu1 %v436_v28 }
  0x1c   :  { %256 = vmatprep.subr.bf16.mxu0 %v437_v29  ;;  %307 = vmatprep.subr.bf16.mxu1 %v439_v30 }
  0x1f   :  { %257 = vmatpush1.bf16.msra.mxu0 %v441_v31  ;;  %308 = vmatpush1.bf16.msra.mxu1 %v442_v32 }
  0x22   :  { %275 = vmatmul.mubr.bf16.vlgmr.msra.gmra.mxu0 %v443_v33  ;;  %326 = vmatmul.mubr.bf16.vlgmr.msra.gmra.mxu1 %v443_v33 }
  0x23   :  { %284 = vmatprep.mubr.bf16.mxu0 %v445_v1  ;;  %335 = vmatprep.mubr.bf16.mxu1 %v445_v1 }
  0x2a   :  { %285 = vmatmul.mubr.bf16.gmra.mxu0 %v444_v34  ;;  %336 = vmatmul.mubr.bf16.gmra.mxu1 %v444_v34 }
  0xe2   :  { %v276_v46 = vpop.f32.mrf.mxu0  ;;  %v327_v47 = vpop.f32.mrf.mxu1 }
  0xe3   :  { %v277_v48 = vadd.f32 %v276_v46, %v55_v42  ;;  %v328_v49 = vadd.f32 %v327_v47, %v63_v43 }
  0xe4   :  { %v278_v50 = vpop.f32.mrf.mxu0  ;;  %v329_v51 = vpop.f32.mrf.mxu1 }
  0xe5   :  { %344 = vst [vmem:[%s614_s3] sm:$0xff] %v277_v48  ;;  %346 = vst [vmem:[%s614_s3 + $0x10] sm:$0xff] %v328_v49  ;;  %v279_v52 = vadd.f32 %v278_v50, %v59_v44  ;;  %v330_v53 = vadd.f32 %v329_v51, %v67_v45 }
  0xe6   :  { %v280_v54 = vpop.f32.mrf.mxu0  ;;  %v331_v55 = vpop.f32.mrf.mxu1 }
  0xe7   :  { %345 = vst [vmem:[%s614_s3 + $0x8] sm:$0xff] %v279_v52  ;;  %347 = vst [vmem:[%s614_s3 + $0x18] sm:$0xff] %v330_v53  ;;  %v281_v56 = vadd.f32 %v280_v54, %v55_v42  ;;  %v332_v57 = vadd.f32 %v331_v55, %v63_v43 }
  0xe8   :  { %v282_v58 = vpop.f32.mrf.mxu0  ;;  %v333_v59 = vpop.f32.mrf.mxu1 }
  0xe9   :  { %348 = vst [vmem:[%s614_s3 + $0x20] sm:$0xff] %v281_v56  ;;  %350 = vst [vmem:[%s614_s3 + $0x30] sm:$0xff] %v332_v57  ;;  %v283_v60 = vadd.f32 %v282_v58, %v59_v44  ;;  %v334_v61 = vadd.f32 %v333_v59, %v67_v45 }
  0xea   :  { %v286_v62 = vpop.f32.mrf.mxu0  ;;  %v337_v63 = vpop.f32.mrf.mxu1 }
  0xeb   :  { %349 = vst [vmem:[%s614_s3 + $0x28] sm:$0xff] %v283_v60  ;;  %351 = vst [vmem:[%s614_s3 + $0x38] sm:$0xff] %v334_v61  ;;  %v287_v0 = vadd.f32 %v286_v62, %v55_v42  ;;  %v338_v1 = vadd.f32 %v337_v63, %v63_v43 }
  0xec   :  { %v288_v2 = vpop.f32.mrf.mxu0  ;;  %v339_v3 = vpop.f32.mrf.mxu1 }
  0xed   :  { %352 = vst [vmem:[%s614_s3 + $0x40] sm:$0x3] %v287_v0  ;;  %354 = vst [vmem:[%s614_s3 + $0x50] sm:$0x3] %v338_v1  ;;  %v289_v4 = vadd.f32 %v288_v2, %v59_v44  ;;  %v340_v5 = vadd.f32 %v339_v3, %v67_v45 }
  0xee   :  { %v290_v6 = vpop.f32.mrf.mxu0  ;;  %v341_v7 = vpop.f32.mrf.mxu1 }
  0xef   :  { %353 = vst [vmem:[%s614_s3 + $0x48] sm:$0x3] %v289_v4  ;;  %355 = vst [vmem:[%s614_s3 + $0x58] sm:$0x3] %v340_v5 }
  0xf0   :  { %v291_v8 = vpop.f32.mrf.mxu0  ;;  %v342_v9 = vpop.f32.mrf.mxu1 }

// kernel: model_forward.7
= control target key start
LH: loop header
LB: loop body
LE: loop exit
PB: predicated region body
PF: predicated region fallthrough
CT: control target
= control target key end

     0   :  { %v258_v1 = vmov 0   ;;  %v36_v19 = vlaneseq  ;;  %s354_s1 = inlined_call_operand.vmem [shape: bf16[128,256], index: 1, kind: input, shape index: {}]   ;;  %s355_s0 = inlined_call_operand.vmem [shape: bf16[18,128], index: 0, kind: input, shape index: {}]   ;;  %s356_s2 = inlined_call_operand.vmem [shape: f32[1,256], index: 2, kind: input, shape index: {}]   ;;  %s357_s3 = inlined_call_operand.vmem [shape: f32[18,256], index: 3, kind: output, shape index: {}]  }
   0x1   :  { %v232_v0 = vld [vmem:[%s354_s1 + $0x74] ss:$8 sps:$4 sm:$0xff]   ;;  %168 = vmatprep.mubr.bf16.mxu0 %v258_v1  ;;  %178 = vmatprep.mubr.bf16.mxu1 %v258_v1  ;;  %v234_v2 = vld [vmem:[%s354_s1 + $0x70] ss:$8 sps:$4 sm:$0xff]   ;;  %v235_v3 = vld [vmem:[%s354_s1 + $0x64] ss:$8 sps:$4 sm:$0xff]  }
   0x2   :  { %136 = vmatprep.subr.bf16.mxu0 %v232_v0  ;;  %215 = vmatprep.subr.bf16.mxu1 %v232_v0  ;;  %v237_v4 = vld [vmem:[%s354_s1 + $0x60] ss:$8 sps:$4 sm:$0xff]   ;;  %v238_v5 = vld [vmem:[%s354_s1 + $0x54] ss:$8 sps:$4 sm:$0xff]   ;;  %v240_v6 = vld [vmem:[%s354_s1 + $0x50] ss:$8 sps:$4 sm:$0xff]  }
   0x3   :  { %137 = vmatpush1.bf16.msra.mxu0 %v234_v2  ;;  %223 = vmatpush1.bf16.msra.mxu1 %v234_v2  ;;  %v241_v7 = vld [vmem:[%s354_s1 + $0x44] ss:$8 sps:$4 sm:$0xff]   ;;  %v243_v8 = vld [vmem:[%s354_s1 + $0x40] ss:$8 sps:$4 sm:$0xff]   ;;  %v244_v9 = vld [vmem:[%s354_s1 + $0x34] ss:$8 sps:$4 sm:$0xff]  }
   0x4   :  { %138 = vmatprep.subr.bf16.mxu0 %v235_v3  ;;  %216 = vmatprep.subr.bf16.mxu1 %v235_v3  ;;  %v246_v10 = vld [vmem:[%s354_s1 + $0x30] ss:$8 sps:$4 sm:$0xff]   ;;  %v247_v11 = vld [vmem:[%s354_s1 + $0x24] ss:$8 sps:$4 sm:$0xff]   ;;  %v249_v12 = vld [vmem:[%s354_s1 + $0x20] ss:$8 sps:$4 sm:$0xff]  }
   0x5   :  { %v250_v13 = vld [vmem:[%s354_s1 + $0x14] ss:$8 sps:$4 sm:$0xff]   ;;  %v252_v14 = vld [vmem:[%s354_s1 + $0x10] ss:$8 sps:$4 sm:$0xff]   ;;  %v253_v15 = vld [vmem:[%s354_s1 + $0x4] ss:$8 sps:$4 sm:$0xff]  }
   0x6   :  { %v255_v16 = vld [vmem:[%s354_s1] ss:$8 sps:$4 sm:$0xff]   ;;  %v37_v20 = vshrl.u32 %v36_v19, 7 }
   0x7   :  { %139 = vmatpush1.bf16.msra.mxu0 %v237_v4  ;;  %224 = vmatpush1.bf16.msra.mxu1 %v237_v4  ;;  %v256_v17 = vld [vmem:[%s355_s0] sm:$0xff]   ;;  %v257_v18 = vld [vmem:[%s355_s0 + $0x8] ss:$0 sps:$4 sm:$0x11]  }
   0x8   :  { %140 = vmatprep.subr.bf16.mxu0 %v238_v5  ;;  %217 = vmatprep.subr.bf16.mxu1 %v238_v5  ;;  %v38_v21 = vsub.s32 0, %v37_v20  ;;  %v34_v22 = vld [vmem:[%s356_s2] sm:$0x3]  ;;  %v42_v23 = vsub.s32 1, %v37_v20 }
   0xa   :  { %v39_v24 = vrot.slane %v34_v22, %v38_v21  ;;  %v43_v25 = vrot.slane %v34_v22, %v42_v23 }
   0xb   :  { %141 = vmatpush1.bf16.msra.mxu0 %v240_v6  ;;  %225 = vmatpush1.bf16.msra.mxu1 %v240_v6 }
   0xc   :  { %142 = vmatprep.subr.bf16.mxu0 %v241_v7  ;;  %218 = vmatprep.subr.bf16.mxu1 %v241_v7 }
   0xf   :  { %143 = vmatpush1.bf16.msra.mxu0 %v243_v8  ;;  %226 = vmatpush1.bf16.msra.mxu1 %v243_v8 }
  0x10   :  { %144 = vmatprep.subr.bf16.mxu0 %v244_v9  ;;  %219 = vmatprep.subr.bf16.mxu1 %v244_v9 }
  0x13   :  { %145 = vmatpush1.bf16.msra.mxu0 %v246_v10  ;;  %227 = vmatpush1.bf16.msra.mxu1 %v246_v10 }
  0x14   :  { %146 = vmatprep.subr.bf16.mxu0 %v247_v11  ;;  %220 = vmatprep.subr.bf16.mxu1 %v247_v11 }
  0x17   :  { %147 = vmatpush1.bf16.msra.mxu0 %v249_v12  ;;  %228 = vmatpush1.bf16.msra.mxu1 %v249_v12 }
  0x18   :  { %148 = vmatprep.subr.bf16.mxu0 %v250_v13  ;;  %221 = vmatprep.subr.bf16.mxu1 %v250_v13 }
  0x1b   :  { %149 = vmatpush1.bf16.msra.mxu0 %v252_v14  ;;  %229 = vmatpush1.bf16.msra.mxu1 %v252_v14 }
  0x1c   :  { %150 = vmatprep.subr.bf16.mxu0 %v253_v15  ;;  %222 = vmatprep.subr.bf16.mxu1 %v253_v15 }
  0x1f   :  { %151 = vmatpush1.bf16.msra.mxu0 %v255_v16  ;;  %230 = vmatpush1.bf16.msra.mxu1 %v255_v16 }
  0x22   :  { %169 = vmatmul.mubr.bf16.vlgmr.msra.gmra.mxu0 %v256_v17  ;;  %179 = vmatmul.mubr.bf16.vlgmr.msra.gmra.mxu1 %v257_v18 }
  0xe2   :  { %v170_v26 = vpop.f32.mrf.mxu0  ;;  %v180_v27 = vpop.f32.mrf.mxu1 }
  0xe3   :  { %v171_v28 = vadd.f32 %v170_v26, %v39_v24  ;;  %v181_v29 = vadd.f32 %v180_v27, %v39_v24 }
  0xe4   :  { %v172_v30 = vpop.f32.mrf.mxu0  ;;  %v182_v31 = vpop.f32.mrf.mxu1 }
  0xe5   :  { %187 = vst [vmem:[%s357_s3] sm:$0xff] %v171_v28  ;;  %191 = vst [vmem:[%s357_s3 + $0x20] sm:$0x3] %v181_v29  ;;  %v173_v32 = vadd.f32 %v172_v30, %v43_v25  ;;  %v183_v33 = vadd.f32 %v182_v31, %v43_v25 }
  0xe6   :  { %v174_v34 = vpop.f32.mrf.mxu0  ;;  %v184_v35 = vpop.f32.mrf.mxu1 }
  0xe7   :  { %188 = vst [vmem:[%s357_s3 + $0x8] sm:$0xff] %v173_v32  ;;  %192 = vst [vmem:[%s357_s3 + $0x28] sm:$0x3] %v183_v33  ;;  %v175_v36 = vadd.f32 %v174_v34, %v39_v24 }
  0xe8   :  { %v176_v37 = vpop.f32.mrf.mxu0  ;;  %v185_v38 = vpop.f32.mrf.mxu1 }
  0xe9   :  { %189 = vst [vmem:[%s357_s3 + $0x10] sm:$0xff] %v175_v36  ;;  %v177_v39 = vadd.f32 %v176_v37, %v43_v25 }
  0xeb   :  { %190 = vst [vmem:[%s357_s3 + $0x18] sm:$0xff] %v177_v39 }

// kernel: model_forward.6
= control target key start
LH: loop header
LB: loop body
LE: loop exit
PB: predicated region body
PF: predicated region fallthrough
CT: control target
= control target key end

     0   :  { %v3671_v1 = vmov 0   ;;  %v3672_v2 = vmov 0.0   ;;  %v3673_v36 = vmov 1983009808   ;;  %v300_v38 = vlaneseq  ;;  %s4453_s1 = inlined_call_operand.vmem [shape: bf16[128,512], index: 1, kind: input, shape index: {}]   ;;  %s4454_s0 = inlined_call_operand.vmem [shape: f32[9,2,512], index: 0, kind: input, shape index: {}]   ;;  %s4455_s2 = inlined_call_operand.vmem [shape: f32[9,2,128], index: 2, kind: output, shape index: {}]  }
   0x1   :  { %v3692_v0 = vld [vmem:[%s4453_s1 + $0xe4] ss:$16 sps:$4 sm:$0xff]   ;;  %241 = vmatprep.mubr.bf16.mxu0 %v3671_v1  ;;  %282 = vmatprep.mubr.bf16.mxu1 %v3671_v1  ;;  %12 = vst [vmem:[#allocation2] sm:$0x3] %v3672_v2  ;;  %13 = vst [vmem:[#allocation3] sm:$0x3] %v3672_v2  ;;  %v298_v37 = vunpack.c.l.s4 %v3673_v36 }
   0x2   :  { %v3699_v3 = vld [vmem:[%s4453_s1 + $0xec] ss:$16 sps:$4 sm:$0xff]   ;;  %209 = vmatprep.subr.bf16.mxu0 %v3692_v0  ;;  %v3705_v4 = vld [vmem:[%s4453_s1 + $0xe0] ss:$16 sps:$4 sm:$0xff]   ;;  %v3710_v5 = vld [vmem:[%s4453_s1 + $0xe8] ss:$16 sps:$4 sm:$0xff]  }
   0x3   :  { %250 = vmatprep.subr.bf16.mxu1 %v3699_v3  ;;  %v3716_v6 = vld [vmem:[%s4453_s1 + $0xc4] ss:$16 sps:$4 sm:$0xff]   ;;  %210 = vmatpush1.bf16.msra.mxu0 %v3705_v4  ;;  %v3723_v7 = vld [vmem:[%s4453_s1 + $0xcc] ss:$16 sps:$4 sm:$0xff]   ;;  %v3728_v8 = vld [vmem:[%s4453_s1 + $0xc0] ss:$16 sps:$4 sm:$0xff]   ;;  %v299_v39 = vunpack.c.0.s8 %v298_v37 }
   0x4   :  { %251 = vmatpush1.bf16.msra.mxu1 %v3710_v5  ;;  %211 = vmatprep.subr.bf16.mxu0 %v3716_v6  ;;  %v3734_v9 = vld [vmem:[%s4453_s1 + $0xc8] ss:$16 sps:$4 sm:$0xff]   ;;  %v3740_v10 = vld [vmem:[%s4453_s1 + $0xa4] ss:$16 sps:$4 sm:$0xff]   ;;  %v3745_v11 = vld [vmem:[%s4453_s1 + $0xac] ss:$16 sps:$4 sm:$0xff]  }
   0x5   :  { %252 = vmatprep.subr.bf16.mxu1 %v3723_v7  ;;  %v3750_v12 = vld [vmem:[%s4453_s1 + $0xa0] ss:$16 sps:$4 sm:$0xff]   ;;  %v3755_v13 = vld [vmem:[%s4453_s1 + $0xa8] ss:$16 sps:$4 sm:$0xff]   ;;  %v3762_v14 = vld [vmem:[%s4453_s1 + $0x84] ss:$16 sps:$4 sm:$0xff]  }
   0x6   :  { %v3769_v15 = vld [vmem:[%s4453_s1 + $0x8c] ss:$16 sps:$4 sm:$0xff]   ;;  %v3774_v16 = vld [vmem:[%s4453_s1 + $0x80] ss:$16 sps:$4 sm:$0xff]   ;;  %v3781_v17 = vld [vmem:[%s4453_s1 + $0x88] ss:$16 sps:$4 sm:$0xff]  }
   0x7   :  { %212 = vmatpush1.bf16.msra.mxu0 %v3728_v8  ;;  %v3786_v18 = vld [vmem:[%s4453_s1 + $0x64] ss:$16 sps:$4 sm:$0xff]   ;;  %v3793_v19 = vld [vmem:[%s4453_s1 + $0x6c] ss:$16 sps:$4 sm:$0xff]   ;;  %v3798_v20 = vld [vmem:[%s4453_s1 + $0x60] ss:$16 sps:$4 sm:$0xff]  }
   0x8   :  { %253 = vmatpush1.bf16.msra.mxu1 %v3734_v9  ;;  %213 = vmatprep.subr.bf16.mxu0 %v3740_v10  ;;  %v3803_v21 = vld [vmem:[%s4453_s1 + $0x68] ss:$16 sps:$4 sm:$0xff]   ;;  %v3810_v22 = vld [vmem:[%s4453_s1 + $0x44] ss:$16 sps:$4 sm:$0xff]   ;;  %v3817_v23 = vld [vmem:[%s4453_s1 + $0x4c] ss:$16 sps:$4 sm:$0xff]  }
   0x9   :  { %254 = vmatprep.subr.bf16.mxu1 %v3745_v11  ;;  %v3824_v24 = vld [vmem:[%s4453_s1 + $0x40] ss:$16 sps:$4 sm:$0xff]   ;;  %v3829_v25 = vld [vmem:[%s4453_s1 + $0x48] ss:$16 sps:$4 sm:$0xff]   ;;  %v3836_v26 = vld [vmem:[%s4453_s1 + $0x24] ss:$16 sps:$4 sm:$0xff]  }
   0xa   :  { %v3841_v27 = vld [vmem:[%s4453_s1 + $0x2c] ss:$16 sps:$4 sm:$0xff]   ;;  %v3846_v28 = vld [vmem:[%s4453_s1 + $0x20] ss:$16 sps:$4 sm:$0xff]   ;;  %v3851_v29 = vld [vmem:[%s4453_s1 + $0x28] ss:$16 sps:$4 sm:$0xff]  }
   0xb   :  { %214 = vmatpush1.bf16.msra.mxu0 %v3750_v12  ;;  %v3856_v30 = vld [vmem:[%s4453_s1 + $0x4] ss:$16 sps:$4 sm:$0xff]   ;;  %v3861_v31 = vld [vmem:[%s4453_s1 + $0xc] ss:$16 sps:$4 sm:$0xff]   ;;  %v3870_v32 = vld [vmem:[%s4453_s1] ss:$16 sps:$4 sm:$0xff]  }
   0xc   :  { %255 = vmatpush1.bf16.msra.mxu1 %v3755_v13  ;;  %215 = vmatprep.subr.bf16.mxu0 %v3762_v14  ;;  %v3875_v33 = vld [vmem:[%s4453_s1 + $0x8] ss:$16 sps:$4 sm:$0xff]   ;;  %v15_v34 = vld [vmem:[#allocation2] sm:$0x3]  ;;  %v301_v40 = vshrl.u32 %v300_v38, 7 }
   0xd   :  { %256 = vmatprep.subr.bf16.mxu1 %v3769_v15  ;;  %v16_v35 = vpack.c.bf16 %v15_v34, %v15_v34  ;;  %v14_v52 = vld [vmem:[%s4454_s0] sm:$0xff] }
   0xe   :  { %v3919_v43 = vsub.s32 %v299_v39, %v301_v40  ;;  %v340_v38 = vld [vmem:[#allocation3] sm:$0x3] }
   0xf   :  { %216 = vmatpush1.bf16.msra.mxu0 %v3774_v16 }
  0x10   :  { %257 = vmatpush1.bf16.msra.mxu1 %v3781_v17  ;;  %217 = vmatprep.subr.bf16.mxu0 %v3786_v18 }
  0x11   :  { %258 = vmatprep.subr.bf16.mxu1 %v3793_v19 }
  0x13   :  { %218 = vmatpush1.bf16.msra.mxu0 %v3798_v20 }
  0x14   :  { %259 = vmatpush1.bf16.msra.mxu1 %v3803_v21  ;;  %219 = vmatprep.subr.bf16.mxu0 %v3810_v22 }
  0x15   :  { %260 = vmatprep.subr.bf16.mxu1 %v3817_v23 }
  0x17   :  { %220 = vmatpush1.bf16.msra.mxu0 %v3824_v24 }
  0x18   :  { %261 = vmatpush1.bf16.msra.mxu1 %v3829_v25  ;;  %221 = vmatprep.subr.bf16.mxu0 %v3836_v26 }
  0x19   :  { %262 = vmatprep.subr.bf16.mxu1 %v3841_v27 }
  0x1b   :  { %222 = vmatpush1.bf16.msra.mxu0 %v3846_v28 }
  0x1c   :  { %263 = vmatpush1.bf16.msra.mxu1 %v3851_v29  ;;  %223 = vmatprep.subr.bf16.mxu0 %v3856_v30 }
  0x1d   :  { %264 = vmatprep.subr.bf16.mxu1 %v3861_v31 }
  0x1f   :  { %224 = vmatpush1.bf16.msra.mxu0 %v3870_v32 }
  0x20   :  { %265 = vmatpush1.bf16.msra.mxu1 %v3875_v33  ;;  %545 = vmatprep.subr.bf16.mxu0 %v3692_v0 }
  0x21   :  { %586 = vmatprep.subr.bf16.mxu1 %v3699_v3 }
  0x22   :  { %242 = vmatmul.mubr.bf16.vlgmr.msra.gmra.mxu0 %v16_v35 }
  0x23   :  { %283 = vmatmul.mubr.bf16.vlgmr.msra.gmra.mxu1 %v16_v35  ;;  %546 = vmatpush1.bf16.msra.mxu0 %v3705_v4 }
  0x24   :  { %587 = vmatpush1.bf16.msra.mxu1 %v3710_v5  ;;  %547 = vmatprep.subr.bf16.mxu0 %v3716_v6 }
  0x25   :  { %588 = vmatprep.subr.bf16.mxu1 %v3723_v7  ;;  %577 = vmatprep.mubr.bf16.mxu0 %v3671_v1 }
  0x26   :  { %618 = vmatprep.mubr.bf16.mxu1 %v3671_v1 }
  0x27   :  { %548 = vmatpush1.bf16.msra.mxu0 %v3728_v8 }
  0x28   :  { %589 = vmatpush1.bf16.msra.mxu1 %v3734_v9  ;;  %549 = vmatprep.subr.bf16.mxu0 %v3740_v10 }
  0x29   :  { %590 = vmatprep.subr.bf16.mxu1 %v3745_v11 }
  0x2b   :  { %550 = vmatpush1.bf16.msra.mxu0 %v3750_v12 }
  0x2c   :  { %591 = vmatpush1.bf16.msra.mxu1 %v3755_v13  ;;  %551 = vmatprep.subr.bf16.mxu0 %v3762_v14 }
  0x2d   :  { %592 = vmatprep.subr.bf16.mxu1 %v3769_v15 }
  0x2f   :  { %552 = vmatpush1.bf16.msra.mxu0 %v3774_v16 }
  0x30   :  { %593 = vmatpush1.bf16.msra.mxu1 %v3781_v17  ;;  %553 = vmatprep.subr.bf16.mxu0 %v3786_v18 }
  0x31   :  { %594 = vmatprep.subr.bf16.mxu1 %v3793_v19 }
  0x33   :  { %554 = vmatpush1.bf16.msra.mxu0 %v3798_v20 }
  0x34   :  { %595 = vmatpush1.bf16.msra.mxu1 %v3803_v21  ;;  %555 = vmatprep.subr.bf16.mxu0 %v3810_v22 }
  0x35   :  { %596 = vmatprep.subr.bf16.mxu1 %v3817_v23 }
  0x37   :  { %556 = vmatpush1.bf16.msra.mxu0 %v3824_v24 }
  0x38   :  { %597 = vmatpush1.bf16.msra.mxu1 %v3829_v25  ;;  %557 = vmatprep.subr.bf16.mxu0 %v3836_v26 }
  0x39   :  { %598 = vmatprep.subr.bf16.mxu1 %v3841_v27 }
  0x3b   :  { %558 = vmatpush1.bf16.msra.mxu0 %v3846_v28 }
  0x3c   :  { %599 = vmatpush1.bf16.msra.mxu1 %v3851_v29  ;;  %559 = vmatprep.subr.bf16.mxu0 %v3856_v30 }
  0x3d   :  { %600 = vmatprep.subr.bf16.mxu1 %v3861_v31 }
  0x3f   :  { %560 = vmatpush1.bf16.msra.mxu0 %v3870_v32 }
  0x40   :  { %601 = vmatpush1.bf16.msra.mxu1 %v3875_v33  ;;  %882 = vmatprep.subr.bf16.mxu0 %v3692_v0 }
  0x41   :  { %923 = vmatprep.subr.bf16.mxu1 %v3699_v3 }
  0xe2   :  { %v243_v41 = vpop.f32.mrf.mxu0 }
  0xe3   :  { %v284_v42 = vpop.f32.mrf.mxu1 }
  0xe4   :  { %v245_v44 = vpop.f32.mrf.mxu0 }
  0xe5   :  { %v286_v45 = vpop.f32.mrf.mxu1  ;;  %v295_v46 = vcombine.low %v243_v41, %v245_v44 }
  0xe6   :  { %v296_v47 = vcombine.low %v284_v42, %v286_v45  ;;  %v247_v48 = vpop.f32.mrf.mxu0 }
  0xe7   :  { %v288_v49 = vpop.f32.mrf.mxu1  ;;  %v303_v50 = vrot.slane %v295_v46, %v3919_v43 }
  0xe8   :  { %v310_v51 = vrot.slane %v296_v47, %v3919_v43  ;;  %v248_v53 = vpop.f32.mrf.mxu0 }
  0xe9   :  { %v289_v54 = vpop.f32.mrf.mxu1 }
  0xea   :  { %v311_v55 = vcombine.low %v303_v50, %v310_v51 }
  0xec   :  { %v313_v56 = vadd.f32 %v311_v55, %v14_v52 }
  0xee   :  { %v3081_v57 = vmul.f32 -1.442695, %v313_v56  ;;  %v321_v58 = vrot.slane %v313_v56, 2  ;;  %v332_v60 = vrot.slane %v313_v56, 6  ;;  %v329_v63 = vrot.slane %v313_v56, 4 }
  0xf0   :  { %3527 = vpow2.f32 %v3081_v57  ;;  %v3082_v59 = vmul.f32 -1.442695, %v321_v58  ;;  %v3083_v61 = vmul.f32 -1.442695, %v332_v60 }
  0xf2   :  { %3529 = vpow2.f32 %v3082_v59 }
  0xf3   :  { %3531 = vpow2.f32 %v3083_v61  ;;  %v3084_v61 = vld [vmem:[%s4454_s0 + $0x8] sm:$0xff] }
  0xfd   :  { %v3528_v62 = vpop.eup %3527 }
  0xfe   :  { %v317_v2 = vadd.f32 1.0, %v3528_v62 }
  0xff   :  { %v3530_v34 = vpop.eup %3529 }
 0x100   :  { %3533 = vrcp.f32 %v317_v2  ;;  %v326_v35 = vadd.f32 1.0, %v3530_v34  ;;  %v3532_v36 = vpop.eup %3531 }
 0x101   :  { %3535 = vtanh.f32 %v329_v63  ;;  %v337_v41 = vadd.f32 1.0, %v3532_v36 }
 0x102   :  { %3537 = vrcp.f32 %v326_v35 }
 0x103   :  { %3539 = vrcp.f32 %v337_v41 }
 0x10d   :  { %v3534_v37 = vpop.eup %3533 }
 0x10e   :  { %v3536_v39 = vpop.eup %3535 }
 0x10f   :  { %v3538_v40 = vpop.eup %3537  ;;  %v342_v44 = vmul.f32 %v3536_v39, %v3534_v37 }
 0x110   :  { %v341_v42 = vmul.f32 %v3538_v40, %v340_v38  ;;  %v3540_v46 = vpop.eup %3539 }
 0x112   :  { %v343_v45 = vadd.f32 %v342_v44, %v341_v42 }
 0x114   :  { %3541 = vtanh.f32 %v343_v45  ;;  %346 = vst [vmem:[#allocation3] sm:$0x3] %v343_v45 }
 0x121   :  { %v3542_v47 = vpop.eup %3541 }
 0x122   :  { %v345_v48 = vmul.f32 %v3542_v47, %v3540_v46 }
 0x124   :  { %347 = vst [vmem:[#allocation2] sm:$0x3] %v345_v48  ;;  %348 = vst [vmem:[%s4455_s2] sm:$0x3] %v345_v48 }
 0x12b   :  { %v351_v49 = vld [vmem:[#allocation2] sm:$0x3] }
 0x12c   :  { %v352_v50 = vpack.c.bf16 %v351_v49, %v351_v49  ;;  %v676_v49 = vld [vmem:[#allocation3] sm:$0x3] }
 0x12e   :  { %578 = vmatmul.mubr.bf16.vlgmr.msra.gmra.mxu0 %v352_v50  ;;  %619 = vmatmul.mubr.bf16.vlgmr.msra.gmra.mxu1 %v352_v50 }
 0x12f   :  { %883 = vmatpush1.bf16.msra.mxu0 %v3705_v4  ;;  %924 = vmatpush1.bf16.msra.mxu1 %v3710_v5 }
 0x130   :  { %884 = vmatprep.subr.bf16.mxu0 %v3716_v6  ;;  %925 = vmatprep.subr.bf16.mxu1 %v3723_v7 }
 0x131   :  { %914 = vmatprep.mubr.bf16.mxu0 %v3671_v1  ;;  %955 = vmatprep.mubr.bf16.mxu1 %v3671_v1 }
 0x133   :  { %885 = vmatpush1.bf16.msra.mxu0 %v3728_v8  ;;  %926 = vmatpush1.bf16.msra.mxu1 %v3734_v9 }
 0x134   :  { %886 = vmatprep.subr.bf16.mxu0 %v3740_v10  ;;  %927 = vmatprep.subr.bf16.mxu1 %v3745_v11 }
 0x137   :  { %887 = vmatpush1.bf16.msra.mxu0 %v3750_v12  ;;  %928 = vmatpush1.bf16.msra.mxu1 %v3755_v13 }
 0x138   :  { %888 = vmatprep.subr.bf16.mxu0 %v3762_v14  ;;  %929 = vmatprep.subr.bf16.mxu1 %v3769_v15 }
 0x13b   :  { %889 = vmatpush1.bf16.msra.mxu0 %v3774_v16  ;;  %930 = vmatpush1.bf16.msra.mxu1 %v3781_v17 }
 0x13c   :  { %890 = vmatprep.subr.bf16.mxu0 %v3786_v18  ;;  %931 = vmatprep.subr.bf16.mxu1 %v3793_v19 }
 0x13f   :  { %891 = vmatpush1.bf16.msra.mxu0 %v3798_v20  ;;  %932 = vmatpush1.bf16.msra.mxu1 %v3803_v21 }
 0x140   :  { %892 = vmatprep.subr.bf16.mxu0 %v3810_v22  ;;  %933 = vmatprep.subr.bf16.mxu1 %v3817_v23 }
 0x143   :  { %893 = vmatpush1.bf16.msra.mxu0 %v3824_v24  ;;  %934 = vmatpush1.bf16.msra.mxu1 %v3829_v25 }
 0x144   :  { %894 = vmatprep.subr.bf16.mxu0 %v3836_v26  ;;  %935 = vmatprep.subr.bf16.mxu1 %v3841_v27 }
 0x147   :  { %895 = vmatpush1.bf16.msra.mxu0 %v3846_v28  ;;  %936 = vmatpush1.bf16.msra.mxu1 %v3851_v29 }
 0x148   :  { %896 = vmatprep.subr.bf16.mxu0 %v3856_v30  ;;  %937 = vmatprep.subr.bf16.mxu1 %v3861_v31 }
 0x14b   :  { %897 = vmatpush1.bf16.msra.mxu0 %v3870_v32  ;;  %938 = vmatpush1.bf16.msra.mxu1 %v3875_v33 }
 0x14c   :  { %1219 = vmatprep.subr.bf16.mxu0 %v3692_v0  ;;  %1260 = vmatprep.subr.bf16.mxu1 %v3699_v3 }
 0x1ee   :  { %v579_v51 = vpop.f32.mrf.mxu0  ;;  %v620_v52 = vpop.f32.mrf.mxu1 }
 0x1f0   :  { %v581_v53 = vpop.f32.mrf.mxu0  ;;  %v622_v54 = vpop.f32.mrf.mxu1 }
 0x1f1   :  { %v631_v55 = vcombine.low %v579_v51, %v581_v53  ;;  %v632_v56 = vcombine.low %v620_v52, %v622_v54 }
 0x1f2   :  { %v583_v57 = vpop.f32.mrf.mxu0  ;;  %v624_v58 = vpop.f32.mrf.mxu1 }
 0x1f3   :  { %v639_v59 = vrot.slane %v631_v55, %v3919_v43  ;;  %v646_v60 = vrot.slane %v632_v56, %v3919_v43 }
 0x1f4   :  { %v584_v62 = vpop.f32.mrf.mxu0  ;;  %v625_v0 = vpop.f32.mrf.mxu1 }
 0x1f5   :  { %v647_v63 = vcombine.low %v639_v59, %v646_v60 }
 0x1f7   :  { %v649_v3 = vadd.f32 %v3084_v61, %v647_v63 }
 0x1f9   :  { %v3117_v2 = vmul.f32 -1.442695, %v649_v3  ;;  %v657_v34 = vrot.slane %v649_v3, 2  ;;  %v668_v36 = vrot.slane %v649_v3, 6  ;;  %v665_v39 = vrot.slane %v649_v3, 4 }
 0x1fb   :  { %3543 = vpow2.f32 %v3117_v2  ;;  %v3118_v35 = vmul.f32 -1.442695, %v657_v34  ;;  %v3119_v37 = vmul.f32 -1.442695, %v668_v36  ;;  %v4016_v34 = vld [vmem:[%s4453_s1 + $0xe4] ss:$16 sps:$4 sm:$0xff]  }
 0x1fc   :  { %v4026_v36 = vld [vmem:[%s4453_s1 + $0xe0] ss:$16 sps:$4 sm:$0xff]  }
 0x1fd   :  { %3545 = vpow2.f32 %v3118_v35  ;;  %v4021_v35 = vld [vmem:[%s4453_s1 + $0xec] ss:$16 sps:$4 sm:$0xff]  }
 0x1fe   :  { %3547 = vpow2.f32 %v3119_v37  ;;  %v4031_v37 = vld [vmem:[%s4453_s1 + $0xe8] ss:$16 sps:$4 sm:$0xff]  }
 0x208   :  { %v3544_v38 = vpop.eup %3543 }
 0x209   :  { %v653_v40 = vadd.f32 1.0, %v3544_v38  ;;  %v4040_v38 = vld [vmem:[%s4453_s1 + $0xc4] ss:$16 sps:$4 sm:$0xff]  }
 0x20a   :  { %v3546_v41 = vpop.eup %3545 }
 0x20b   :  { %3549 = vrcp.f32 %v653_v40  ;;  %v662_v42 = vadd.f32 1.0, %v3546_v41  ;;  %v3548_v44 = vpop.eup %3547  ;;  %v4050_v40 = vld [vmem:[%s4453_s1 + $0xc0] ss:$16 sps:$4 sm:$0xff]   ;;  %v4055_v41 = vld [vmem:[%s4453_s1 + $0xc8] ss:$16 sps:$4 sm:$0xff]  }
 0x20c   :  { %3551 = vtanh.f32 %v665_v39  ;;  %v673_v48 = vadd.f32 1.0, %v3548_v44  ;;  %v4045_v39 = vld [vmem:[%s4453_s1 + $0xcc] ss:$16 sps:$4 sm:$0xff]  }
 0x20d   :  { %3553 = vrcp.f32 %v662_v42  ;;  %v4064_v42 = vld [vmem:[%s4453_s1 + $0xa4] ss:$16 sps:$4 sm:$0xff]   ;;  %v4069_v44 = vld [vmem:[%s4453_s1 + $0xac] ss:$16 sps:$4 sm:$0xff]  }
 0x20e   :  { %3555 = vrcp.f32 %v673_v48  ;;  %v4093_v48 = vld [vmem:[%s4453_s1 + $0x8c] ss:$16 sps:$4 sm:$0xff]  }
 0x218   :  { %v3550_v45 = vpop.eup %3549 }
 0x219   :  { %v3552_v46 = vpop.eup %3551 }
 0x21a   :  { %v3554_v47 = vpop.eup %3553  ;;  %v678_v51 = vmul.f32 %v3552_v46, %v3550_v45  ;;  %v4074_v45 = vld [vmem:[%s4453_s1 + $0xa0] ss:$16 sps:$4 sm:$0xff]   ;;  %v4079_v46 = vld [vmem:[%s4453_s1 + $0xa8] ss:$16 sps:$4 sm:$0xff]  }
 0x21b   :  { %v677_v50 = vmul.f32 %v3554_v47, %v676_v49  ;;  %v3556_v53 = vpop.eup %3555  ;;  %v4088_v47 = vld [vmem:[%s4453_s1 + $0x84] ss:$16 sps:$4 sm:$0xff]   ;;  %v4098_v49 = vld [vmem:[%s4453_s1 + $0x80] ss:$16 sps:$4 sm:$0xff]  }
 0x21d   :  { %v679_v52 = vadd.f32 %v678_v51, %v677_v50  ;;  %v4103_v50 = vld [vmem:[%s4453_s1 + $0x88] ss:$16 sps:$4 sm:$0xff]   ;;  %v4112_v51 = vld [vmem:[%s4453_s1 + $0x64] ss:$16 sps:$4 sm:$0xff]  }
 0x21f   :  { %3557 = vtanh.f32 %v679_v52  ;;  %682 = vst [vmem:[#allocation3] sm:$0x3] %v679_v52  ;;  %v4117_v52 = vld [vmem:[%s4453_s1 + $0x6c] ss:$16 sps:$4 sm:$0xff]  }
 0x226   :  { %v1013_v58 = vld [vmem:[#allocation3] sm:$0x3] }
 0x22c   :  { %v3558_v54 = vpop.eup %3557 }
 0x22d   :  { %v681_v55 = vmul.f32 %v3558_v54, %v3556_v53  ;;  %v4122_v53 = vld [vmem:[%s4453_s1 + $0x60] ss:$16 sps:$4 sm:$0xff]   ;;  %v4127_v54 = vld [vmem:[%s4453_s1 + $0x68] ss:$16 sps:$4 sm:$0xff]  }
 0x22f   :  { %683 = vst [vmem:[#allocation2] sm:$0x3] %v681_v55  ;;  %3120 = vst [vmem:[%s4455_s2 + $0x2] sm:$0x3] %v681_v55  ;;  %v4136_v55 = vld [vmem:[%s4453_s1 + $0x44] ss:$16 sps:$4 sm:$0xff]  }
 0x236   :  { %v688_v56 = vld [vmem:[#allocation2] sm:$0x3] }
 0x237   :  { %v689_v57 = vpack.c.bf16 %v688_v56, %v688_v56  ;;  %v4141_v56 = vld [vmem:[%s4453_s1 + $0x4c] ss:$16 sps:$4 sm:$0xff]  }
 0x239   :  { %915 = vmatmul.mubr.bf16.vlgmr.msra.gmra.mxu0 %v689_v57  ;;  %956 = vmatmul.mubr.bf16.vlgmr.msra.gmra.mxu1 %v689_v57  ;;  %v4146_v57 = vld [vmem:[%s4453_s1 + $0x40] ss:$16 sps:$4 sm:$0xff]  }
 0x23a   :  { %1220 = vmatpush1.bf16.msra.mxu0 %v3705_v4  ;;  %1261 = vmatpush1.bf16.msra.mxu1 %v3710_v5 }
 0x23b   :  { %1221 = vmatprep.subr.bf16.mxu0 %v3716_v6  ;;  %1262 = vmatprep.subr.bf16.mxu1 %v3723_v7 }
 0x23c   :  { %1251 = vmatprep.mubr.bf16.mxu0 %v3671_v1  ;;  %1292 = vmatprep.mubr.bf16.mxu1 %v3671_v1 }
 0x23e   :  { %1222 = vmatpush1.bf16.msra.mxu0 %v3728_v8  ;;  %1263 = vmatpush1.bf16.msra.mxu1 %v3734_v9 }
 0x23f   :  { %1223 = vmatprep.subr.bf16.mxu0 %v3740_v10  ;;  %1264 = vmatprep.subr.bf16.mxu1 %v3745_v11 }
 0x242   :  { %1224 = vmatpush1.bf16.msra.mxu0 %v3750_v12  ;;  %1265 = vmatpush1.bf16.msra.mxu1 %v3755_v13 }
 0x243   :  { %1225 = vmatprep.subr.bf16.mxu0 %v3762_v14  ;;  %1266 = vmatprep.subr.bf16.mxu1 %v3769_v15  ;;  %v3121_v14 = vld [vmem:[%s4454_s0 + $0x10] sm:$0xff] }
 0x246   :  { %1226 = vmatpush1.bf16.msra.mxu0 %v3774_v16  ;;  %1267 = vmatpush1.bf16.msra.mxu1 %v3781_v17 }
 0x247   :  { %1227 = vmatprep.subr.bf16.mxu0 %v3786_v18  ;;  %1268 = vmatprep.subr.bf16.mxu1 %v3793_v19 }
 0x24a   :  { %1228 = vmatpush1.bf16.msra.mxu0 %v3798_v20  ;;  %1269 = vmatpush1.bf16.msra.mxu1 %v3803_v21 }
 0x24b   :  { %1229 = vmatprep.subr.bf16.mxu0 %v3810_v22  ;;  %1270 = vmatprep.subr.bf16.mxu1 %v3817_v23 }
 0x24e   :  { %1230 = vmatpush1.bf16.msra.mxu0 %v3824_v24  ;;  %1271 = vmatpush1.bf16.msra.mxu1 %v3829_v25 }
 0x24f   :  { %1231 = vmatprep.subr.bf16.mxu0 %v3836_v26  ;;  %1272 = vmatprep.subr.bf16.mxu1 %v3841_v27 }
 0x252   :  { %1232 = vmatpush1.bf16.msra.mxu0 %v3846_v28  ;;  %1273 = vmatpush1.bf16.msra.mxu1 %v3851_v29 }
 0x253   :  { %1233 = vmatprep.subr.bf16.mxu0 %v3856_v30  ;;  %1274 = vmatprep.subr.bf16.mxu1 %v3861_v31 }
 0x256   :  { %1234 = vmatpush1.bf16.msra.mxu0 %v3870_v32  ;;  %1275 = vmatpush1.bf16.msra.mxu1 %v3875_v33 }
 0x257   :  { %1556 = vmatprep.subr.bf16.mxu0 %v4016_v34  ;;  %1597 = vmatprep.subr.bf16.mxu1 %v4021_v35 }
 0x2f9   :  { %v916_v4 = vpop.f32.mrf.mxu0  ;;  %v957_v5 = vpop.f32.mrf.mxu1 }
 0x2fb   :  { %v918_v6 = vpop.f32.mrf.mxu0  ;;  %v959_v7 = vpop.f32.mrf.mxu1 }
 0x2fc   :  { %v968_v8 = vcombine.low %v916_v4, %v918_v6  ;;  %v969_v9 = vcombine.low %v957_v5, %v959_v7  ;;  %v4151_v4 = vld [vmem:[%s4453_s1 + $0x48] ss:$16 sps:$4 sm:$0xff]   ;;  %v4160_v5 = vld [vmem:[%s4453_s1 + $0x20] ss:$16 sps:$4 sm:$0xff]   ;;  %v4165_v6 = vld [vmem:[%s4453_s1 + $0x24] ss:$16 sps:$4 sm:$0xff]  }
 0x2fd   :  { %v920_v10 = vpop.f32.mrf.mxu0  ;;  %v961_v11 = vpop.f32.mrf.mxu1  ;;  %v4170_v7 = vld [vmem:[%s4453_s1 + $0x28] ss:$16 sps:$4 sm:$0xff]  }
 0x2fe   :  { %v976_v12 = vrot.slane %v968_v8, %v3919_v43  ;;  %v983_v13 = vrot.slane %v969_v9, %v3919_v43  ;;  %v4175_v8 = vld [vmem:[%s4453_s1 + $0x2c] ss:$16 sps:$4 sm:$0xff]   ;;  %v4180_v9 = vld [vmem:[%s4453_s1 + $0x4] ss:$16 sps:$4 sm:$0xff]   ;;  %v4194_v11 = vld [vmem:[%s4453_s1] ss:$16 sps:$4 sm:$0xff]  }
 0x2ff   :  { %v921_v15 = vpop.f32.mrf.mxu0  ;;  %v962_v16 = vpop.f32.mrf.mxu1  ;;  %v4186_v10 = vld [vmem:[%s4453_s1 + $0xc] ss:$16 sps:$4 sm:$0xff]  }
 0x300   :  { %v984_v17 = vcombine.low %v976_v12, %v983_v13  ;;  %v4199_v12 = vld [vmem:[%s4453_s1 + $0x8] ss:$16 sps:$4 sm:$0xff]  }
 0x302   :  { %v986_v18 = vadd.f32 %v3121_v14, %v984_v17 }
 0x304   :  { %v3154_v19 = vmul.f32 -1.442695, %v986_v18  ;;  %v994_v20 = vrot.slane %v986_v18, 2  ;;  %v1005_v22 = vrot.slane %v986_v18, 6  ;;  %v1002_v25 = vrot.slane %v986_v18, 4 }
 0x306   :  { %3559 = vpow2.f32 %v3154_v19  ;;  %v3155_v21 = vmul.f32 -1.442695, %v994_v20  ;;  %v3156_v23 = vmul.f32 -1.442695, %v1005_v22 }
 0x308   :  { %3561 = vpow2.f32 %v3155_v21 }
 0x309   :  { %3563 = vpow2.f32 %v3156_v23  ;;  %v3158_v23 = vld [vmem:[%s4454_s0 + $0x18] sm:$0xff] }
 0x313   :  { %v3560_v24 = vpop.eup %3559 }
 0x314   :  { %v990_v26 = vadd.f32 1.0, %v3560_v24 }
 0x315   :  { %v3562_v27 = vpop.eup %3561 }
 0x316   :  { %3565 = vrcp.f32 %v990_v26  ;;  %v999_v28 = vadd.f32 1.0, %v3562_v27  ;;  %v3564_v29 = vpop.eup %3563 }
 0x317   :  { %3567 = vtanh.f32 %v1002_v25  ;;  %v1010_v33 = vadd.f32 1.0, %v3564_v29 }
 0x318   :  { %3569 = vrcp.f32 %v999_v28 }
 0x319   :  { %3571 = vrcp.f32 %v1010_v33 }
 0x323   :  { %v3566_v30 = vpop.eup %3565 }
 0x324   :  { %v3568_v31 = vpop.eup %3567 }
 0x325   :  { %v3570_v32 = vpop.eup %3569  ;;  %v1015_v60 = vmul.f32 %v3568_v31, %v3566_v30 }
 0x326   :  { %v1014_v59 = vmul.f32 %v3570_v32, %v1013_v58  ;;  %v3572_v62 = vpop.eup %3571 }
 0x328   :  { %v1016_v61 = vadd.f32 %v1015_v60, %v1014_v59 }
 0x32a   :  { %3573 = vtanh.f32 %v1016_v61  ;;  %1019 = vst [vmem:[#allocation3] sm:$0x3] %v1016_v61 }
 0x337   :  { %v3574_v0 = vpop.eup %3573 }
 0x338   :  { %v1018_v63 = vmul.f32 %v3574_v0, %v3572_v62 }
 0x33a   :  { %1020 = vst [vmem:[#allocation2] sm:$0x3] %v1018_v63  ;;  %3157 = vst [vmem:[%s4455_s2 + $0x4] sm:$0x3] %v1018_v63 }
 0x341   :  { %v1025_v3 = vld [vmem:[#allocation2] sm:$0x3] }
 0x342   :  { %v1026_v2 = vpack.c.bf16 %v1025_v3, %v1025_v3 }
 0x344   :  { %1252 = vmatmul.mubr.bf16.vlgmr.msra.gmra.mxu0 %v1026_v2  ;;  %1293 = vmatmul.mubr.bf16.vlgmr.msra.gmra.mxu1 %v1026_v2 }
 0x345   :  { %1588 = vmatprep.mubr.bf16.mxu0 %v3671_v1  ;;  %1629 = vmatprep.mubr.bf16.mxu1 %v3671_v1 }
 0x346   :  { %1557 = vmatpush1.bf16.msra.mxu0 %v4026_v36  ;;  %1598 = vmatpush1.bf16.msra.mxu1 %v4031_v37 }
 0x347   :  { %1558 = vmatprep.subr.bf16.mxu0 %v4040_v38  ;;  %1599 = vmatprep.subr.bf16.mxu1 %v4045_v39 }
 0x34a   :  { %1559 = vmatpush1.bf16.msra.mxu0 %v4050_v40  ;;  %1600 = vmatpush1.bf16.msra.mxu1 %v4055_v41 }
 0x34b   :  { %1560 = vmatprep.subr.bf16.mxu0 %v4064_v42  ;;  %1601 = vmatprep.subr.bf16.mxu1 %v4069_v44 }
 0x34e   :  { %1561 = vmatpush1.bf16.msra.mxu0 %v4074_v45  ;;  %1602 = vmatpush1.bf16.msra.mxu1 %v4079_v46 }
 0x34f   :  { %1562 = vmatprep.subr.bf16.mxu0 %v4088_v47  ;;  %1603 = vmatprep.subr.bf16.mxu1 %v4093_v48 }
 0x352   :  { %1563 = vmatpush1.bf16.msra.mxu0 %v4098_v49  ;;  %1604 = vmatpush1.bf16.msra.mxu1 %v4103_v50 }
 0x353   :  { %1564 = vmatprep.subr.bf16.mxu0 %v4112_v51  ;;  %1605 = vmatprep.subr.bf16.mxu1 %v4117_v52 }
 0x356   :  { %1565 = vmatpush1.bf16.msra.mxu0 %v4122_v53  ;;  %1606 = vmatpush1.bf16.msra.mxu1 %v4127_v54 }
 0x357   :  { %1566 = vmatprep.subr.bf16.mxu0 %v4136_v55  ;;  %1607 = vmatprep.subr.bf16.mxu1 %v4141_v56 }
 0x35a   :  { %1567 = vmatpush1.bf16.msra.mxu0 %v4146_v57  ;;  %1608 = vmatpush1.bf16.msra.mxu1 %v4151_v4 }
 0x35b   :  { %1568 = vmatprep.subr.bf16.mxu0 %v4165_v6  ;;  %1609 = vmatprep.subr.bf16.mxu1 %v4175_v8 }
 0x35e   :  { %1569 = vmatpush1.bf16.msra.mxu0 %v4160_v5  ;;  %1610 = vmatpush1.bf16.msra.mxu1 %v4170_v7 }
 0x35f   :  { %1570 = vmatprep.subr.bf16.mxu0 %v4180_v9  ;;  %1611 = vmatprep.subr.bf16.mxu1 %v4186_v10 }
 0x362   :  { %1571 = vmatpush1.bf16.msra.mxu0 %v4194_v11  ;;  %1612 = vmatpush1.bf16.msra.mxu1 %v4199_v12 }
 0x363   :  { %1893 = vmatprep.subr.bf16.mxu0 %v4016_v34  ;;  %1934 = vmatprep.subr.bf16.mxu1 %v4021_v35 }
 0x404   :  { %v1253_v13 = vpop.f32.mrf.mxu0  ;;  %v1294_v14 = vpop.f32.mrf.mxu1 }
 0x406   :  { %v1255_v15 = vpop.f32.mrf.mxu0  ;;  %v1296_v16 = vpop.f32.mrf.mxu1 }
 0x407   :  { %v1305_v17 = vcombine.low %v1253_v13, %v1255_v15  ;;  %v1306_v18 = vcombine.low %v1294_v14, %v1296_v16  ;;  %v1350_v13 = vld [vmem:[#allocation3] sm:$0x3] }
 0x408   :  { %v1257_v19 = vpop.f32.mrf.mxu0  ;;  %v1298_v20 = vpop.f32.mrf.mxu1 }
 0x409   :  { %v1313_v21 = vrot.slane %v1305_v17, %v3919_v43  ;;  %v1320_v22 = vrot.slane %v1306_v18, %v3919_v43 }
 0x40a   :  { %v1258_v24 = vpop.f32.mrf.mxu0  ;;  %v1299_v25 = vpop.f32.mrf.mxu1 }
 0x40b   :  { %v1321_v26 = vcombine.low %v1313_v21, %v1320_v22 }
 0x40d   :  { %v1323_v27 = vadd.f32 %v3158_v23, %v1321_v26 }
 0x40f   :  { %v3191_v28 = vmul.f32 -1.442695, %v1323_v27  ;;  %v1331_v29 = vrot.slane %v1323_v27, 2  ;;  %v1342_v31 = vrot.slane %v1323_v27, 6  ;;  %v1339_v58 = vrot.slane %v1323_v27, 4 }
 0x411   :  { %3575 = vpow2.f32 %v3191_v28  ;;  %v3192_v30 = vmul.f32 -1.442695, %v1331_v29  ;;  %v3193_v32 = vmul.f32 -1.442695, %v1342_v31 }
 0x413   :  { %3577 = vpow2.f32 %v3192_v30 }
 0x414   :  { %3579 = vpow2.f32 %v3193_v32  ;;  %v3195_v32 = vld [vmem:[%s4454_s0 + $0x20] sm:$0xff] }
 0x41e   :  { %v3576_v33 = vpop.eup %3575 }
 0x41f   :  { %v1327_v59 = vadd.f32 1.0, %v3576_v33 }
 0x420   :  { %v3578_v60 = vpop.eup %3577 }
 0x421   :  { %3581 = vrcp.f32 %v1327_v59  ;;  %v1336_v61 = vadd.f32 1.0, %v3578_v60  ;;  %v3580_v62 = vpop.eup %3579 }
 0x422   :  { %3583 = vtanh.f32 %v1339_v58  ;;  %v1347_v2 = vadd.f32 1.0, %v3580_v62 }
 0x423   :  { %3585 = vrcp.f32 %v1336_v61 }
 0x424   :  { %3587 = vrcp.f32 %v1347_v2 }
 0x42e   :  { %v3582_v0 = vpop.eup %3581 }
 0x42f   :  { %v3584_v63 = vpop.eup %3583 }
 0x430   :  { %v3586_v3 = vpop.eup %3585  ;;  %v1352_v15 = vmul.f32 %v3584_v63, %v3582_v0 }
 0x431   :  { %v1351_v14 = vmul.f32 %v3586_v3, %v1350_v13  ;;  %v3588_v17 = vpop.eup %3587 }
 0x433   :  { %v1353_v16 = vadd.f32 %v1352_v15, %v1351_v14 }
 0x435   :  { %3589 = vtanh.f32 %v1353_v16  ;;  %1356 = vst [vmem:[#allocation3] sm:$0x3] %v1353_v16 }
 0x442   :  { %v3590_v18 = vpop.eup %3589 }
 0x443   :  { %v1355_v19 = vmul.f32 %v3590_v18, %v3588_v17 }
 0x445   :  { %3194 = vst [vmem:[%s4455_s2 + $0x6] sm:$0x3] %v1355_v19  ;;  %1357 = vst [vmem:[#allocation2] sm:$0x3] %v1355_v19 }
 0x44c   :  { %v1362_v20 = vld [vmem:[#allocation2] sm:$0x3] }
 0x44d   :  { %v1363_v21 = vpack.c.bf16 %v1362_v20, %v1362_v20 }
 0x44f   :  { %1589 = vmatmul.mubr.bf16.vlgmr.msra.gmra.mxu0 %v1363_v21  ;;  %1630 = vmatmul.mubr.bf16.vlgmr.msra.gmra.mxu1 %v1363_v21 }
 0x450   :  { %1894 = vmatpush1.bf16.msra.mxu0 %v4026_v36  ;;  %1935 = vmatpush1.bf16.msra.mxu1 %v4031_v37 }
 0x451   :  { %1895 = vmatprep.subr.bf16.mxu0 %v4040_v38  ;;  %1936 = vmatprep.subr.bf16.mxu1 %v4045_v39 }
 0x452   :  { %1925 = vmatprep.mubr.bf16.mxu0 %v3671_v1  ;;  %1966 = vmatprep.mubr.bf16.mxu1 %v3671_v1 }
 0x454   :  { %1896 = vmatpush1.bf16.msra.mxu0 %v4050_v40  ;;  %1937 = vmatpush1.bf16.msra.mxu1 %v4055_v41 }
 0x455   :  { %1897 = vmatprep.subr.bf16.mxu0 %v4064_v42  ;;  %1938 = vmatprep.subr.bf16.mxu1 %v4069_v44 }
 0x458   :  { %1898 = vmatpush1.bf16.msra.mxu0 %v4074_v45  ;;  %1939 = vmatpush1.bf16.msra.mxu1 %v4079_v46 }
 0x459   :  { %1899 = vmatprep.subr.bf16.mxu0 %v4088_v47  ;;  %1940 = vmatprep.subr.bf16.mxu1 %v4093_v48 }
 0x45c   :  { %1900 = vmatpush1.bf16.msra.mxu0 %v4098_v49  ;;  %1941 = vmatpush1.bf16.msra.mxu1 %v4103_v50 }
 0x45d   :  { %1901 = vmatprep.subr.bf16.mxu0 %v4112_v51  ;;  %1942 = vmatprep.subr.bf16.mxu1 %v4117_v52 }
 0x460   :  { %1902 = vmatpush1.bf16.msra.mxu0 %v4122_v53  ;;  %1943 = vmatpush1.bf16.msra.mxu1 %v4127_v54 }
 0x461   :  { %1903 = vmatprep.subr.bf16.mxu0 %v4136_v55  ;;  %1944 = vmatprep.subr.bf16.mxu1 %v4141_v56 }
 0x464   :  { %1904 = vmatpush1.bf16.msra.mxu0 %v4146_v57  ;;  %1945 = vmatpush1.bf16.msra.mxu1 %v4151_v4 }
 0x465   :  { %1905 = vmatprep.subr.bf16.mxu0 %v4165_v6  ;;  %1946 = vmatprep.subr.bf16.mxu1 %v4175_v8 }
 0x468   :  { %1906 = vmatpush1.bf16.msra.mxu0 %v4160_v5  ;;  %1947 = vmatpush1.bf16.msra.mxu1 %v4170_v7 }
 0x469   :  { %1907 = vmatprep.subr.bf16.mxu0 %v4180_v9  ;;  %1948 = vmatprep.subr.bf16.mxu1 %v4186_v10 }
 0x46c   :  { %1908 = vmatpush1.bf16.msra.mxu0 %v4194_v11  ;;  %1949 = vmatpush1.bf16.msra.mxu1 %v4199_v12 }
 0x46d   :  { %2230 = vmatprep.subr.bf16.mxu0 %v4016_v34  ;;  %2271 = vmatprep.subr.bf16.mxu1 %v4021_v35 }
 0x50f   :  { %v1590_v22 = vpop.f32.mrf.mxu0  ;;  %v1631_v23 = vpop.f32.mrf.mxu1 }
 0x511   :  { %v1592_v24 = vpop.f32.mrf.mxu0  ;;  %v1633_v25 = vpop.f32.mrf.mxu1 }
 0x512   :  { %v1642_v26 = vcombine.low %v1590_v22, %v1592_v24  ;;  %v1643_v27 = vcombine.low %v1631_v23, %v1633_v25  ;;  %v1687_v22 = vld [vmem:[#allocation3] sm:$0x3] }
 0x513   :  { %v1594_v28 = vpop.f32.mrf.mxu0  ;;  %v1635_v29 = vpop.f32.mrf.mxu1 }
 0x514   :  { %v1650_v30 = vrot.slane %v1642_v26, %v3919_v43  ;;  %v1657_v31 = vrot.slane %v1643_v27, %v3919_v43 }
 0x515   :  { %v1595_v33 = vpop.f32.mrf.mxu0  ;;  %v1636_v58 = vpop.f32.mrf.mxu1 }
 0x516   :  { %v1658_v59 = vcombine.low %v1650_v30, %v1657_v31 }
 0x518   :  { %v1660_v60 = vadd.f32 %v3195_v32, %v1658_v59 }
 0x51a   :  { %v3228_v61 = vmul.f32 -1.442695, %v1660_v60  ;;  %v1668_v62 = vrot.slane %v1660_v60, 2  ;;  %v1679_v63 = vrot.slane %v1660_v60, 6  ;;  %v1676_v13 = vrot.slane %v1660_v60, 4 }
 0x51c   :  { %3591 = vpow2.f32 %v3228_v61  ;;  %v3229_v0 = vmul.f32 -1.442695, %v1668_v62  ;;  %v3230_v3 = vmul.f32 -1.442695, %v1679_v63 }
 0x51e   :  { %3593 = vpow2.f32 %v3229_v0 }
 0x51f   :  { %3595 = vpow2.f32 %v3230_v3  ;;  %v3232_v3 = vld [vmem:[%s4454_s0 + $0x28] sm:$0xff] }
 0x529   :  { %v3592_v2 = vpop.eup %3591 }
 0x52a   :  { %v1664_v14 = vadd.f32 1.0, %v3592_v2 }
 0x52b   :  { %v3594_v15 = vpop.eup %3593 }
 0x52c   :  { %3597 = vrcp.f32 %v1664_v14  ;;  %v1673_v16 = vadd.f32 1.0, %v3594_v15  ;;  %v3596_v17 = vpop.eup %3595 }
 0x52d   :  { %3599 = vtanh.f32 %v1676_v13  ;;  %v1684_v21 = vadd.f32 1.0, %v3596_v17 }
 0x52e   :  { %3601 = vrcp.f32 %v1673_v16 }
 0x52f   :  { %3603 = vrcp.f32 %v1684_v21 }
 0x539   :  { %v3598_v18 = vpop.eup %3597 }
 0x53a   :  { %v3600_v19 = vpop.eup %3599 }
 0x53b   :  { %v3602_v20 = vpop.eup %3601  ;;  %v1689_v24 = vmul.f32 %v3600_v19, %v3598_v18 }
 0x53c   :  { %v1688_v23 = vmul.f32 %v3602_v20, %v1687_v22  ;;  %v3604_v26 = vpop.eup %3603 }
 0x53e   :  { %v1690_v25 = vadd.f32 %v1689_v24, %v1688_v23 }
 0x540   :  { %3605 = vtanh.f32 %v1690_v25  ;;  %1693 = vst [vmem:[#allocation3] sm:$0x3] %v1690_v25 }
 0x54d   :  { %v3606_v27 = vpop.eup %3605 }
 0x54e   :  { %v1692_v28 = vmul.f32 %v3606_v27, %v3604_v26 }
 0x550   :  { %3231 = vst [vmem:[%s4455_s2 + $0x8] sm:$0x3] %v1692_v28  ;;  %1694 = vst [vmem:[#allocation2] sm:$0x3] %v1692_v28 }
 0x557   :  { %v1699_v29 = vld [vmem:[#allocation2] sm:$0x3] }
 0x558   :  { %v1700_v30 = vpack.c.bf16 %v1699_v29, %v1699_v29  ;;  %v2024_v29 = vld [vmem:[#allocation3] sm:$0x3] }
 0x55a   :  { %1926 = vmatmul.mubr.bf16.vlgmr.msra.gmra.mxu0 %v1700_v30  ;;  %1967 = vmatmul.mubr.bf16.vlgmr.msra.gmra.mxu1 %v1700_v30 }
 0x55b   :  { %2231 = vmatpush1.bf16.msra.mxu0 %v4026_v36  ;;  %2272 = vmatpush1.bf16.msra.mxu1 %v4031_v37 }
 0x55c   :  { %2232 = vmatprep.subr.bf16.mxu0 %v4040_v38  ;;  %2273 = vmatprep.subr.bf16.mxu1 %v4045_v39 }
 0x55d   :  { %2262 = vmatprep.mubr.bf16.mxu0 %v3671_v1  ;;  %2303 = vmatprep.mubr.bf16.mxu1 %v3671_v1 }
 0x55f   :  { %2233 = vmatpush1.bf16.msra.mxu0 %v4050_v40  ;;  %2274 = vmatpush1.bf16.msra.mxu1 %v4055_v41 }
 0x560   :  { %2234 = vmatprep.subr.bf16.mxu0 %v4064_v42  ;;  %2275 = vmatprep.subr.bf16.mxu1 %v4069_v44 }
 0x563   :  { %2235 = vmatpush1.bf16.msra.mxu0 %v4074_v45  ;;  %2276 = vmatpush1.bf16.msra.mxu1 %v4079_v46 }
 0x564   :  { %2236 = vmatprep.subr.bf16.mxu0 %v4088_v47  ;;  %2277 = vmatprep.subr.bf16.mxu1 %v4093_v48 }
 0x567   :  { %2237 = vmatpush1.bf16.msra.mxu0 %v4098_v49  ;;  %2278 = vmatpush1.bf16.msra.mxu1 %v4103_v50 }
 0x568   :  { %2238 = vmatprep.subr.bf16.mxu0 %v4112_v51  ;;  %2279 = vmatprep.subr.bf16.mxu1 %v4117_v52 }
 0x56b   :  { %2239 = vmatpush1.bf16.msra.mxu0 %v4122_v53  ;;  %2280 = vmatpush1.bf16.msra.mxu1 %v4127_v54 }
 0x56c   :  { %2240 = vmatprep.subr.bf16.mxu0 %v4136_v55  ;;  %2281 = vmatprep.subr.bf16.mxu1 %v4141_v56 }
 0x56f   :  { %2241 = vmatpush1.bf16.msra.mxu0 %v4146_v57  ;;  %2282 = vmatpush1.bf16.msra.mxu1 %v4151_v4 }
 0x570   :  { %2242 = vmatprep.subr.bf16.mxu0 %v4165_v6  ;;  %2283 = vmatprep.subr.bf16.mxu1 %v4175_v8 }
 0x573   :  { %2243 = vmatpush1.bf16.msra.mxu0 %v4160_v5  ;;  %2284 = vmatpush1.bf16.msra.mxu1 %v4170_v7 }
 0x574   :  { %2244 = vmatprep.subr.bf16.mxu0 %v4180_v9  ;;  %2285 = vmatprep.subr.bf16.mxu1 %v4186_v10 }
 0x577   :  { %2245 = vmatpush1.bf16.msra.mxu0 %v4194_v11  ;;  %2286 = vmatpush1.bf16.msra.mxu1 %v4199_v12 }
 0x578   :  { %2567 = vmatprep.subr.bf16.mxu0 %v4016_v34  ;;  %2608 = vmatprep.subr.bf16.mxu1 %v4021_v35 }
 0x61a   :  { %v1927_v31 = vpop.f32.mrf.mxu0  ;;  %v1968_v32 = vpop.f32.mrf.mxu1 }
 0x61c   :  { %v1929_v33 = vpop.f32.mrf.mxu0  ;;  %v1970_v58 = vpop.f32.mrf.mxu1 }
 0x61d   :  { %v1979_v59 = vcombine.low %v1927_v31, %v1929_v33  ;;  %v1980_v60 = vcombine.low %v1968_v32, %v1970_v58 }
 0x61e   :  { %v1931_v61 = vpop.f32.mrf.mxu0  ;;  %v1972_v62 = vpop.f32.mrf.mxu1 }
 0x61f   :  { %v1987_v0 = vrot.slane %v1979_v59, %v3919_v43  ;;  %v1994_v63 = vrot.slane %v1980_v60, %v3919_v43 }
 0x620   :  { %v1932_v2 = vpop.f32.mrf.mxu0  ;;  %v1973_v34 = vpop.f32.mrf.mxu1 }
 0x621   :  { %v1995_v13 = vcombine.low %v1987_v0, %v1994_v63 }
 0x623   :  { %v1997_v35 = vadd.f32 %v3232_v3, %v1995_v13 }
 0x625   :  { %v3265_v14 = vmul.f32 -1.442695, %v1997_v35  ;;  %v2005_v15 = vrot.slane %v1997_v35, 2  ;;  %v2016_v17 = vrot.slane %v1997_v35, 6  ;;  %v2013_v20 = vrot.slane %v1997_v35, 4 }
 0x627   :  { %3607 = vpow2.f32 %v3265_v14  ;;  %v3266_v16 = vmul.f32 -1.442695, %v2005_v15  ;;  %v3267_v18 = vmul.f32 -1.442695, %v2016_v17  ;;  %v3481_v15 = vld [vmem:[%s4453_s1 + $0xe4] ss:$16 sps:$4 sm:$0xff]  }
 0x628   :  { %v3479_v17 = vld [vmem:[%s4453_s1 + $0xe0] ss:$16 sps:$4 sm:$0xff]  }
 0x629   :  { %3609 = vpow2.f32 %v3266_v16  ;;  %v3484_v16 = vld [vmem:[%s4453_s1 + $0xec] ss:$16 sps:$4 sm:$0xff]  }
 0x62a   :  { %3611 = vpow2.f32 %v3267_v18  ;;  %v3482_v18 = vld [vmem:[%s4453_s1 + $0xe8] ss:$16 sps:$4 sm:$0xff]  }
 0x634   :  { %v3608_v19 = vpop.eup %3607 }
 0x635   :  { %v2001_v21 = vadd.f32 1.0, %v3608_v19  ;;  %v3490_v19 = vld [vmem:[%s4453_s1 + $0xcc] ss:$16 sps:$4 sm:$0xff]  }
 0x636   :  { %v3610_v22 = vpop.eup %3609 }
 0x637   :  { %3613 = vrcp.f32 %v2001_v21  ;;  %v2010_v23 = vadd.f32 1.0, %v3610_v22  ;;  %v3612_v24 = vpop.eup %3611  ;;  %v3488_v21 = vld [vmem:[%s4453_s1 + $0xc8] ss:$16 sps:$4 sm:$0xff]   ;;  %v3493_v22 = vld [vmem:[%s4453_s1 + $0xa4] ss:$16 sps:$4 sm:$0xff]  }
 0x638   :  { %3615 = vtanh.f32 %v2013_v20  ;;  %v2021_v28 = vadd.f32 1.0, %v3612_v24  ;;  %v3485_v20 = vld [vmem:[%s4453_s1 + $0xc0] ss:$16 sps:$4 sm:$0xff]  }
 0x639   :  { %3617 = vrcp.f32 %v2010_v23  ;;  %v3496_v23 = vld [vmem:[%s4453_s1 + $0xac] ss:$16 sps:$4 sm:$0xff]   ;;  %v3491_v24 = vld [vmem:[%s4453_s1 + $0xa0] ss:$16 sps:$4 sm:$0xff]  }
 0x63a   :  { %3619 = vrcp.f32 %v2021_v28  ;;  %v3497_v28 = vld [vmem:[%s4453_s1 + $0x80] ss:$16 sps:$4 sm:$0xff]  }
 0x644   :  { %v3614_v25 = vpop.eup %3613 }
 0x645   :  { %v3616_v26 = vpop.eup %3615 }
 0x646   :  { %v3618_v27 = vpop.eup %3617  ;;  %v2026_v31 = vmul.f32 %v3616_v26, %v3614_v25  ;;  %v3494_v25 = vld [vmem:[%s4453_s1 + $0xa8] ss:$16 sps:$4 sm:$0xff]   ;;  %v3499_v26 = vld [vmem:[%s4453_s1 + $0x84] ss:$16 sps:$4 sm:$0xff]  }
 0x647   :  { %v2025_v30 = vmul.f32 %v3618_v27, %v2024_v29  ;;  %v3620_v33 = vpop.eup %3619  ;;  %v3502_v27 = vld [vmem:[%s4453_s1 + $0x8c] ss:$16 sps:$4 sm:$0xff]   ;;  %v3500_v29 = vld [vmem:[%s4453_s1 + $0x88] ss:$16 sps:$4 sm:$0xff]  }
 0x649   :  { %v2027_v32 = vadd.f32 %v2026_v31, %v2025_v30  ;;  %v3505_v30 = vld [vmem:[%s4453_s1 + $0x64] ss:$16 sps:$4 sm:$0xff]   ;;  %v3508_v31 = vld [vmem:[%s4453_s1 + $0x6c] ss:$16 sps:$4 sm:$0xff]  }
 0x64b   :  { %3621 = vtanh.f32 %v2027_v32  ;;  %2030 = vst [vmem:[#allocation3] sm:$0x3] %v2027_v32  ;;  %v3503_v32 = vld [vmem:[%s4453_s1 + $0x60] ss:$16 sps:$4 sm:$0xff]  }
 0x652   :  { %v2361_v62 = vld [vmem:[#allocation3] sm:$0x3] }
 0x658   :  { %v3622_v58 = vpop.eup %3621 }
 0x659   :  { %v2029_v59 = vmul.f32 %v3622_v58, %v3620_v33  ;;  %v3506_v33 = vld [vmem:[%s4453_s1 + $0x68] ss:$16 sps:$4 sm:$0xff]   ;;  %v3511_v58 = vld [vmem:[%s4453_s1 + $0x44] ss:$16 sps:$4 sm:$0xff]  }
 0x65b   :  { %3268 = vst [vmem:[%s4455_s2 + $0xa] sm:$0x3] %v2029_v59  ;;  %2031 = vst [vmem:[#allocation2] sm:$0x3] %v2029_v59  ;;  %v3514_v59 = vld [vmem:[%s4453_s1 + $0x4c] ss:$16 sps:$4 sm:$0xff]  }
 0x662   :  { %v2036_v60 = vld [vmem:[#allocation2] sm:$0x3] }
 0x663   :  { %v2037_v61 = vpack.c.bf16 %v2036_v60, %v2036_v60  ;;  %v3509_v60 = vld [vmem:[%s4453_s1 + $0x40] ss:$16 sps:$4 sm:$0xff]  }
 0x665   :  { %2263 = vmatmul.mubr.bf16.vlgmr.msra.gmra.mxu0 %v2037_v61  ;;  %2304 = vmatmul.mubr.bf16.vlgmr.msra.gmra.mxu1 %v2037_v61  ;;  %v3512_v61 = vld [vmem:[%s4453_s1 + $0x48] ss:$16 sps:$4 sm:$0xff]  }
 0x666   :  { %2568 = vmatpush1.bf16.msra.mxu0 %v4026_v36  ;;  %2609 = vmatpush1.bf16.msra.mxu1 %v4031_v37 }
 0x667   :  { %2569 = vmatprep.subr.bf16.mxu0 %v4040_v38  ;;  %2610 = vmatprep.subr.bf16.mxu1 %v4045_v39 }
 0x668   :  { %2599 = vmatprep.mubr.bf16.mxu0 %v3671_v1  ;;  %2640 = vmatprep.mubr.bf16.mxu1 %v3671_v1 }
 0x66a   :  { %2570 = vmatpush1.bf16.msra.mxu0 %v4050_v40  ;;  %2611 = vmatpush1.bf16.msra.mxu1 %v4055_v41 }
 0x66b   :  { %2571 = vmatprep.subr.bf16.mxu0 %v4064_v42  ;;  %2612 = vmatprep.subr.bf16.mxu1 %v4069_v44 }
 0x66e   :  { %2572 = vmatpush1.bf16.msra.mxu0 %v4074_v45  ;;  %2613 = vmatpush1.bf16.msra.mxu1 %v4079_v46 }
 0x66f   :  { %2573 = vmatprep.subr.bf16.mxu0 %v4088_v47  ;;  %2614 = vmatprep.subr.bf16.mxu1 %v4093_v48  ;;  %v3269_v47 = vld [vmem:[%s4454_s0 + $0x30] sm:$0xff] }
 0x672   :  { %2574 = vmatpush1.bf16.msra.mxu0 %v4098_v49  ;;  %2615 = vmatpush1.bf16.msra.mxu1 %v4103_v50 }
 0x673   :  { %2575 = vmatprep.subr.bf16.mxu0 %v4112_v51  ;;  %2616 = vmatprep.subr.bf16.mxu1 %v4117_v52 }
 0x676   :  { %2576 = vmatpush1.bf16.msra.mxu0 %v4122_v53  ;;  %2617 = vmatpush1.bf16.msra.mxu1 %v4127_v54 }
 0x677   :  { %2577 = vmatprep.subr.bf16.mxu0 %v4136_v55  ;;  %2618 = vmatprep.subr.bf16.mxu1 %v4141_v56 }
 0x67a   :  { %2578 = vmatpush1.bf16.msra.mxu0 %v4146_v57  ;;  %2619 = vmatpush1.bf16.msra.mxu1 %v4151_v4 }
 0x67b   :  { %2579 = vmatprep.subr.bf16.mxu0 %v4165_v6  ;;  %2620 = vmatprep.subr.bf16.mxu1 %v4175_v8 }
 0x67e   :  { %2580 = vmatpush1.bf16.msra.mxu0 %v4160_v5  ;;  %2621 = vmatpush1.bf16.msra.mxu1 %v4170_v7 }
 0x67f   :  { %2581 = vmatprep.subr.bf16.mxu0 %v4180_v9  ;;  %2622 = vmatprep.subr.bf16.mxu1 %v4186_v10 }
 0x682   :  { %2582 = vmatpush1.bf16.msra.mxu0 %v4194_v11  ;;  %2623 = vmatpush1.bf16.msra.mxu1 %v4199_v12 }
 0x683   :  { %2904 = vmatprep.subr.bf16.mxu0 %v3481_v15  ;;  %2945 = vmatprep.subr.bf16.mxu1 %v3484_v16 }
 0x725   :  { %v2264_v36 = vpop.f32.mrf.mxu0  ;;  %v2305_v37 = vpop.f32.mrf.mxu1 }
 0x727   :  { %v2266_v38 = vpop.f32.mrf.mxu0  ;;  %v2307_v39 = vpop.f32.mrf.mxu1 }
 0x728   :  { %v2316_v40 = vcombine.low %v2264_v36, %v2266_v38  ;;  %v2317_v41 = vcombine.low %v2305_v37, %v2307_v39  ;;  %v3515_v36 = vld [vmem:[%s4453_s1 + $0x20] ss:$16 sps:$4 sm:$0xff]   ;;  %v3517_v37 = vld [vmem:[%s4453_s1 + $0x24] ss:$16 sps:$4 sm:$0xff]   ;;  %v3518_v38 = vld [vmem:[%s4453_s1 + $0x28] ss:$16 sps:$4 sm:$0xff]  }
 0x729   :  { %v2268_v42 = vpop.f32.mrf.mxu0  ;;  %v2309_v44 = vpop.f32.mrf.mxu1  ;;  %v3520_v39 = vld [vmem:[%s4453_s1 + $0x2c] ss:$16 sps:$4 sm:$0xff]  }
 0x72a   :  { %v2324_v45 = vrot.slane %v2316_v40, %v3919_v43  ;;  %v2331_v46 = vrot.slane %v2317_v41, %v3919_v43  ;;  %v3523_v40 = vld [vmem:[%s4453_s1 + $0x4] ss:$16 sps:$4 sm:$0xff]   ;;  %v3526_v41 = vld [vmem:[%s4453_s1 + $0xc] ss:$16 sps:$4 sm:$0xff]   ;;  %v3521_v42 = vld [vmem:[%s4453_s1] ss:$16 sps:$4 sm:$0xff]  }
 0x72b   :  { %v2269_v48 = vpop.f32.mrf.mxu0  ;;  %v2310_v49 = vpop.f32.mrf.mxu1  ;;  %v3524_v44 = vld [vmem:[%s4453_s1 + $0x8] ss:$16 sps:$4 sm:$0xff]  }
 0x72c   :  { %v2332_v50 = vcombine.low %v2324_v45, %v2331_v46 }
 0x72e   :  { %v2334_v51 = vadd.f32 %v3269_v47, %v2332_v50 }
 0x730   :  { %v3302_v52 = vmul.f32 -1.442695, %v2334_v51  ;;  %v2342_v53 = vrot.slane %v2334_v51, 2  ;;  %v2353_v55 = vrot.slane %v2334_v51, 6  ;;  %v2350_v4 = vrot.slane %v2334_v51, 4 }
 0x732   :  { %3623 = vpow2.f32 %v3302_v52  ;;  %v3303_v54 = vmul.f32 -1.442695, %v2342_v53  ;;  %v3304_v56 = vmul.f32 -1.442695, %v2353_v55  ;;  %v3306_v55 = vld [vmem:[%s4454_s0 + $0x38] sm:$0xff] }
 0x734   :  { %3625 = vpow2.f32 %v3303_v54 }
 0x735   :  { %3627 = vpow2.f32 %v3304_v56 }
 0x73f   :  { %v3624_v57 = vpop.eup %3623 }
 0x740   :  { %v2338_v5 = vadd.f32 1.0, %v3624_v57 }
 0x741   :  { %v3626_v6 = vpop.eup %3625 }
 0x742   :  { %3629 = vrcp.f32 %v2338_v5  ;;  %v2347_v7 = vadd.f32 1.0, %v3626_v6  ;;  %v3628_v8 = vpop.eup %3627 }
 0x743   :  { %3631 = vtanh.f32 %v2350_v4  ;;  %v2358_v12 = vadd.f32 1.0, %v3628_v8 }
 0x744   :  { %3633 = vrcp.f32 %v2347_v7 }
 0x745   :  { %3635 = vrcp.f32 %v2358_v12 }
 0x74f   :  { %v3630_v9 = vpop.eup %3629 }
 0x750   :  { %v3632_v10 = vpop.eup %3631 }
 0x751   :  { %v3634_v11 = vpop.eup %3633  ;;  %v2363_v63 = vmul.f32 %v3632_v10, %v3630_v9 }
 0x752   :  { %v2362_v0 = vmul.f32 %v3634_v11, %v2361_v62  ;;  %v3636_v2 = vpop.eup %3635 }
 0x754   :  { %v2364_v3 = vadd.f32 %v2363_v63, %v2362_v0 }
 0x756   :  { %3637 = vtanh.f32 %v2364_v3  ;;  %2367 = vst [vmem:[#allocation3] sm:$0x3] %v2364_v3 }
 0x763   :  { %v3638_v34 = vpop.eup %3637 }
 0x764   :  { %v2366_v13 = vmul.f32 %v3638_v34, %v3636_v2 }
 0x766   :  { %3305 = vst [vmem:[%s4455_s2 + $0xc] sm:$0x3] %v2366_v13  ;;  %2368 = vst [vmem:[#allocation2] sm:$0x3] %v2366_v13 }
 0x76d   :  { %v2373_v35 = vld [vmem:[#allocation2] sm:$0x3] }
 0x76e   :  { %v2374_v14 = vpack.c.bf16 %v2373_v35, %v2373_v35 }
 0x770   :  { %2600 = vmatmul.mubr.bf16.vlgmr.msra.gmra.mxu0 %v2374_v14  ;;  %2641 = vmatmul.mubr.bf16.vlgmr.msra.gmra.mxu1 %v2374_v14  ;;  %v2698_v14 = vld [vmem:[#allocation3] sm:$0x3] }
 0x771   :  { %2936 = vmatprep.mubr.bf16.mxu0 %v3671_v1  ;;  %2977 = vmatprep.mubr.bf16.mxu1 %v3671_v1  ;;  %v3487_v1 = vld [vmem:[%s4453_s1 + $0xc4] ss:$16 sps:$4 sm:$0xff]  }
 0x772   :  { %2905 = vmatpush1.bf16.msra.mxu0 %v3479_v17  ;;  %2946 = vmatpush1.bf16.msra.mxu1 %v3482_v18 }
 0x773   :  { %2906 = vmatprep.subr.bf16.mxu0 %v3487_v1  ;;  %2947 = vmatprep.subr.bf16.mxu1 %v3490_v19 }
 0x776   :  { %2907 = vmatpush1.bf16.msra.mxu0 %v3485_v20  ;;  %2948 = vmatpush1.bf16.msra.mxu1 %v3488_v21 }
 0x777   :  { %2908 = vmatprep.subr.bf16.mxu0 %v3493_v22  ;;  %2949 = vmatprep.subr.bf16.mxu1 %v3496_v23 }
 0x77a   :  { %2909 = vmatpush1.bf16.msra.mxu0 %v3491_v24  ;;  %2950 = vmatpush1.bf16.msra.mxu1 %v3494_v25 }
 0x77b   :  { %2910 = vmatprep.subr.bf16.mxu0 %v3499_v26  ;;  %2951 = vmatprep.subr.bf16.mxu1 %v3502_v27 }
 0x77e   :  { %2911 = vmatpush1.bf16.msra.mxu0 %v3497_v28  ;;  %2952 = vmatpush1.bf16.msra.mxu1 %v3500_v29 }
 0x77f   :  { %2912 = vmatprep.subr.bf16.mxu0 %v3505_v30  ;;  %2953 = vmatprep.subr.bf16.mxu1 %v3508_v31 }
 0x782   :  { %2913 = vmatpush1.bf16.msra.mxu0 %v3503_v32  ;;  %2954 = vmatpush1.bf16.msra.mxu1 %v3506_v33  ;;  %v3343_v32 = vld [vmem:[%s4454_s0 + $0x40] sm:$0xff] }
 0x783   :  { %2914 = vmatprep.subr.bf16.mxu0 %v3511_v58  ;;  %2955 = vmatprep.subr.bf16.mxu1 %v3514_v59 }
 0x786   :  { %2915 = vmatpush1.bf16.msra.mxu0 %v3509_v60  ;;  %2956 = vmatpush1.bf16.msra.mxu1 %v3512_v61 }
 0x787   :  { %2916 = vmatprep.subr.bf16.mxu0 %v3517_v37  ;;  %2957 = vmatprep.subr.bf16.mxu1 %v3520_v39 }
 0x78a   :  { %2917 = vmatpush1.bf16.msra.mxu0 %v3515_v36  ;;  %2958 = vmatpush1.bf16.msra.mxu1 %v3518_v38 }
 0x78b   :  { %2918 = vmatprep.subr.bf16.mxu0 %v3523_v40  ;;  %2959 = vmatprep.subr.bf16.mxu1 %v3526_v41 }
 0x78e   :  { %2919 = vmatpush1.bf16.msra.mxu0 %v3521_v42  ;;  %2960 = vmatpush1.bf16.msra.mxu1 %v3524_v44 }
 0x830   :  { %v2601_v45 = vpop.f32.mrf.mxu0  ;;  %v2642_v46 = vpop.f32.mrf.mxu1 }
 0x832   :  { %v2603_v47 = vpop.f32.mrf.mxu0  ;;  %v2644_v48 = vpop.f32.mrf.mxu1 }
 0x833   :  { %v2653_v49 = vcombine.low %v2601_v45, %v2603_v47  ;;  %v2654_v50 = vcombine.low %v2642_v46, %v2644_v48 }
 0x834   :  { %v2605_v51 = vpop.f32.mrf.mxu0  ;;  %v2646_v52 = vpop.f32.mrf.mxu1 }
 0x835   :  { %v2661_v53 = vrot.slane %v2653_v49, %v3919_v43  ;;  %v2668_v54 = vrot.slane %v2654_v50, %v3919_v43 }
 0x836   :  { %v2606_v56 = vpop.f32.mrf.mxu0  ;;  %v2647_v57 = vpop.f32.mrf.mxu1 }
 0x837   :  { %v2669_v4 = vcombine.low %v2661_v53, %v2668_v54 }
 0x839   :  { %v2671_v5 = vadd.f32 %v3306_v55, %v2669_v4 }
 0x83b   :  { %v3339_v6 = vmul.f32 -1.442695, %v2671_v5  ;;  %v2679_v7 = vrot.slane %v2671_v5, 2  ;;  %v2690_v9 = vrot.slane %v2671_v5, 6  ;;  %v2687_v12 = vrot.slane %v2671_v5, 4 }
 0x83d   :  { %3639 = vpow2.f32 %v3339_v6  ;;  %v3340_v8 = vmul.f32 -1.442695, %v2679_v7  ;;  %v3341_v10 = vmul.f32 -1.442695, %v2690_v9 }
 0x83f   :  { %3641 = vpow2.f32 %v3340_v8 }
 0x840   :  { %3643 = vpow2.f32 %v3341_v10 }
 0x84a   :  { %v3640_v11 = vpop.eup %3639 }
 0x84b   :  { %v2675_v62 = vadd.f32 1.0, %v3640_v11 }
 0x84c   :  { %v3642_v0 = vpop.eup %3641 }
 0x84d   :  { %3645 = vrcp.f32 %v2675_v62  ;;  %v2684_v63 = vadd.f32 1.0, %v3642_v0  ;;  %v3644_v3 = vpop.eup %3643 }
 0x84e   :  { %3647 = vtanh.f32 %v2687_v12  ;;  %v2695_v35 = vadd.f32 1.0, %v3644_v3 }
 0x84f   :  { %3649 = vrcp.f32 %v2684_v63 }
 0x850   :  { %3651 = vrcp.f32 %v2695_v35 }
 0x85a   :  { %v3646_v2 = vpop.eup %3645 }
 0x85b   :  { %v3648_v34 = vpop.eup %3647 }
 0x85c   :  { %v3650_v13 = vpop.eup %3649  ;;  %v2700_v16 = vmul.f32 %v3648_v34, %v3646_v2 }
 0x85d   :  { %v2699_v15 = vmul.f32 %v3650_v13, %v2698_v14  ;;  %v3652_v18 = vpop.eup %3651 }
 0x85f   :  { %v2701_v17 = vadd.f32 %v2700_v16, %v2699_v15 }
 0x861   :  { %3653 = vtanh.f32 %v2701_v17  ;;  %2704 = vst [vmem:[#allocation3] sm:$0x3] %v2701_v17 }
 0x868   :  { %v3035_v50 = vld [vmem:[#allocation3] sm:$0x3] }
 0x86e   :  { %v3654_v1 = vpop.eup %3653 }
 0x86f   :  { %v2703_v19 = vmul.f32 %v3654_v1, %v3652_v18 }
 0x871   :  { %3342 = vst [vmem:[%s4455_s2 + $0xe] sm:$0x3] %v2703_v19  ;;  %2705 = vst [vmem:[#allocation2] sm:$0x3] %v2703_v19 }
 0x878   :  { %v2710_v20 = vld [vmem:[#allocation2] sm:$0x3] }
 0x879   :  { %v2711_v21 = vpack.c.bf16 %v2710_v20, %v2710_v20 }
 0x87b   :  { %2937 = vmatmul.mubr.bf16.vlgmr.msra.gmra.mxu0 %v2711_v21  ;;  %2978 = vmatmul.mubr.bf16.vlgmr.msra.gmra.mxu1 %v2711_v21 }
 0x93b   :  { %v2938_v22 = vpop.f32.mrf.mxu0  ;;  %v2979_v23 = vpop.f32.mrf.mxu1 }
 0x93d   :  { %v2940_v24 = vpop.f32.mrf.mxu0  ;;  %v2981_v25 = vpop.f32.mrf.mxu1 }
 0x93e   :  { %v2990_v26 = vcombine.low %v2938_v22, %v2940_v24  ;;  %v2991_v27 = vcombine.low %v2979_v23, %v2981_v25 }
 0x93f   :  { %v2942_v28 = vpop.f32.mrf.mxu0  ;;  %v2983_v29 = vpop.f32.mrf.mxu1 }
 0x940   :  { %v2998_v30 = vrot.slane %v2990_v26, %v3919_v43  ;;  %v3005_v31 = vrot.slane %v2991_v27, %v3919_v43 }
 0x941   :  { %v2943_v33 = vpop.f32.mrf.mxu0  ;;  %v2984_v58 = vpop.f32.mrf.mxu1 }
 0x942   :  { %v3006_v59 = vcombine.low %v2998_v30, %v3005_v31 }
 0x944   :  { %v3008_v60 = vadd.f32 %v3343_v32, %v3006_v59 }
 0x946   :  { %v3376_v61 = vmul.f32 -1.442695, %v3008_v60  ;;  %v3016_v36 = vrot.slane %v3008_v60, 2  ;;  %v3027_v38 = vrot.slane %v3008_v60, 6  ;;  %v3024_v41 = vrot.slane %v3008_v60, 4 }
 0x948   :  { %3655 = vpow2.f32 %v3376_v61  ;;  %v3377_v37 = vmul.f32 -1.442695, %v3016_v36  ;;  %v3378_v39 = vmul.f32 -1.442695, %v3027_v38 }
 0x94a   :  { %3657 = vpow2.f32 %v3377_v37 }
 0x94b   :  { %3659 = vpow2.f32 %v3378_v39 }
 0x955   :  { %v3656_v40 = vpop.eup %3655 }
 0x956   :  { %v3012_v42 = vadd.f32 1.0, %v3656_v40 }
 0x957   :  { %v3658_v44 = vpop.eup %3657 }
 0x958   :  { %3661 = vrcp.f32 %v3012_v42  ;;  %v3021_v43 = vadd.f32 1.0, %v3658_v44  ;;  %v3660_v45 = vpop.eup %3659 }
 0x959   :  { %3663 = vtanh.f32 %v3024_v41  ;;  %v3032_v49 = vadd.f32 1.0, %v3660_v45 }
 0x95a   :  { %3665 = vrcp.f32 %v3021_v43 }
 0x95b   :  { %3667 = vrcp.f32 %v3032_v49 }
 0x965   :  { %v3662_v46 = vpop.eup %3661 }
 0x966   :  { %v3664_v47 = vpop.eup %3663 }
 0x967   :  { %v3666_v48 = vpop.eup %3665  ;;  %v3037_v52 = vmul.f32 %v3664_v47, %v3662_v46 }
 0x968   :  { %v3036_v51 = vmul.f32 %v3666_v48, %v3035_v50  ;;  %v3668_v54 = vpop.eup %3667 }
 0x96a   :  { %v3038_v53 = vadd.f32 %v3037_v52, %v3036_v51 }
 0x96c   :  { %3669 = vtanh.f32 %v3038_v53  ;;  %3041 = vst [vmem:[#allocation3] sm:$0x3] %v3038_v53 }
 0x979   :  { %v3670_v55 = vpop.eup %3669 }
 0x97a   :  { %v3040_v56 = vmul.f32 %v3670_v55, %v3668_v54 }
 0x97c   :  { %3042 = vst [vmem:[#allocation2] sm:$0x3] %v3040_v56  ;;  %3379 = vst [vmem:[%s4455_s2 + $0x10] sm:$0x3] %v3040_v56 }

</bundles_post_ra>
